<compile_context>
chip_gen: v7x
topology: tpu7x:2x2x1
jax: 0.10.0
libtpu: 0.0.40
codegen_flags: <defaults>
</compile_context>

<pallas_src>
import math
from functools import partial

import numpy as np
import jax
import jax.numpy as jnp
from jax import lax
from jax.experimental import pallas as pl
from jax.experimental.pallas import tpu as pltpu

F32 = jnp.float32
BN_EPS = 1e-5
RATES = (1, 6, 12, 18)


def _sigmoid(x):
    # exp + approx reciprocal both run on the EUP slot (keeps divides off VALU)
    return pl.reciprocal(1.0 + jnp.exp(-x), approx=True)


def _surviving_taps(h, w):
    """Per dilation rate, the 3x3 taps whose receptive field is not entirely in
    the zero padding (all other taps contribute nothing and are pruned)."""
    plan = []
    for rate in RATES:
        taps = []
        for di in range(3):
            for dj in range(3):
                ki, kj = di - 1, dj - 1
                if abs(ki) * rate >= h or abs(kj) * rate >= w:
                    continue
                taps.append((ki, kj))
        plan.append(tuple(taps))
    return tuple(plan)


# --------------------------------------------------------------------------
# Fused kernel: MHA (per SMA-batch item) + Modulator, one grid step per item
# --------------------------------------------------------------------------
def _sma_kernel(q_ref, k_ref, v_ref, abias_ref,
                wq_ref, wk_ref, wvo_ref, bq_ref, bk_ref, bout_ref,
                w_pa_ref, pa_scale_ref, pa_shift_ref,
                ca_w1_ref, ca_w2_ref,
                grp_ref, tap_mask_ref,
                sa_w_ref, sa_b_ref, sa_scale_ref, sa_shift_ref,
                sa_wout_ref, sa_bout_ref,
                w_oc_ref, b_oc_ref, norm_scale_ref, norm_shift_ref,
                mbias_ref, lscale_ref,
                o_ref, *, num_heads, gamma1, gamma2, gamma3, kplan):
    hw, c = o_ref.shape[1], o_ref.shape[2]
    e = wq_ref.shape[0]
    d = e // num_heads

    # ------------------- fused nn.MultiheadAttention ----------------------
    xq = q_ref[0]                      # (HW, E): query rows of this item
    xk = k_ref[...]                    # (L*N, E): full keys
    xv = v_ref[...]                    # (L*N, E): full values

    # merged E-wide projections (attention 1/sqrt(d) folded into wq/bq)
    qp = jnp.dot(xq, wq_ref[...], preferred_element_type=F32) + bq_ref[...]
    kp = jnp.dot(xk, wk_ref[...], preferred_element_type=F32) + bk_ref[...]
    # V projection with the per-head output projection folded in at init:
    # vo[:, h*E:(h+1)*E] == (xv @ Wv_h) @ Wo_h  -> one lane-dense (E,4E) matmul
    vo = jnp.dot(xv, wvo_ref[...], preferred_element_type=F32)   # (L*N, H*E)

    abias = abias_ref[...]             # (HW, L*N) additive mask (0 / -1e30)
    x = jnp.zeros((hw, e), F32)
    for h_ in range(num_heads):        # static unroll over heads
        qh = qp[:, h_ * d:(h_ + 1) * d]
        kh = kp[:, h_ * d:(h_ + 1) * d]
        s = lax.dot_general(qh, kh, (((1,), (1,)), ((), ())),
                            preferred_element_type=F32) + abias
        m = jnp.max(s, axis=-1, keepdims=True)
        ex = jnp.exp(s - m)
        p_att = ex * pl.reciprocal(jnp.sum(ex, axis=-1, keepdims=True),
                                   approx=True)
        x = x + jnp.dot(p_att, vo[:, h_ * e:(h_ + 1) * e],
                        preferred_element_type=F32)
    x = x + bout_ref[...]              # out-proj bias (+ folded v-proj bias)
    # x is now the Modulator input for this SMA batch item, (HW, C) rows.

    # ------------------- PA(x) = x * sigmoid(BN(Conv1x1(x))) --------------
    attn = jnp.dot(x, w_pa_ref[...], preferred_element_type=F32)
    attn = attn * pa_scale_ref[...] + pa_shift_ref[...]
    pa = x * _sigmoid(attn)

    # ------------------- CA(x) = x * sigmoid(W2 relu(W1 avgpool(x))) ------
    y = jnp.mean(x, axis=0, keepdims=True)                        # (1, C)
    y = jnp.maximum(jnp.dot(y, ca_w1_ref[...], preferred_element_type=F32), 0.0)
    y = _sigmoid(jnp.dot(y, ca_w2_ref[...], preferred_element_type=F32))
    ca = x * y

    # ------------------- softmax over the image-width axis ----------------
    z = gamma1 * pa + gamma2 * ca
    m = jnp.max(z, axis=0, keepdims=True)          # per-channel stable shift
    ez = jnp.exp(z - m)
    # grp is the precomputed same-image-row indicator: denom = row-group sums
    denom = jnp.dot(grp_ref[...], ez, preferred_element_type=F32)  # (HW, C)
    pa_ca = ez * pl.reciprocal(denom, approx=True)

    # ------------------- SA: pruned dilated 3x3 convs ---------------------
    sa_acc = jnp.zeros((hw, c), F32)
    t = 0
    for r_idx, taps in enumerate(kplan):
        conv = jnp.zeros((hw, c), F32)
        for shift, mslot in taps:
            if shift == 0:
                tap = x
            else:
                # roll goes to the XLU; validity mask is a precomputed constant
                tap = pltpu.roll(x, shift=shift, axis=0) * tap_mask_ref[mslot]
            conv = conv + jnp.dot(tap, sa_w_ref[t], preferred_element_type=F32)
            t += 1
        conv = conv + sa_b_ref[r_idx]
        blk = jnp.maximum(conv, 0.0)               # Conv -> ReLU -> BN order
        blk = blk * sa_scale_ref[r_idx] + sa_shift_ref[r_idx]
        sa_acc = sa_acc + jnp.dot(blk, sa_wout_ref[r_idx],
                                  preferred_element_type=F32)
    sa_out = sa_acc + sa_bout_ref[...]

    # ------------------- out conv + norm + bias + residual ----------------
    out = pa_ca + gamma3 * sa_out
    out = jnp.dot(out, w_oc_ref[...], preferred_element_type=F32) + b_oc_ref[...]
    out = out * norm_scale_ref[...] + norm_shift_ref[...]
    out = out + mbias_ref[...]
    res = lscale_ref[...] * (x * norm_scale_ref[...] + norm_shift_ref[...])
    o_ref[0] = out + res


# --------------------------------------------------------------------------
# Parameter init (structure matches the PyTorch module, eval-mode BN stats)
# --------------------------------------------------------------------------
def bn_eval_scale_shift(c):
    gamma = jnp.ones((c,), F32)
    beta = jnp.zeros((c,), F32)
    mean = jnp.zeros((c,), F32)
    var = jnp.ones((c,), F32)
    scale = gamma / jnp.sqrt(var + BN_EPS)
    shift = beta - mean * scale
    return scale.reshape(1, c), shift.reshape(1, c)


def init_sma_params(key, feature_size, num_heads, h, w):
    e = feature_size
    c = feature_size
    d = e // num_heads
    ks = jax.random.split(key, 12)

    def nrm(k, shape, std):
        return std * jax.random.normal(k, shape, dtype=F32)

    p = {}
    # ---- nn.MultiheadAttention(E, num_heads) ----
    scale = 1.0 / math.sqrt(d)
    in_proj_w = nrm(ks[0], (3 * e, e), 1.0 / math.sqrt(e))
    in_proj_b = jnp.zeros((3 * e,), F32)           # torch init: zeros
    out_proj_w = nrm(ks[1], (e, e), 1.0 / math.sqrt(e))
    out_proj_b = jnp.zeros((e,), F32)              # torch init: zeros

    wq = in_proj_w[:e].T * scale                   # 1/sqrt(d) folded in
    wk = in_proj_w[e:2 * e].T
    wv = in_proj_w[2 * e:].T
    wo = out_proj_w.T                              # out = concat_heads @ wo + bo
    p["wq"], p["wk"] = wq, wk
    p["bq"] = (in_proj_b[:e] * scale).reshape(1, e)
    p["bk"] = in_proj_b[e:2 * e].reshape(1, e)
    # Fold the per-head slice of the output projection into the V projection:
    # wvo[:, h*E:(h+1)*E] = Wv_h @ Wo_h, so softmax_h @ (xv @ wvo_h) is head
    # h's already-out-projected contribution (no narrow head-concat needed).
    wvo_blocks = [wv[:, i * d:(i + 1) * d] @ wo[i * d:(i + 1) * d, :]
                  for i in range(num_heads)]
    p["wvo"] = jnp.concatenate(wvo_blocks, axis=1)            # (E, H*E)
    bv = in_proj_b[2 * e:]
    # softmax rows sum to 1 -> the (zero-initialized) v-proj bias contributes
    # a constant row through Wo; fold it together with the out-proj bias.
    bvo = sum(bv[i * d:(i + 1) * d] @ wo[i * d:(i + 1) * d, :]
              for i in range(num_heads))
    p["b_out"] = (out_proj_b + bvo).reshape(1, e)

    # ---- Modulator(in_ch=C, out_ch=C) ----
    pa_conv_w = nrm(ks[2], (c, c, 1, 1), math.sqrt(2.0 / c))
    p["w_pa"] = pa_conv_w.reshape(c, c).T
    p["pa_scale"], p["pa_shift"] = bn_eval_scale_shift(c)     # PA_bn

    ca_w1 = nrm(ks[3], (c // 16, c), math.sqrt(2.0 / max(c // 16, 1)))
    ca_w2 = nrm(ks[4], (c, c // 16), math.sqrt(2.0 / c))
    p["ca_w1t"] = ca_w1.T                                     # (C, C//16)
    p["ca_w2t"] = ca_w2.T                                     # (C//16, C)

    # SA: pack only the taps that survive zero-padding pruning at this H, W
    plan = _surviving_taps(h, w)
    sa_w_taps, sa_bs, sa_scales, sa_shifts = [], [], [], []
    for i, (rate, taps) in enumerate(zip(RATES, plan)):
        wconv = nrm(ks[5 + i], (c, c, 3, 3), math.sqrt(2.0 / (c * 9)))
        for ki, kj in taps:
            sa_w_taps.append(wconv[:, :, ki + 1, kj + 1].T)   # (C_in, C_out)
        sa_bs.append(jnp.zeros((1, c), F32))                  # conv bias = 0
        sc, sh = bn_eval_scale_shift(c)
        sa_scales.append(sc)
        sa_shifts.append(sh)
    p["sa_w"] = jnp.stack(sa_w_taps, axis=0)                  # (n_taps, C, C)
    p["sa_b"] = jnp.stack(sa_bs)                              # (4, 1, C)
    p["sa_bn_scale"] = jnp.stack(sa_scales)
    p["sa_bn_shift"] = jnp.stack(sa_shifts)

    sa_out_w = nrm(ks[9], (c, 4 * c, 1, 1), math.sqrt(2.0 / c))[:, :, 0, 0]
    p["sa_wout"] = jnp.stack([sa_out_w[:, i * c:(i + 1) * c].T
                              for i in range(4)], axis=0)     # (4, C, C)
    p["sa_bout"] = jnp.zeros((1, c), F32)

    out_conv_w = nrm(ks[10], (c, c, 1, 1), math.sqrt(2.0 / c))
    p["w_oc"] = out_conv_w.reshape(c, c).T
    p["b_oc"] = jnp.zeros((1, c), F32)
    p["norm_scale"], p["norm_shift"] = bn_eval_scale_shift(c)  # self.norm

    p["bias"] = jnp.zeros((1, c), F32)                 # nn.Parameter zeros
    p["layer_scale"] = 0.1 * jnp.ones((1, c), F32)     # nn.Parameter ones*0.1
    gammas = (0.1, 0.1, 0.1)                           # gamma1, gamma2, gamma3
    return p, gammas


# --------------------------------------------------------------------------
# Forward pass
# --------------------------------------------------------------------------
def sma_forward(p, gammas, value, key_in, query, num_heads):
    l, n, e = query.shape
    h = w = int(round(math.sqrt(n)))
    assert h * w == n, "seq_len (N) must be a perfect square"
    hw, c = n, e
    g1, g2, g3 = gammas

    k2 = key_in.reshape(l * n, e)
    v2 = value.reshape(l * n, e)

    # ---- trace-time constants (hoisted out of the per-step VALU path) ----
    # additive attention mask: query row n only attends key rows with the same
    # MHA batch index n (K/V rows are the (L, N) pairs flattened row-major)
    col_b = np.arange(l * n, dtype=np.int32) % n
    abias = np.where(col_b[None, :] == np.arange(n, dtype=np.int32)[:, None],
                     0.0, -1e30).astype(np.float32)             # (N, L*N)
    # same-image-row indicator used for the width-axis softmax denominator
    rows = np.arange(hw, dtype=np.int32) // w
    grp = (rows[:, None] == rows[None, :]).astype(np.float32)   # (HW, HW)
    # per-tap roll shifts + validity masks for the surviving dilated-conv taps
    plan = _surviving_taps(h, w)
    yy, xx = np.arange(hw) // w, np.arange(hw) % w
    kplan, masks = [], []
    for rate, taps in zip(RATES, plan):
        kt = []
        for ki, kj in taps:
            off = ki * rate * w + kj * rate
            if off == 0:
                kt.append((0, -1))
            else:
                valid = ((yy + ki * rate >= 0) & (yy + ki * rate < h) &
                         (xx + kj * rate >= 0) & (xx + kj * rate < w))
                masks.append(valid.astype(np.float32).reshape(hw, 1))
                kt.append((int((-off) % hw), len(masks) - 1))
        kplan.append(tuple(kt))
    kplan = tuple(kplan)
    tap_masks = (np.stack(masks, axis=0) if masks
                 else np.zeros((1, hw, 1), np.float32))
    n_taps = sum(len(t) for t in plan)
    n_masks = tap_masks.shape[0]
    c16 = p["ca_w1t"].shape[1]

    def c0(shape):
        zeros = (0,) * len(shape)
        return pl.BlockSpec(shape, lambda b: zeros)

    in_specs = [
        pl.BlockSpec((1, n, e), lambda b: (b, 0, 0)),    # query rows of item b
        c0((l * n, e)),                                  # K (full)
        c0((l * n, e)),                                  # V (full)
        c0((n, l * n)),                                  # attention mask
        c0((e, e)), c0((e, e)), c0((e, num_heads * e)),  # wq, wk, wvo
        c0((1, e)), c0((1, e)), c0((1, e)),              # bq, bk, b_out
        c0((c, c)), c0((1, c)), c0((1, c)),              # PA conv / bn
        c0((c, c16)), c0((c16, c)),                      # CA fc1 / fc2
        c0((hw, hw)), c0((n_masks, hw, 1)),              # grp, tap masks
        c0((n_taps, c, c)),                              # SA tap weights
        c0((4, 1, c)), c0((4, 1, c)), c0((4, 1, c)),     # SA bias / bn
        c0((4, c, c)), c0((1, c)),                       # SA out conv
        c0((c, c)), c0((1, c)),                          # output_conv
        c0((1, c)), c0((1, c)),                          # norm scale / shift
        c0((1, c)), c0((1, c)),                          # bias, layer_scale
    ]
    out_specs = pl.BlockSpec((1, hw, c), lambda b: (b, 0, 0))

    fn = pl.pallas_call(
        partial(_sma_kernel, num_heads=num_heads,
                gamma1=g1, gamma2=g2, gamma3=g3, kplan=kplan),
        grid=(l,),
        in_specs=in_specs,
        out_specs=out_specs,
        out_shape=jax.ShapeDtypeStruct((l, hw, c), F32),
        compiler_params=pltpu.CompilerParams(
            dimension_semantics=("parallel",)),
    )
    return fn(query, k2, v2, jnp.asarray(abias),
              p["wq"], p["wk"], p["wvo"], p["bq"], p["bk"], p["b_out"],
              p["w_pa"], p["pa_scale"], p["pa_shift"],
              p["ca_w1t"], p["ca_w2t"],
              jnp.asarray(grp), jnp.asarray(tap_masks),
              p["sa_w"], p["sa_b"], p["sa_bn_scale"], p["sa_bn_shift"],
              p["sa_wout"], p["sa_bout"],
              p["w_oc"], p["b_oc"], p["norm_scale"], p["norm_shift"],
              p["bias"], p["layer_scale"])


# --------------------------------------------------------------------------
if __name__ == "__main__":
    feature_size, num_heads, dropout = 32, 4, 0.0   # eval mode -> dropout off
    L, N = 2, 16   # MHA output (L, N, E) is reinterpreted by SMA as
                   # (batch=2, seq=16 -> 4x4 spatial, feature=32)
    H = W = int(round(math.sqrt(N)))
    root = jax.random.PRNGKey(0)
    kp, kq, kk, kv = jax.random.split(root, 4)
    params, gammas = init_sma_params(kp, feature_size, num_heads, H, W)
    query = jax.random.normal(kq, (L, N, feature_size), F32)
    key_in = jax.random.normal(kk, (L, N, feature_size), F32)
    value = jax.random.normal(kv, (L, N, feature_size), F32)

    out = sma_forward(params, gammas, value, key_in, query, num_heads)
    out = jax.block_until_ready(out)
    assert out.shape == (L, N, feature_size)
    assert bool(jnp.all(jnp.isfinite(out)))
    print("KERNEL_OK")
</pallas_src>

<mosaic_0001>
module attributes {stable_mosaic.version = 11 : i64} {
  func.func @_sma_kernel(%arg0: i32, %arg1: memref<1x16x32xf32, #tpu.memory_space<vmem>>, %arg2: memref<32x32xf32, #tpu.memory_space<vmem>>, %arg3: memref<32x32xf32, #tpu.memory_space<vmem>>, %arg4: memref<16x32xf32, #tpu.memory_space<vmem>>, %arg5: memref<32x32xf32, #tpu.memory_space<vmem>>, %arg6: memref<32x32xf32, #tpu.memory_space<vmem>>, %arg7: memref<32x128xf32, #tpu.memory_space<vmem>>, %arg8: memref<1x32xf32, #tpu.memory_space<vmem>>, %arg9: memref<1x32xf32, #tpu.memory_space<vmem>>, %arg10: memref<1x32xf32, #tpu.memory_space<vmem>>, %arg11: memref<32x32xf32, #tpu.memory_space<vmem>>, %arg12: memref<1x32xf32, #tpu.memory_space<vmem>>, %arg13: memref<1x32xf32, #tpu.memory_space<vmem>>, %arg14: memref<32x2xf32, #tpu.memory_space<vmem>>, %arg15: memref<2x32xf32, #tpu.memory_space<vmem>>, %arg16: memref<16x16xf32, #tpu.memory_space<vmem>>, %arg17: memref<8x16x1xf32, #tpu.memory_space<vmem>>, %arg18: memref<12x32x32xf32, #tpu.memory_space<vmem>>, %arg19: memref<4x1x32xf32, #tpu.memory_space<vmem>>, %arg20: memref<4x1x32xf32, #tpu.memory_space<vmem>>, %arg21: memref<4x1x32xf32, #tpu.memory_space<vmem>>, %arg22: memref<4x32x32xf32, #tpu.memory_space<vmem>>, %arg23: memref<1x32xf32, #tpu.memory_space<vmem>>, %arg24: memref<32x32xf32, #tpu.memory_space<vmem>>, %arg25: memref<1x32xf32, #tpu.memory_space<vmem>>, %arg26: memref<1x32xf32, #tpu.memory_space<vmem>>, %arg27: memref<1x32xf32, #tpu.memory_space<vmem>>, %arg28: memref<1x32xf32, #tpu.memory_space<vmem>>, %arg29: memref<1x32xf32, #tpu.memory_space<vmem>>, %arg30: memref<1x16x32xf32, #tpu.memory_space<vmem>>) attributes {dimension_semantics = [#tpu.dimension_semantics<parallel>], iteration_bounds = array<i64: 2>, scalar_prefetch = 0 : i64, scratch_operands = 0 : i64, tpu.core_type = #tpu.core_type<tc>, window_params = [{transform_indices = @transform_0, window_bounds = array<i64: 1, 16, 32>}, {pipeline_mode = #tpu.pipeline_mode<synchronous>, transform_indices = @transform_1, window_bounds = array<i64: 32, 32>}, {pipeline_mode = #tpu.pipeline_mode<synchronous>, transform_indices = @transform_2, window_bounds = array<i64: 32, 32>}, {pipeline_mode = #tpu.pipeline_mode<synchronous>, transform_indices = @transform_3, window_bounds = array<i64: 16, 32>}, {pipeline_mode = #tpu.pipeline_mode<synchronous>, transform_indices = @transform_4, window_bounds = array<i64: 32, 32>}, {pipeline_mode = #tpu.pipeline_mode<synchronous>, transform_indices = @transform_5, window_bounds = array<i64: 32, 32>}, {pipeline_mode = #tpu.pipeline_mode<synchronous>, transform_indices = @transform_6, window_bounds = array<i64: 32, 128>}, {pipeline_mode = #tpu.pipeline_mode<synchronous>, transform_indices = @transform_7, window_bounds = array<i64: 1, 32>}, {pipeline_mode = #tpu.pipeline_mode<synchronous>, transform_indices = @transform_8, window_bounds = array<i64: 1, 32>}, {pipeline_mode = #tpu.pipeline_mode<synchronous>, transform_indices = @transform_9, window_bounds = array<i64: 1, 32>}, {pipeline_mode = #tpu.pipeline_mode<synchronous>, transform_indices = @transform_10, window_bounds = array<i64: 32, 32>}, {pipeline_mode = #tpu.pipeline_mode<synchronous>, transform_indices = @transform_11, window_bounds = array<i64: 1, 32>}, {pipeline_mode = #tpu.pipeline_mode<synchronous>, transform_indices = @transform_12, window_bounds = array<i64: 1, 32>}, {pipeline_mode = #tpu.pipeline_mode<synchronous>, transform_indices = @transform_13, window_bounds = array<i64: 32, 2>}, {pipeline_mode = #tpu.pipeline_mode<synchronous>, transform_indices = @transform_14, window_bounds = array<i64: 2, 32>}, {pipeline_mode = #tpu.pipeline_mode<synchronous>, transform_indices = @transform_15, window_bounds = array<i64: 16, 16>}, {pipeline_mode = #tpu.pipeline_mode<synchronous>, transform_indices = @transform_16, window_bounds = array<i64: 8, 16, 1>}, {pipeline_mode = #tpu.pipeline_mode<synchronous>, transform_indices = @transform_17, window_bounds = array<i64: 12, 32, 32>}, {pipeline_mode = #tpu.pipeline_mode<synchronous>, transform_indices = @transform_18, window_bounds = array<i64: 4, 1, 32>}, {pipeline_mode = #tpu.pipeline_mode<synchronous>, transform_indices = @transform_19, window_bounds = array<i64: 4, 1, 32>}, {pipeline_mode = #tpu.pipeline_mode<synchronous>, transform_indices = @transform_20, window_bounds = array<i64: 4, 1, 32>}, {pipeline_mode = #tpu.pipeline_mode<synchronous>, transform_indices = @transform_21, window_bounds = array<i64: 4, 32, 32>}, {pipeline_mode = #tpu.pipeline_mode<synchronous>, transform_indices = @transform_22, window_bounds = array<i64: 1, 32>}, {pipeline_mode = #tpu.pipeline_mode<synchronous>, transform_indices = @transform_23, window_bounds = array<i64: 32, 32>}, {pipeline_mode = #tpu.pipeline_mode<synchronous>, transform_indices = @transform_24, window_bounds = array<i64: 1, 32>}, {pipeline_mode = #tpu.pipeline_mode<synchronous>, transform_indices = @transform_25, window_bounds = array<i64: 1, 32>}, {pipeline_mode = #tpu.pipeline_mode<synchronous>, transform_indices = @transform_26, window_bounds = array<i64: 1, 32>}, {pipeline_mode = #tpu.pipeline_mode<synchronous>, transform_indices = @transform_27, window_bounds = array<i64: 1, 32>}, {pipeline_mode = #tpu.pipeline_mode<synchronous>, transform_indices = @transform_28, window_bounds = array<i64: 1, 32>}, {transform_indices = @transform_29, window_bounds = array<i64: 1, 16, 32>}]} {
    %c0 = arith.constant 0 : index
    %c0_0 = arith.constant 0 : index
    %c0_1 = arith.constant 0 : index
    %0 = vector.load %arg1[%c0, %c0_0, %c0_1] : memref<1x16x32xf32, #tpu.memory_space<vmem>>, vector<1x16x32xf32>
    %1 = vector.shape_cast %0 : vector<1x16x32xf32> to vector<16x32xf32>
    %c0_2 = arith.constant 0 : index
    %c0_3 = arith.constant 0 : index
    %2 = vector.load %arg2[%c0_2, %c0_3] : memref<32x32xf32, #tpu.memory_space<vmem>>, vector<32x32xf32>
    %c0_4 = arith.constant 0 : index
    %c0_5 = arith.constant 0 : index
    %3 = vector.load %arg3[%c0_4, %c0_5] : memref<32x32xf32, #tpu.memory_space<vmem>>, vector<32x32xf32>
    %c0_6 = arith.constant 0 : index
    %c0_7 = arith.constant 0 : index
    %4 = vector.load %arg5[%c0_6, %c0_7] : memref<32x32xf32, #tpu.memory_space<vmem>>, vector<32x32xf32>
    %cst = arith.constant dense<0.000000e+00> : vector<16x32xf32>
    %5 = tpu.matmul %1, %4, %cst {dimension_numbers = #tpu.dot_dimension_numbers<[1], [0], [0], [1], [0, 0, 1, 1], [], []>} : vector<16x32xf32>, vector<32x32xf32>, vector<16x32xf32> -> vector<16x32xf32>
    %c0_8 = arith.constant 0 : index
    %c0_9 = arith.constant 0 : index
    %6 = vector.load %arg8[%c0_8, %c0_9] : memref<1x32xf32, #tpu.memory_space<vmem>>, vector<1x32xf32>
    %7 = vector.broadcast %6 : vector<1x32xf32> to vector<16x32xf32>
    %8 = arith.addf %5, %7 : vector<16x32xf32>
    %c0_10 = arith.constant 0 : index
    %c0_11 = arith.constant 0 : index
    %9 = vector.load %arg6[%c0_10, %c0_11] : memref<32x32xf32, #tpu.memory_space<vmem>>, vector<32x32xf32>
    %cst_12 = arith.constant dense<0.000000e+00> : vector<32x32xf32>
    %10 = tpu.matmul %2, %9, %cst_12 {dimension_numbers = #tpu.dot_dimension_numbers<[1], [0], [0], [1], [0, 0, 1, 1], [], []>} : vector<32x32xf32>, vector<32x32xf32>, vector<32x32xf32> -> vector<32x32xf32>
    %c0_13 = arith.constant 0 : index
    %c0_14 = arith.constant 0 : index
    %11 = vector.load %arg9[%c0_13, %c0_14] : memref<1x32xf32, #tpu.memory_space<vmem>>, vector<1x32xf32>
    %12 = vector.broadcast %11 : vector<1x32xf32> to vector<32x32xf32>
    %13 = arith.addf %10, %12 : vector<32x32xf32>
    %c0_15 = arith.constant 0 : index
    %c0_16 = arith.constant 0 : index
    %14 = vector.load %arg7[%c0_15, %c0_16] : memref<32x128xf32, #tpu.memory_space<vmem>>, vector<32x128xf32>
    %cst_17 = arith.constant dense<0.000000e+00> : vector<32x128xf32>
    %15 = tpu.matmul %3, %14, %cst_17 {dimension_numbers = #tpu.dot_dimension_numbers<[1], [0], [0], [1], [0, 0, 1, 1], [], []>} : vector<32x32xf32>, vector<32x128xf32>, vector<32x128xf32> -> vector<32x128xf32>
    %c0_18 = arith.constant 0 : index
    %c0_19 = arith.constant 0 : index
    %16 = vector.load %arg4[%c0_18, %c0_19] : memref<16x32xf32, #tpu.memory_space<vmem>>, vector<16x32xf32>
    %cst_20 = arith.constant 0.000000e+00 : f32
    %17 = vector.broadcast %cst_20 : f32 to vector<16x32xf32>
    %18 = vector.extract_strided_slice %8 {offsets = [0, 0], sizes = [16, 8], strides = [1, 1]} : vector<16x32xf32> to vector<16x8xf32>
    %19 = vector.extract_strided_slice %13 {offsets = [0, 0], sizes = [32, 8], strides = [1, 1]} : vector<32x32xf32> to vector<32x8xf32>
    %cst_21 = arith.constant dense<0.000000e+00> : vector<16x32xf32>
    %20 = tpu.matmul %18, %19, %cst_21 {dimension_numbers = #tpu.dot_dimension_numbers<[1], [1], [0], [0], [0, 0, 1, 0], [], []>} : vector<16x8xf32>, vector<32x8xf32>, vector<16x32xf32> -> vector<16x32xf32>
    %21 = arith.addf %20, %16 : vector<16x32xf32>
    %cst_22 = arith.constant dense<0xFF800000> : vector<16xf32>
    %22 = vector.multi_reduction <maximumf>, %21, %cst_22 [1] : vector<16x32xf32> to vector<16xf32>
    %23 = vector.shape_cast %22 : vector<16xf32> to vector<16x1xf32>
    %24 = vector.broadcast %23 : vector<16x1xf32> to vector<16x32xf32>
    %25 = arith.subf %21, %24 : vector<16x32xf32>
    %26 = math.exp %25 : vector<16x32xf32>
    %cst_23 = arith.constant dense<0.000000e+00> : vector<16xf32>
    %27 = vector.multi_reduction <add>, %26, %cst_23 [1] : vector<16x32xf32> to vector<16xf32>
    %28 = vector.shape_cast %27 : vector<16xf32> to vector<16x1xf32>
    %29 = tpu.reciprocal %28 {approx = true} : vector<16x1xf32> -> vector<16x1xf32>
    %30 = vector.broadcast %29 : vector<16x1xf32> to vector<16x32xf32>
    %31 = arith.mulf %26, %30 : vector<16x32xf32>
    %32 = vector.extract_strided_slice %15 {offsets = [0, 0], sizes = [32, 32], strides = [1, 1]} : vector<32x128xf32> to vector<32x32xf32>
    %cst_24 = arith.constant dense<0.000000e+00> : vector<16x32xf32>
    %33 = tpu.matmul %31, %32, %cst_24 {dimension_numbers = #tpu.dot_dimension_numbers<[1], [0], [0], [1], [0, 0, 1, 1], [], []>} : vector<16x32xf32>, vector<32x32xf32>, vector<16x32xf32> -> vector<16x32xf32>
    %34 = arith.addf %17, %33 : vector<16x32xf32>
    %35 = vector.extract_strided_slice %8 {offsets = [0, 8], sizes = [16, 8], strides = [1, 1]} : vector<16x32xf32> to vector<16x8xf32>
    %36 = vector.extract_strided_slice %13 {offsets = [0, 8], sizes = [32, 8], strides = [1, 1]} : vector<32x32xf32> to vector<32x8xf32>
    %cst_25 = arith.constant dense<0.000000e+00> : vector<16x32xf32>
    %37 = tpu.matmul %35, %36, %cst_25 {dimension_numbers = #tpu.dot_dimension_numbers<[1], [1], [0], [0], [0, 0, 1, 0], [], []>} : vector<16x8xf32>, vector<32x8xf32>, vector<16x32xf32> -> vector<16x32xf32>
    %38 = arith.addf %37, %16 : vector<16x32xf32>
    %cst_26 = arith.constant dense<0xFF800000> : vector<16xf32>
    %39 = vector.multi_reduction <maximumf>, %38, %cst_26 [1] : vector<16x32xf32> to vector<16xf32>
    %40 = vector.shape_cast %39 : vector<16xf32> to vector<16x1xf32>
    %41 = vector.broadcast %40 : vector<16x1xf32> to vector<16x32xf32>
    %42 = arith.subf %38, %41 : vector<16x32xf32>
    %43 = math.exp %42 : vector<16x32xf32>
    %cst_27 = arith.constant dense<0.000000e+00> : vector<16xf32>
    %44 = vector.multi_reduction <add>, %43, %cst_27 [1] : vector<16x32xf32> to vector<16xf32>
    %45 = vector.shape_cast %44 : vector<16xf32> to vector<16x1xf32>
    %46 = tpu.reciprocal %45 {approx = true} : vector<16x1xf32> -> vector<16x1xf32>
    %47 = vector.broadcast %46 : vector<16x1xf32> to vector<16x32xf32>
    %48 = arith.mulf %43, %47 : vector<16x32xf32>
    %49 = vector.extract_strided_slice %15 {offsets = [0, 32], sizes = [32, 32], strides = [1, 1]} : vector<32x128xf32> to vector<32x32xf32>
    %cst_28 = arith.constant dense<0.000000e+00> : vector<16x32xf32>
    %50 = tpu.matmul %48, %49, %cst_28 {dimension_numbers = #tpu.dot_dimension_numbers<[1], [0], [0], [1], [0, 0, 1, 1], [], []>} : vector<16x32xf32>, vector<32x32xf32>, vector<16x32xf32> -> vector<16x32xf32>
    %51 = arith.addf %34, %50 : vector<16x32xf32>
    %52 = vector.extract_strided_slice %8 {offsets = [0, 16], sizes = [16, 8], strides = [1, 1]} : vector<16x32xf32> to vector<16x8xf32>
    %53 = vector.extract_strided_slice %13 {offsets = [0, 16], sizes = [32, 8], strides = [1, 1]} : vector<32x32xf32> to vector<32x8xf32>
    %cst_29 = arith.constant dense<0.000000e+00> : vector<16x32xf32>
    %54 = tpu.matmul %52, %53, %cst_29 {dimension_numbers = #tpu.dot_dimension_numbers<[1], [1], [0], [0], [0, 0, 1, 0], [], []>} : vector<16x8xf32>, vector<32x8xf32>, vector<16x32xf32> -> vector<16x32xf32>
    %55 = arith.addf %54, %16 : vector<16x32xf32>
    %cst_30 = arith.constant dense<0xFF800000> : vector<16xf32>
    %56 = vector.multi_reduction <maximumf>, %55, %cst_30 [1] : vector<16x32xf32> to vector<16xf32>
    %57 = vector.shape_cast %56 : vector<16xf32> to vector<16x1xf32>
    %58 = vector.broadcast %57 : vector<16x1xf32> to vector<16x32xf32>
    %59 = arith.subf %55, %58 : vector<16x32xf32>
    %60 = math.exp %59 : vector<16x32xf32>
    %cst_31 = arith.constant dense<0.000000e+00> : vector<16xf32>
    %61 = vector.multi_reduction <add>, %60, %cst_31 [1] : vector<16x32xf32> to vector<16xf32>
    %62 = vector.shape_cast %61 : vector<16xf32> to vector<16x1xf32>
    %63 = tpu.reciprocal %62 {approx = true} : vector<16x1xf32> -> vector<16x1xf32>
    %64 = vector.broadcast %63 : vector<16x1xf32> to vector<16x32xf32>
    %65 = arith.mulf %60, %64 : vector<16x32xf32>
    %66 = vector.extract_strided_slice %15 {offsets = [0, 64], sizes = [32, 32], strides = [1, 1]} : vector<32x128xf32> to vector<32x32xf32>
    %cst_32 = arith.constant dense<0.000000e+00> : vector<16x32xf32>
    %67 = tpu.matmul %65, %66, %cst_32 {dimension_numbers = #tpu.dot_dimension_numbers<[1], [0], [0], [1], [0, 0, 1, 1], [], []>} : vector<16x32xf32>, vector<32x32xf32>, vector<16x32xf32> -> vector<16x32xf32>
    %68 = arith.addf %51, %67 : vector<16x32xf32>
    %69 = vector.extract_strided_slice %8 {offsets = [0, 24], sizes = [16, 8], strides = [1, 1]} : vector<16x32xf32> to vector<16x8xf32>
    %70 = vector.extract_strided_slice %13 {offsets = [0, 24], sizes = [32, 8], strides = [1, 1]} : vector<32x32xf32> to vector<32x8xf32>
    %cst_33 = arith.constant dense<0.000000e+00> : vector<16x32xf32>
    %71 = tpu.matmul %69, %70, %cst_33 {dimension_numbers = #tpu.dot_dimension_numbers<[1], [1], [0], [0], [0, 0, 1, 0], [], []>} : vector<16x8xf32>, vector<32x8xf32>, vector<16x32xf32> -> vector<16x32xf32>
    %72 = arith.addf %71, %16 : vector<16x32xf32>
    %cst_34 = arith.constant dense<0xFF800000> : vector<16xf32>
    %73 = vector.multi_reduction <maximumf>, %72, %cst_34 [1] : vector<16x32xf32> to vector<16xf32>
    %74 = vector.shape_cast %73 : vector<16xf32> to vector<16x1xf32>
    %75 = vector.broadcast %74 : vector<16x1xf32> to vector<16x32xf32>
    %76 = arith.subf %72, %75 : vector<16x32xf32>
    %77 = math.exp %76 : vector<16x32xf32>
    %cst_35 = arith.constant dense<0.000000e+00> : vector<16xf32>
    %78 = vector.multi_reduction <add>, %77, %cst_35 [1] : vector<16x32xf32> to vector<16xf32>
    %79 = vector.shape_cast %78 : vector<16xf32> to vector<16x1xf32>
    %80 = tpu.reciprocal %79 {approx = true} : vector<16x1xf32> -> vector<16x1xf32>
    %81 = vector.broadcast %80 : vector<16x1xf32> to vector<16x32xf32>
    %82 = arith.mulf %77, %81 : vector<16x32xf32>
    %83 = vector.extract_strided_slice %15 {offsets = [0, 96], sizes = [32, 32], strides = [1, 1]} : vector<32x128xf32> to vector<32x32xf32>
    %cst_36 = arith.constant dense<0.000000e+00> : vector<16x32xf32>
    %84 = tpu.matmul %82, %83, %cst_36 {dimension_numbers = #tpu.dot_dimension_numbers<[1], [0], [0], [1], [0, 0, 1, 1], [], []>} : vector<16x32xf32>, vector<32x32xf32>, vector<16x32xf32> -> vector<16x32xf32>
    %85 = arith.addf %68, %84 : vector<16x32xf32>
    %c0_37 = arith.constant 0 : index
    %c0_38 = arith.constant 0 : index
    %86 = vector.load %arg10[%c0_37, %c0_38] : memref<1x32xf32, #tpu.memory_space<vmem>>, vector<1x32xf32>
    %87 = vector.broadcast %86 : vector<1x32xf32> to vector<16x32xf32>
    %88 = arith.addf %85, %87 : vector<16x32xf32>
    %c0_39 = arith.constant 0 : index
    %c0_40 = arith.constant 0 : index
    %89 = vector.load %arg11[%c0_39, %c0_40] : memref<32x32xf32, #tpu.memory_space<vmem>>, vector<32x32xf32>
    %cst_41 = arith.constant dense<0.000000e+00> : vector<16x32xf32>
    %90 = tpu.matmul %88, %89, %cst_41 {dimension_numbers = #tpu.dot_dimension_numbers<[1], [0], [0], [1], [0, 0, 1, 1], [], []>} : vector<16x32xf32>, vector<32x32xf32>, vector<16x32xf32> -> vector<16x32xf32>
    %c0_42 = arith.constant 0 : index
    %c0_43 = arith.constant 0 : index
    %91 = vector.load %arg12[%c0_42, %c0_43] : memref<1x32xf32, #tpu.memory_space<vmem>>, vector<1x32xf32>
    %92 = vector.broadcast %91 : vector<1x32xf32> to vector<16x32xf32>
    %93 = arith.mulf %90, %92 : vector<16x32xf32>
    %c0_44 = arith.constant 0 : index
    %c0_45 = arith.constant 0 : index
    %94 = vector.load %arg13[%c0_44, %c0_45] : memref<1x32xf32, #tpu.memory_space<vmem>>, vector<1x32xf32>
    %95 = vector.broadcast %94 : vector<1x32xf32> to vector<16x32xf32>
    %96 = arith.addf %93, %95 : vector<16x32xf32>
    %cst_46 = arith.constant 0.000000e+00 : f32
    %97 = vector.broadcast %cst_46 : f32 to vector<16x32xf32>
    %98 = arith.subf %97, %96 : vector<16x32xf32>
    %99 = math.exp %98 : vector<16x32xf32>
    %cst_47 = arith.constant 1.000000e+00 : f32
    %100 = vector.broadcast %cst_47 : f32 to vector<16x32xf32>
    %101 = arith.addf %100, %99 : vector<16x32xf32>
    %102 = tpu.reciprocal %101 {approx = true} : vector<16x32xf32> -> vector<16x32xf32>
    %103 = arith.mulf %88, %102 : vector<16x32xf32>
    %cst_48 = arith.constant dense<0.000000e+00> : vector<32xf32>
    %104 = vector.multi_reduction <add>, %88, %cst_48 [0] : vector<16x32xf32> to vector<32xf32>
    %105 = vector.shape_cast %104 : vector<32xf32> to vector<1x32xf32>
    %cst_49 = arith.constant 1.600000e+01 : f32
    %106 = vector.broadcast %cst_49 : f32 to vector<1x32xf32>
    %107 = arith.divf %105, %106 : vector<1x32xf32>
    %c0_50 = arith.constant 0 : index
    %c0_51 = arith.constant 0 : index
    %108 = vector.load %arg14[%c0_50, %c0_51] : memref<32x2xf32, #tpu.memory_space<vmem>>, vector<32x2xf32>
    %cst_52 = arith.constant dense<0.000000e+00> : vector<1x2xf32>
    %109 = tpu.matmul %107, %108, %cst_52 {dimension_numbers = #tpu.dot_dimension_numbers<[1], [0], [0], [1], [0, 0, 1, 1], [], []>} : vector<1x32xf32>, vector<32x2xf32>, vector<1x2xf32> -> vector<1x2xf32>
    %cst_53 = arith.constant 0.000000e+00 : f32
    %110 = vector.broadcast %cst_53 : f32 to vector<1x2xf32>
    %111 = arith.maximumf %109, %110 : vector<1x2xf32>
    %c0_54 = arith.constant 0 : index
    %c0_55 = arith.constant 0 : index
    %112 = vector.load %arg15[%c0_54, %c0_55] : memref<2x32xf32, #tpu.memory_space<vmem>>, vector<2x32xf32>
    %cst_56 = arith.constant dense<0.000000e+00> : vector<1x32xf32>
    %113 = tpu.matmul %111, %112, %cst_56 {dimension_numbers = #tpu.dot_dimension_numbers<[1], [0], [0], [1], [0, 0, 1, 1], [], []>} : vector<1x2xf32>, vector<2x32xf32>, vector<1x32xf32> -> vector<1x32xf32>
    %cst_57 = arith.constant 0.000000e+00 : f32
    %114 = vector.broadcast %cst_57 : f32 to vector<1x32xf32>
    %115 = arith.subf %114, %113 : vector<1x32xf32>
    %116 = math.exp %115 : vector<1x32xf32>
    %cst_58 = arith.constant 1.000000e+00 : f32
    %117 = vector.broadcast %cst_58 : f32 to vector<1x32xf32>
    %118 = arith.addf %117, %116 : vector<1x32xf32>
    %119 = tpu.reciprocal %118 {approx = true} : vector<1x32xf32> -> vector<1x32xf32>
    %120 = vector.broadcast %119 : vector<1x32xf32> to vector<16x32xf32>
    %121 = arith.mulf %88, %120 : vector<16x32xf32>
    %cst_59 = arith.constant 1.000000e-01 : f32
    %122 = vector.broadcast %cst_59 : f32 to vector<16x32xf32>
    %123 = arith.mulf %122, %103 : vector<16x32xf32>
    %cst_60 = arith.constant 1.000000e-01 : f32
    %124 = vector.broadcast %cst_60 : f32 to vector<16x32xf32>
    %125 = arith.mulf %124, %121 : vector<16x32xf32>
    %126 = arith.addf %123, %125 : vector<16x32xf32>
    %cst_61 = arith.constant dense<0xFF800000> : vector<32xf32>
    %127 = vector.multi_reduction <maximumf>, %126, %cst_61 [0] : vector<16x32xf32> to vector<32xf32>
    %128 = vector.shape_cast %127 : vector<32xf32> to vector<1x32xf32>
    %129 = vector.broadcast %128 : vector<1x32xf32> to vector<16x32xf32>
    %130 = arith.subf %126, %129 : vector<16x32xf32>
    %131 = math.exp %130 : vector<16x32xf32>
    %c0_62 = arith.constant 0 : index
    %c0_63 = arith.constant 0 : index
    %132 = vector.load %arg16[%c0_62, %c0_63] : memref<16x16xf32, #tpu.memory_space<vmem>>, vector<16x16xf32>
    %cst_64 = arith.constant dense<0.000000e+00> : vector<16x32xf32>
    %133 = tpu.matmul %132, %131, %cst_64 {dimension_numbers = #tpu.dot_dimension_numbers<[1], [0], [0], [1], [0, 0, 1, 1], [], []>} : vector<16x16xf32>, vector<16x32xf32>, vector<16x32xf32> -> vector<16x32xf32>
    %134 = tpu.reciprocal %133 {approx = true} : vector<16x32xf32> -> vector<16x32xf32>
    %135 = arith.mulf %131, %134 : vector<16x32xf32>
    %cst_65 = arith.constant 0.000000e+00 : f32
    %136 = vector.broadcast %cst_65 : f32 to vector<16x32xf32>
    %cst_66 = arith.constant 0.000000e+00 : f32
    %137 = vector.broadcast %cst_66 : f32 to vector<16x32xf32>
    %c5_i32 = arith.constant 5 : i32
    %138 = tpu.dynamic_rotate %88 by %c5_i32 dim 0 : vector<16x32xf32>, i32 -> vector<16x32xf32>
    %c0_67 = arith.constant 0 : index
    %c0_68 = arith.constant 0 : index
    %c0_69 = arith.constant 0 : index
    %139 = vector.load %arg17[%c0_67, %c0_68, %c0_69] : memref<8x16x1xf32, #tpu.memory_space<vmem>>, vector<1x16x1xf32>
    %140 = vector.shape_cast %139 : vector<1x16x1xf32> to vector<16x1xf32>
    %141 = vector.broadcast %140 : vector<16x1xf32> to vector<16x32xf32>
    %142 = arith.mulf %138, %141 : vector<16x32xf32>
    %c0_70 = arith.constant 0 : index
    %c0_71 = arith.constant 0 : index
    %c0_72 = arith.constant 0 : index
    %143 = vector.load %arg18[%c0_70, %c0_71, %c0_72] : memref<12x32x32xf32, #tpu.memory_space<vmem>>, vector<1x32x32xf32>
    %144 = vector.shape_cast %143 : vector<1x32x32xf32> to vector<32x32xf32>
    %cst_73 = arith.constant dense<0.000000e+00> : vector<16x32xf32>
    %145 = tpu.matmul %142, %144, %cst_73 {dimension_numbers = #tpu.dot_dimension_numbers<[1], [0], [0], [1], [0, 0, 1, 1], [], []>} : vector<16x32xf32>, vector<32x32xf32>, vector<16x32xf32> -> vector<16x32xf32>
    %146 = arith.addf %137, %145 : vector<16x32xf32>
    %c4_i32 = arith.constant 4 : i32
    %147 = tpu.dynamic_rotate %88 by %c4_i32 dim 0 : vector<16x32xf32>, i32 -> vector<16x32xf32>
    %c1 = arith.constant 1 : index
    %c0_74 = arith.constant 0 : index
    %c0_75 = arith.constant 0 : index
    %148 = vector.load %arg17[%c1, %c0_74, %c0_75] : memref<8x16x1xf32, #tpu.memory_space<vmem>>, vector<1x16x1xf32>
    %149 = vector.shape_cast %148 : vector<1x16x1xf32> to vector<16x1xf32>
    %150 = vector.broadcast %149 : vector<16x1xf32> to vector<16x32xf32>
    %151 = arith.mulf %147, %150 : vector<16x32xf32>
    %c1_76 = arith.constant 1 : index
    %c0_77 = arith.constant 0 : index
    %c0_78 = arith.constant 0 : index
    %152 = vector.load %arg18[%c1_76, %c0_77, %c0_78] : memref<12x32x32xf32, #tpu.memory_space<vmem>>, vector<1x32x32xf32>
    %153 = vector.shape_cast %152 : vector<1x32x32xf32> to vector<32x32xf32>
    %cst_79 = arith.constant dense<0.000000e+00> : vector<16x32xf32>
    %154 = tpu.matmul %151, %153, %cst_79 {dimension_numbers = #tpu.dot_dimension_numbers<[1], [0], [0], [1], [0, 0, 1, 1], [], []>} : vector<16x32xf32>, vector<32x32xf32>, vector<16x32xf32> -> vector<16x32xf32>
    %155 = arith.addf %146, %154 : vector<16x32xf32>
    %c3_i32 = arith.constant 3 : i32
    %156 = tpu.dynamic_rotate %88 by %c3_i32 dim 0 : vector<16x32xf32>, i32 -> vector<16x32xf32>
    %c2 = arith.constant 2 : index
    %c0_80 = arith.constant 0 : index
    %c0_81 = arith.constant 0 : index
    %157 = vector.load %arg17[%c2, %c0_80, %c0_81] : memref<8x16x1xf32, #tpu.memory_space<vmem>>, vector<1x16x1xf32>
    %158 = vector.shape_cast %157 : vector<1x16x1xf32> to vector<16x1xf32>
    %159 = vector.broadcast %158 : vector<16x1xf32> to vector<16x32xf32>
    %160 = arith.mulf %156, %159 : vector<16x32xf32>
    %c2_82 = arith.constant 2 : index
    %c0_83 = arith.constant 0 : index
    %c0_84 = arith.constant 0 : index
    %161 = vector.load %arg18[%c2_82, %c0_83, %c0_84] : memref<12x32x32xf32, #tpu.memory_space<vmem>>, vector<1x32x32xf32>
    %162 = vector.shape_cast %161 : vector<1x32x32xf32> to vector<32x32xf32>
    %cst_85 = arith.constant dense<0.000000e+00> : vector<16x32xf32>
    %163 = tpu.matmul %160, %162, %cst_85 {dimension_numbers = #tpu.dot_dimension_numbers<[1], [0], [0], [1], [0, 0, 1, 1], [], []>} : vector<16x32xf32>, vector<32x32xf32>, vector<16x32xf32> -> vector<16x32xf32>
    %164 = arith.addf %155, %163 : vector<16x32xf32>
    %c1_i32 = arith.constant 1 : i32
    %165 = tpu.dynamic_rotate %88 by %c1_i32 dim 0 : vector<16x32xf32>, i32 -> vector<16x32xf32>
    %c3 = arith.constant 3 : index
    %c0_86 = arith.constant 0 : index
    %c0_87 = arith.constant 0 : index
    %166 = vector.load %arg17[%c3, %c0_86, %c0_87] : memref<8x16x1xf32, #tpu.memory_space<vmem>>, vector<1x16x1xf32>
    %167 = vector.shape_cast %166 : vector<1x16x1xf32> to vector<16x1xf32>
    %168 = vector.broadcast %167 : vector<16x1xf32> to vector<16x32xf32>
    %169 = arith.mulf %165, %168 : vector<16x32xf32>
    %c3_88 = arith.constant 3 : index
    %c0_89 = arith.constant 0 : index
    %c0_90 = arith.constant 0 : index
    %170 = vector.load %arg18[%c3_88, %c0_89, %c0_90] : memref<12x32x32xf32, #tpu.memory_space<vmem>>, vector<1x32x32xf32>
    %171 = vector.shape_cast %170 : vector<1x32x32xf32> to vector<32x32xf32>
    %cst_91 = arith.constant dense<0.000000e+00> : vector<16x32xf32>
    %172 = tpu.matmul %169, %171, %cst_91 {dimension_numbers = #tpu.dot_dimension_numbers<[1], [0], [0], [1], [0, 0, 1, 1], [], []>} : vector<16x32xf32>, vector<32x32xf32>, vector<16x32xf32> -> vector<16x32xf32>
    %173 = arith.addf %164, %172 : vector<16x32xf32>
    %c4 = arith.constant 4 : index
    %c0_92 = arith.constant 0 : index
    %c0_93 = arith.constant 0 : index
    %174 = vector.load %arg18[%c4, %c0_92, %c0_93] : memref<12x32x32xf32, #tpu.memory_space<vmem>>, vector<1x32x32xf32>
    %175 = vector.shape_cast %174 : vector<1x32x32xf32> to vector<32x32xf32>
    %cst_94 = arith.constant dense<0.000000e+00> : vector<16x32xf32>
    %176 = tpu.matmul %88, %175, %cst_94 {dimension_numbers = #tpu.dot_dimension_numbers<[1], [0], [0], [1], [0, 0, 1, 1], [], []>} : vector<16x32xf32>, vector<32x32xf32>, vector<16x32xf32> -> vector<16x32xf32>
    %177 = arith.addf %173, %176 : vector<16x32xf32>
    %c15_i32 = arith.constant 15 : i32
    %178 = tpu.dynamic_rotate %88 by %c15_i32 dim 0 : vector<16x32xf32>, i32 -> vector<16x32xf32>
    %c4_95 = arith.constant 4 : index
    %c0_96 = arith.constant 0 : index
    %c0_97 = arith.constant 0 : index
    %179 = vector.load %arg17[%c4_95, %c0_96, %c0_97] : memref<8x16x1xf32, #tpu.memory_space<vmem>>, vector<1x16x1xf32>
    %180 = vector.shape_cast %179 : vector<1x16x1xf32> to vector<16x1xf32>
    %181 = vector.broadcast %180 : vector<16x1xf32> to vector<16x32xf32>
    %182 = arith.mulf %178, %181 : vector<16x32xf32>
    %c5 = arith.constant 5 : index
    %c0_98 = arith.constant 0 : index
    %c0_99 = arith.constant 0 : index
    %183 = vector.load %arg18[%c5, %c0_98, %c0_99] : memref<12x32x32xf32, #tpu.memory_space<vmem>>, vector<1x32x32xf32>
    %184 = vector.shape_cast %183 : vector<1x32x32xf32> to vector<32x32xf32>
    %cst_100 = arith.constant dense<0.000000e+00> : vector<16x32xf32>
    %185 = tpu.matmul %182, %184, %cst_100 {dimension_numbers = #tpu.dot_dimension_numbers<[1], [0], [0], [1], [0, 0, 1, 1], [], []>} : vector<16x32xf32>, vector<32x32xf32>, vector<16x32xf32> -> vector<16x32xf32>
    %186 = arith.addf %177, %185 : vector<16x32xf32>
    %c13_i32 = arith.constant 13 : i32
    %187 = tpu.dynamic_rotate %88 by %c13_i32 dim 0 : vector<16x32xf32>, i32 -> vector<16x32xf32>
    %c5_101 = arith.constant 5 : index
    %c0_102 = arith.constant 0 : index
    %c0_103 = arith.constant 0 : index
    %188 = vector.load %arg17[%c5_101, %c0_102, %c0_103] : memref<8x16x1xf32, #tpu.memory_space<vmem>>, vector<1x16x1xf32>
    %189 = vector.shape_cast %188 : vector<1x16x1xf32> to vector<16x1xf32>
    %190 = vector.broadcast %189 : vector<16x1xf32> to vector<16x32xf32>
    %191 = arith.mulf %187, %190 : vector<16x32xf32>
    %c6 = arith.constant 6 : index
    %c0_104 = arith.constant 0 : index
    %c0_105 = arith.constant 0 : index
    %192 = vector.load %arg18[%c6, %c0_104, %c0_105] : memref<12x32x32xf32, #tpu.memory_space<vmem>>, vector<1x32x32xf32>
    %193 = vector.shape_cast %192 : vector<1x32x32xf32> to vector<32x32xf32>
    %cst_106 = arith.constant dense<0.000000e+00> : vector<16x32xf32>
    %194 = tpu.matmul %191, %193, %cst_106 {dimension_numbers = #tpu.dot_dimension_numbers<[1], [0], [0], [1], [0, 0, 1, 1], [], []>} : vector<16x32xf32>, vector<32x32xf32>, vector<16x32xf32> -> vector<16x32xf32>
    %195 = arith.addf %186, %194 : vector<16x32xf32>
    %c12_i32 = arith.constant 12 : i32
    %196 = tpu.dynamic_rotate %88 by %c12_i32 dim 0 : vector<16x32xf32>, i32 -> vector<16x32xf32>
    %c6_107 = arith.constant 6 : index
    %c0_108 = arith.constant 0 : index
    %c0_109 = arith.constant 0 : index
    %197 = vector.load %arg17[%c6_107, %c0_108, %c0_109] : memref<8x16x1xf32, #tpu.memory_space<vmem>>, vector<1x16x1xf32>
    %198 = vector.shape_cast %197 : vector<1x16x1xf32> to vector<16x1xf32>
    %199 = vector.broadcast %198 : vector<16x1xf32> to vector<16x32xf32>
    %200 = arith.mulf %196, %199 : vector<16x32xf32>
    %c7 = arith.constant 7 : index
    %c0_110 = arith.constant 0 : index
    %c0_111 = arith.constant 0 : index
    %201 = vector.load %arg18[%c7, %c0_110, %c0_111] : memref<12x32x32xf32, #tpu.memory_space<vmem>>, vector<1x32x32xf32>
    %202 = vector.shape_cast %201 : vector<1x32x32xf32> to vector<32x32xf32>
    %cst_112 = arith.constant dense<0.000000e+00> : vector<16x32xf32>
    %203 = tpu.matmul %200, %202, %cst_112 {dimension_numbers = #tpu.dot_dimension_numbers<[1], [0], [0], [1], [0, 0, 1, 1], [], []>} : vector<16x32xf32>, vector<32x32xf32>, vector<16x32xf32> -> vector<16x32xf32>
    %204 = arith.addf %195, %203 : vector<16x32xf32>
    %c11_i32 = arith.constant 11 : i32
    %205 = tpu.dynamic_rotate %88 by %c11_i32 dim 0 : vector<16x32xf32>, i32 -> vector<16x32xf32>
    %c7_113 = arith.constant 7 : index
    %c0_114 = arith.constant 0 : index
    %c0_115 = arith.constant 0 : index
    %206 = vector.load %arg17[%c7_113, %c0_114, %c0_115] : memref<8x16x1xf32, #tpu.memory_space<vmem>>, vector<1x16x1xf32>
    %207 = vector.shape_cast %206 : vector<1x16x1xf32> to vector<16x1xf32>
    %208 = vector.broadcast %207 : vector<16x1xf32> to vector<16x32xf32>
    %209 = arith.mulf %205, %208 : vector<16x32xf32>
    %c8 = arith.constant 8 : index
    %c0_116 = arith.constant 0 : index
    %c0_117 = arith.constant 0 : index
    %210 = vector.load %arg18[%c8, %c0_116, %c0_117] : memref<12x32x32xf32, #tpu.memory_space<vmem>>, vector<1x32x32xf32>
    %211 = vector.shape_cast %210 : vector<1x32x32xf32> to vector<32x32xf32>
    %cst_118 = arith.constant dense<0.000000e+00> : vector<16x32xf32>
    %212 = tpu.matmul %209, %211, %cst_118 {dimension_numbers = #tpu.dot_dimension_numbers<[1], [0], [0], [1], [0, 0, 1, 1], [], []>} : vector<16x32xf32>, vector<32x32xf32>, vector<16x32xf32> -> vector<16x32xf32>
    %213 = arith.addf %204, %212 : vector<16x32xf32>
    %c0_119 = arith.constant 0 : index
    %c0_120 = arith.constant 0 : index
    %c0_121 = arith.constant 0 : index
    %214 = vector.load %arg19[%c0_119, %c0_120, %c0_121] : memref<4x1x32xf32, #tpu.memory_space<vmem>>, vector<1x1x32xf32>
    %215 = vector.shape_cast %214 : vector<1x1x32xf32> to vector<1x32xf32>
    %216 = vector.broadcast %215 : vector<1x32xf32> to vector<16x32xf32>
    %217 = arith.addf %213, %216 : vector<16x32xf32>
    %cst_122 = arith.constant 0.000000e+00 : f32
    %218 = vector.broadcast %cst_122 : f32 to vector<16x32xf32>
    %219 = arith.maximumf %217, %218 : vector<16x32xf32>
    %c0_123 = arith.constant 0 : index
    %c0_124 = arith.constant 0 : index
    %c0_125 = arith.constant 0 : index
    %220 = vector.load %arg20[%c0_123, %c0_124, %c0_125] : memref<4x1x32xf32, #tpu.memory_space<vmem>>, vector<1x1x32xf32>
    %221 = vector.shape_cast %220 : vector<1x1x32xf32> to vector<1x32xf32>
    %222 = vector.broadcast %221 : vector<1x32xf32> to vector<16x32xf32>
    %223 = arith.mulf %219, %222 : vector<16x32xf32>
    %c0_126 = arith.constant 0 : index
    %c0_127 = arith.constant 0 : index
    %c0_128 = arith.constant 0 : index
    %224 = vector.load %arg21[%c0_126, %c0_127, %c0_128] : memref<4x1x32xf32, #tpu.memory_space<vmem>>, vector<1x1x32xf32>
    %225 = vector.shape_cast %224 : vector<1x1x32xf32> to vector<1x32xf32>
    %226 = vector.broadcast %225 : vector<1x32xf32> to vector<16x32xf32>
    %227 = arith.addf %223, %226 : vector<16x32xf32>
    %c0_129 = arith.constant 0 : index
    %c0_130 = arith.constant 0 : index
    %c0_131 = arith.constant 0 : index
    %228 = vector.load %arg22[%c0_129, %c0_130, %c0_131] : memref<4x32x32xf32, #tpu.memory_space<vmem>>, vector<1x32x32xf32>
    %229 = vector.shape_cast %228 : vector<1x32x32xf32> to vector<32x32xf32>
    %cst_132 = arith.constant dense<0.000000e+00> : vector<16x32xf32>
    %230 = tpu.matmul %227, %229, %cst_132 {dimension_numbers = #tpu.dot_dimension_numbers<[1], [0], [0], [1], [0, 0, 1, 1], [], []>} : vector<16x32xf32>, vector<32x32xf32>, vector<16x32xf32> -> vector<16x32xf32>
    %231 = arith.addf %136, %230 : vector<16x32xf32>
    %cst_133 = arith.constant 0.000000e+00 : f32
    %232 = vector.broadcast %cst_133 : f32 to vector<16x32xf32>
    %c9 = arith.constant 9 : index
    %c0_134 = arith.constant 0 : index
    %c0_135 = arith.constant 0 : index
    %233 = vector.load %arg18[%c9, %c0_134, %c0_135] : memref<12x32x32xf32, #tpu.memory_space<vmem>>, vector<1x32x32xf32>
    %234 = vector.shape_cast %233 : vector<1x32x32xf32> to vector<32x32xf32>
    %cst_136 = arith.constant dense<0.000000e+00> : vector<16x32xf32>
    %235 = tpu.matmul %88, %234, %cst_136 {dimension_numbers = #tpu.dot_dimension_numbers<[1], [0], [0], [1], [0, 0, 1, 1], [], []>} : vector<16x32xf32>, vector<32x32xf32>, vector<16x32xf32> -> vector<16x32xf32>
    %236 = arith.addf %232, %235 : vector<16x32xf32>
    %c1_137 = arith.constant 1 : index
    %c0_138 = arith.constant 0 : index
    %c0_139 = arith.constant 0 : index
    %237 = vector.load %arg19[%c1_137, %c0_138, %c0_139] : memref<4x1x32xf32, #tpu.memory_space<vmem>>, vector<1x1x32xf32>
    %238 = vector.shape_cast %237 : vector<1x1x32xf32> to vector<1x32xf32>
    %239 = vector.broadcast %238 : vector<1x32xf32> to vector<16x32xf32>
    %240 = arith.addf %236, %239 : vector<16x32xf32>
    %cst_140 = arith.constant 0.000000e+00 : f32
    %241 = vector.broadcast %cst_140 : f32 to vector<16x32xf32>
    %242 = arith.maximumf %240, %241 : vector<16x32xf32>
    %c1_141 = arith.constant 1 : index
    %c0_142 = arith.constant 0 : index
    %c0_143 = arith.constant 0 : index
    %243 = vector.load %arg20[%c1_141, %c0_142, %c0_143] : memref<4x1x32xf32, #tpu.memory_space<vmem>>, vector<1x1x32xf32>
    %244 = vector.shape_cast %243 : vector<1x1x32xf32> to vector<1x32xf32>
    %245 = vector.broadcast %244 : vector<1x32xf32> to vector<16x32xf32>
    %246 = arith.mulf %242, %245 : vector<16x32xf32>
    %c1_144 = arith.constant 1 : index
    %c0_145 = arith.constant 0 : index
    %c0_146 = arith.constant 0 : index
    %247 = vector.load %arg21[%c1_144, %c0_145, %c0_146] : memref<4x1x32xf32, #tpu.memory_space<vmem>>, vector<1x1x32xf32>
    %248 = vector.shape_cast %247 : vector<1x1x32xf32> to vector<1x32xf32>
    %249 = vector.broadcast %248 : vector<1x32xf32> to vector<16x32xf32>
    %250 = arith.addf %246, %249 : vector<16x32xf32>
    %c1_147 = arith.constant 1 : index
    %c0_148 = arith.constant 0 : index
    %c0_149 = arith.constant 0 : index
    %251 = vector.load %arg22[%c1_147, %c0_148, %c0_149] : memref<4x32x32xf32, #tpu.memory_space<vmem>>, vector<1x32x32xf32>
    %252 = vector.shape_cast %251 : vector<1x32x32xf32> to vector<32x32xf32>
    %cst_150 = arith.constant dense<0.000000e+00> : vector<16x32xf32>
    %253 = tpu.matmul %250, %252, %cst_150 {dimension_numbers = #tpu.dot_dimension_numbers<[1], [0], [0], [1], [0, 0, 1, 1], [], []>} : vector<16x32xf32>, vector<32x32xf32>, vector<16x32xf32> -> vector<16x32xf32>
    %254 = arith.addf %231, %253 : vector<16x32xf32>
    %cst_151 = arith.constant 0.000000e+00 : f32
    %255 = vector.broadcast %cst_151 : f32 to vector<16x32xf32>
    %c10 = arith.constant 10 : index
    %c0_152 = arith.constant 0 : index
    %c0_153 = arith.constant 0 : index
    %256 = vector.load %arg18[%c10, %c0_152, %c0_153] : memref<12x32x32xf32, #tpu.memory_space<vmem>>, vector<1x32x32xf32>
    %257 = vector.shape_cast %256 : vector<1x32x32xf32> to vector<32x32xf32>
    %cst_154 = arith.constant dense<0.000000e+00> : vector<16x32xf32>
    %258 = tpu.matmul %88, %257, %cst_154 {dimension_numbers = #tpu.dot_dimension_numbers<[1], [0], [0], [1], [0, 0, 1, 1], [], []>} : vector<16x32xf32>, vector<32x32xf32>, vector<16x32xf32> -> vector<16x32xf32>
    %259 = arith.addf %255, %258 : vector<16x32xf32>
    %c2_155 = arith.constant 2 : index
    %c0_156 = arith.constant 0 : index
    %c0_157 = arith.constant 0 : index
    %260 = vector.load %arg19[%c2_155, %c0_156, %c0_157] : memref<4x1x32xf32, #tpu.memory_space<vmem>>, vector<1x1x32xf32>
    %261 = vector.shape_cast %260 : vector<1x1x32xf32> to vector<1x32xf32>
    %262 = vector.broadcast %261 : vector<1x32xf32> to vector<16x32xf32>
    %263 = arith.addf %259, %262 : vector<16x32xf32>
    %cst_158 = arith.constant 0.000000e+00 : f32
    %264 = vector.broadcast %cst_158 : f32 to vector<16x32xf32>
    %265 = arith.maximumf %263, %264 : vector<16x32xf32>
    %c2_159 = arith.constant 2 : index
    %c0_160 = arith.constant 0 : index
    %c0_161 = arith.constant 0 : index
    %266 = vector.load %arg20[%c2_159, %c0_160, %c0_161] : memref<4x1x32xf32, #tpu.memory_space<vmem>>, vector<1x1x32xf32>
    %267 = vector.shape_cast %266 : vector<1x1x32xf32> to vector<1x32xf32>
    %268 = vector.broadcast %267 : vector<1x32xf32> to vector<16x32xf32>
    %269 = arith.mulf %265, %268 : vector<16x32xf32>
    %c2_162 = arith.constant 2 : index
    %c0_163 = arith.constant 0 : index
    %c0_164 = arith.constant 0 : index
    %270 = vector.load %arg21[%c2_162, %c0_163, %c0_164] : memref<4x1x32xf32, #tpu.memory_space<vmem>>, vector<1x1x32xf32>
    %271 = vector.shape_cast %270 : vector<1x1x32xf32> to vector<1x32xf32>
    %272 = vector.broadcast %271 : vector<1x32xf32> to vector<16x32xf32>
    %273 = arith.addf %269, %272 : vector<16x32xf32>
    %c2_165 = arith.constant 2 : index
    %c0_166 = arith.constant 0 : index
    %c0_167 = arith.constant 0 : index
    %274 = vector.load %arg22[%c2_165, %c0_166, %c0_167] : memref<4x32x32xf32, #tpu.memory_space<vmem>>, vector<1x32x32xf32>
    %275 = vector.shape_cast %274 : vector<1x32x32xf32> to vector<32x32xf32>
    %cst_168 = arith.constant dense<0.000000e+00> : vector<16x32xf32>
    %276 = tpu.matmul %273, %275, %cst_168 {dimension_numbers = #tpu.dot_dimension_numbers<[1], [0], [0], [1], [0, 0, 1, 1], [], []>} : vector<16x32xf32>, vector<32x32xf32>, vector<16x32xf32> -> vector<16x32xf32>
    %277 = arith.addf %254, %276 : vector<16x32xf32>
    %cst_169 = arith.constant 0.000000e+00 : f32
    %278 = vector.broadcast %cst_169 : f32 to vector<16x32xf32>
    %c11 = arith.constant 11 : index
    %c0_170 = arith.constant 0 : index
    %c0_171 = arith.constant 0 : index
    %279 = vector.load %arg18[%c11, %c0_170, %c0_171] : memref<12x32x32xf32, #tpu.memory_space<vmem>>, vector<1x32x32xf32>
    %280 = vector.shape_cast %279 : vector<1x32x32xf32> to vector<32x32xf32>
    %cst_172 = arith.constant dense<0.000000e+00> : vector<16x32xf32>
    %281 = tpu.matmul %88, %280, %cst_172 {dimension_numbers = #tpu.dot_dimension_numbers<[1], [0], [0], [1], [0, 0, 1, 1], [], []>} : vector<16x32xf32>, vector<32x32xf32>, vector<16x32xf32> -> vector<16x32xf32>
    %282 = arith.addf %278, %281 : vector<16x32xf32>
    %c3_173 = arith.constant 3 : index
    %c0_174 = arith.constant 0 : index
    %c0_175 = arith.constant 0 : index
    %283 = vector.load %arg19[%c3_173, %c0_174, %c0_175] : memref<4x1x32xf32, #tpu.memory_space<vmem>>, vector<1x1x32xf32>
    %284 = vector.shape_cast %283 : vector<1x1x32xf32> to vector<1x32xf32>
    %285 = vector.broadcast %284 : vector<1x32xf32> to vector<16x32xf32>
    %286 = arith.addf %282, %285 : vector<16x32xf32>
    %cst_176 = arith.constant 0.000000e+00 : f32
    %287 = vector.broadcast %cst_176 : f32 to vector<16x32xf32>
    %288 = arith.maximumf %286, %287 : vector<16x32xf32>
    %c3_177 = arith.constant 3 : index
    %c0_178 = arith.constant 0 : index
    %c0_179 = arith.constant 0 : index
    %289 = vector.load %arg20[%c3_177, %c0_178, %c0_179] : memref<4x1x32xf32, #tpu.memory_space<vmem>>, vector<1x1x32xf32>
    %290 = vector.shape_cast %289 : vector<1x1x32xf32> to vector<1x32xf32>
    %291 = vector.broadcast %290 : vector<1x32xf32> to vector<16x32xf32>
    %292 = arith.mulf %288, %291 : vector<16x32xf32>
    %c3_180 = arith.constant 3 : index
    %c0_181 = arith.constant 0 : index
    %c0_182 = arith.constant 0 : index
    %293 = vector.load %arg21[%c3_180, %c0_181, %c0_182] : memref<4x1x32xf32, #tpu.memory_space<vmem>>, vector<1x1x32xf32>
    %294 = vector.shape_cast %293 : vector<1x1x32xf32> to vector<1x32xf32>
    %295 = vector.broadcast %294 : vector<1x32xf32> to vector<16x32xf32>
    %296 = arith.addf %292, %295 : vector<16x32xf32>
    %c3_183 = arith.constant 3 : index
    %c0_184 = arith.constant 0 : index
    %c0_185 = arith.constant 0 : index
    %297 = vector.load %arg22[%c3_183, %c0_184, %c0_185] : memref<4x32x32xf32, #tpu.memory_space<vmem>>, vector<1x32x32xf32>
    %298 = vector.shape_cast %297 : vector<1x32x32xf32> to vector<32x32xf32>
    %cst_186 = arith.constant dense<0.000000e+00> : vector<16x32xf32>
    %299 = tpu.matmul %296, %298, %cst_186 {dimension_numbers = #tpu.dot_dimension_numbers<[1], [0], [0], [1], [0, 0, 1, 1], [], []>} : vector<16x32xf32>, vector<32x32xf32>, vector<16x32xf32> -> vector<16x32xf32>
    %300 = arith.addf %277, %299 : vector<16x32xf32>
    %c0_187 = arith.constant 0 : index
    %c0_188 = arith.constant 0 : index
    %301 = vector.load %arg23[%c0_187, %c0_188] : memref<1x32xf32, #tpu.memory_space<vmem>>, vector<1x32xf32>
    %302 = vector.broadcast %301 : vector<1x32xf32> to vector<16x32xf32>
    %303 = arith.addf %300, %302 : vector<16x32xf32>
    %cst_189 = arith.constant 1.000000e-01 : f32
    %304 = vector.broadcast %cst_189 : f32 to vector<16x32xf32>
    %305 = arith.mulf %304, %303 : vector<16x32xf32>
    %306 = arith.addf %135, %305 : vector<16x32xf32>
    %c0_190 = arith.constant 0 : index
    %c0_191 = arith.constant 0 : index
    %307 = vector.load %arg24[%c0_190, %c0_191] : memref<32x32xf32, #tpu.memory_space<vmem>>, vector<32x32xf32>
    %cst_192 = arith.constant dense<0.000000e+00> : vector<16x32xf32>
    %308 = tpu.matmul %306, %307, %cst_192 {dimension_numbers = #tpu.dot_dimension_numbers<[1], [0], [0], [1], [0, 0, 1, 1], [], []>} : vector<16x32xf32>, vector<32x32xf32>, vector<16x32xf32> -> vector<16x32xf32>
    %c0_193 = arith.constant 0 : index
    %c0_194 = arith.constant 0 : index
    %309 = vector.load %arg25[%c0_193, %c0_194] : memref<1x32xf32, #tpu.memory_space<vmem>>, vector<1x32xf32>
    %310 = vector.broadcast %309 : vector<1x32xf32> to vector<16x32xf32>
    %311 = arith.addf %308, %310 : vector<16x32xf32>
    %c0_195 = arith.constant 0 : index
    %c0_196 = arith.constant 0 : index
    %312 = vector.load %arg26[%c0_195, %c0_196] : memref<1x32xf32, #tpu.memory_space<vmem>>, vector<1x32xf32>
    %313 = vector.broadcast %312 : vector<1x32xf32> to vector<16x32xf32>
    %314 = arith.mulf %311, %313 : vector<16x32xf32>
    %c0_197 = arith.constant 0 : index
    %c0_198 = arith.constant 0 : index
    %315 = vector.load %arg27[%c0_197, %c0_198] : memref<1x32xf32, #tpu.memory_space<vmem>>, vector<1x32xf32>
    %316 = vector.broadcast %315 : vector<1x32xf32> to vector<16x32xf32>
    %317 = arith.addf %314, %316 : vector<16x32xf32>
    %c0_199 = arith.constant 0 : index
    %c0_200 = arith.constant 0 : index
    %318 = vector.load %arg28[%c0_199, %c0_200] : memref<1x32xf32, #tpu.memory_space<vmem>>, vector<1x32xf32>
    %319 = vector.broadcast %318 : vector<1x32xf32> to vector<16x32xf32>
    %320 = arith.addf %317, %319 : vector<16x32xf32>
    %c0_201 = arith.constant 0 : index
    %c0_202 = arith.constant 0 : index
    %321 = vector.load %arg29[%c0_201, %c0_202] : memref<1x32xf32, #tpu.memory_space<vmem>>, vector<1x32xf32>
    %c0_203 = arith.constant 0 : index
    %c0_204 = arith.constant 0 : index
    %322 = vector.load %arg26[%c0_203, %c0_204] : memref<1x32xf32, #tpu.memory_space<vmem>>, vector<1x32xf32>
    %323 = vector.broadcast %322 : vector<1x32xf32> to vector<16x32xf32>
    %324 = arith.mulf %88, %323 : vector<16x32xf32>
    %c0_205 = arith.constant 0 : index
    %c0_206 = arith.constant 0 : index
    %325 = vector.load %arg27[%c0_205, %c0_206] : memref<1x32xf32, #tpu.memory_space<vmem>>, vector<1x32xf32>
    %326 = vector.broadcast %325 : vector<1x32xf32> to vector<16x32xf32>
    %327 = arith.addf %324, %326 : vector<16x32xf32>
    %328 = vector.broadcast %321 : vector<1x32xf32> to vector<16x32xf32>
    %329 = arith.mulf %328, %327 : vector<16x32xf32>
    %330 = arith.addf %320, %329 : vector<16x32xf32>
    %c0_207 = arith.constant 0 : index
    %c0_208 = arith.constant 0 : index
    %c0_209 = arith.constant 0 : index
    %331 = vector.load %arg30[%c0_207, %c0_208, %c0_209] : memref<1x16x32xf32, #tpu.memory_space<vmem>>, vector<1x16x32xf32>
    %332 = vector.shape_cast %331 : vector<1x16x32xf32> to vector<16x32xf32>
    %333 = vector.shape_cast %330 : vector<16x32xf32> to vector<1x16x32xf32>
    tpu.vector_store %arg30[%c0_207, %c0_208, %c0_209], %333 {strides = array<i32>} : memref<1x16x32xf32, #tpu.memory_space<vmem>>, vector<1x16x32xf32>,
    return
  }
  func.func @transform_0(%arg0: i32) -> (i32, i32, i32) {
    %c0_i32 = arith.constant 0 : i32
    %c0_i32_0 = arith.constant 0 : i32
    %c0_i32_1 = arith.constant 0 : i32
    return %arg0, %c0_i32, %c0_i32_0 : i32, i32, i32
  }
  func.func @transform_1(%arg0: i32) -> (i32, i32) {
    %c0_i32 = arith.constant 0 : i32
    %c0_i32_0 = arith.constant 0 : i32
    %c0_i32_1 = arith.constant 0 : i32
    return %c0_i32, %c0_i32_0 : i32, i32
  }
  func.func @transform_2(%arg0: i32) -> (i32, i32) {
    %c0_i32 = arith.constant 0 : i32
    %c0_i32_0 = arith.constant 0 : i32
    %c0_i32_1 = arith.constant 0 : i32
    return %c0_i32, %c0_i32_0 : i32, i32
  }
  func.func @transform_3(%arg0: i32) -> (i32, i32) {
    %c0_i32 = arith.constant 0 : i32
    %c0_i32_0 = arith.constant 0 : i32
    %c0_i32_1 = arith.constant 0 : i32
    return %c0_i32, %c0_i32_0 : i32, i32
  }
  func.func @transform_4(%arg0: i32) -> (i32, i32) {
    %c0_i32 = arith.constant 0 : i32
    %c0_i32_0 = arith.constant 0 : i32
    %c0_i32_1 = arith.constant 0 : i32
    return %c0_i32, %c0_i32_0 : i32, i32
  }
  func.func @transform_5(%arg0: i32) -> (i32, i32) {
    %c0_i32 = arith.constant 0 : i32
    %c0_i32_0 = arith.constant 0 : i32
    %c0_i32_1 = arith.constant 0 : i32
    return %c0_i32, %c0_i32_0 : i32, i32
  }
  func.func @transform_6(%arg0: i32) -> (i32, i32) {
    %c0_i32 = arith.constant 0 : i32
    %c0_i32_0 = arith.constant 0 : i32
    %c0_i32_1 = arith.constant 0 : i32
    return %c0_i32, %c0_i32_0 : i32, i32
  }
  func.func @transform_7(%arg0: i32) -> (i32, i32) {
    %c0_i32 = arith.constant 0 : i32
    %c0_i32_0 = arith.constant 0 : i32
    %c0_i32_1 = arith.constant 0 : i32
    return %c0_i32, %c0_i32_0 : i32, i32
  }
  func.func @transform_8(%arg0: i32) -> (i32, i32) {
    %c0_i32 = arith.constant 0 : i32
    %c0_i32_0 = arith.constant 0 : i32
    %c0_i32_1 = arith.constant 0 : i32
    return %c0_i32, %c0_i32_0 : i32, i32
  }
  func.func @transform_9(%arg0: i32) -> (i32, i32) {
    %c0_i32 = arith.constant 0 : i32
    %c0_i32_0 = arith.constant 0 : i32
    %c0_i32_1 = arith.constant 0 : i32
    return %c0_i32, %c0_i32_0 : i32, i32
  }
  func.func @transform_10(%arg0: i32) -> (i32, i32) {
    %c0_i32 = arith.constant 0 : i32
    %c0_i32_0 = arith.constant 0 : i32
    %c0_i32_1 = arith.constant 0 : i32
    return %c0_i32, %c0_i32_0 : i32, i32
  }
  func.func @transform_11(%arg0: i32) -> (i32, i32) {
    %c0_i32 = arith.constant 0 : i32
    %c0_i32_0 = arith.constant 0 : i32
    %c0_i32_1 = arith.constant 0 : i32
    return %c0_i32, %c0_i32_0 : i32, i32
  }
  func.func @transform_12(%arg0: i32) -> (i32, i32) {
    %c0_i32 = arith.constant 0 : i32
    %c0_i32_0 = arith.constant 0 : i32
    %c0_i32_1 = arith.constant 0 : i32
    return %c0_i32, %c0_i32_0 : i32, i32
  }
  func.func @transform_13(%arg0: i32) -> (i32, i32) {
    %c0_i32 = arith.constant 0 : i32
    %c0_i32_0 = arith.constant 0 : i32
    %c0_i32_1 = arith.constant 0 : i32
    return %c0_i32, %c0_i32_0 : i32, i32
  }
  func.func @transform_14(%arg0: i32) -> (i32, i32) {
    %c0_i32 = arith.constant 0 : i32
    %c0_i32_0 = arith.constant 0 : i32
    %c0_i32_1 = arith.constant 0 : i32
    return %c0_i32, %c0_i32_0 : i32, i32
  }
  func.func @transform_15(%arg0: i32) -> (i32, i32) {
    %c0_i32 = arith.constant 0 : i32
    %c0_i32_0 = arith.constant 0 : i32
    %c0_i32_1 = arith.constant 0 : i32
    return %c0_i32, %c0_i32_0 : i32, i32
  }
  func.func @transform_16(%arg0: i32) -> (i32, i32, i32) {
    %c0_i32 = arith.constant 0 : i32
    %c0_i32_0 = arith.constant 0 : i32
    %c0_i32_1 = arith.constant 0 : i32
    %c0_i32_2 = arith.constant 0 : i32
    return %c0_i32, %c0_i32_0, %c0_i32_1 : i32, i32, i32
  }
  func.func @transform_17(%arg0: i32) -> (i32, i32, i32) {
    %c0_i32 = arith.constant 0 : i32
    %c0_i32_0 = arith.constant 0 : i32
    %c0_i32_1 = arith.constant 0 : i32
    %c0_i32_2 = arith.constant 0 : i32
    return %c0_i32, %c0_i32_0, %c0_i32_1 : i32, i32, i32
  }
  func.func @transform_18(%arg0: i32) -> (i32, i32, i32) {
    %c0_i32 = arith.constant 0 : i32
    %c0_i32_0 = arith.constant 0 : i32
    %c0_i32_1 = arith.constant 0 : i32
    %c0_i32_2 = arith.constant 0 : i32
    return %c0_i32, %c0_i32_0, %c0_i32_1 : i32, i32, i32
  }
  func.func @transform_19(%arg0: i32) -> (i32, i32, i32) {
    %c0_i32 = arith.constant 0 : i32
    %c0_i32_0 = arith.constant 0 : i32
    %c0_i32_1 = arith.constant 0 : i32
    %c0_i32_2 = arith.constant 0 : i32
    return %c0_i32, %c0_i32_0, %c0_i32_1 : i32, i32, i32
  }
  func.func @transform_20(%arg0: i32) -> (i32, i32, i32) {
    %c0_i32 = arith.constant 0 : i32
    %c0_i32_0 = arith.constant 0 : i32
    %c0_i32_1 = arith.constant 0 : i32
    %c0_i32_2 = arith.constant 0 : i32
    return %c0_i32, %c0_i32_0, %c0_i32_1 : i32, i32, i32
  }
  func.func @transform_21(%arg0: i32) -> (i32, i32, i32) {
    %c0_i32 = arith.constant 0 : i32
    %c0_i32_0 = arith.constant 0 : i32
    %c0_i32_1 = arith.constant 0 : i32
    %c0_i32_2 = arith.constant 0 : i32
    return %c0_i32, %c0_i32_0, %c0_i32_1 : i32, i32, i32
  }
  func.func @transform_22(%arg0: i32) -> (i32, i32) {
    %c0_i32 = arith.constant 0 : i32
    %c0_i32_0 = arith.constant 0 : i32
    %c0_i32_1 = arith.constant 0 : i32
    return %c0_i32, %c0_i32_0 : i32, i32
  }
  func.func @transform_23(%arg0: i32) -> (i32, i32) {
    %c0_i32 = arith.constant 0 : i32
    %c0_i32_0 = arith.constant 0 : i32
    %c0_i32_1 = arith.constant 0 : i32
    return %c0_i32, %c0_i32_0 : i32, i32
  }
  func.func @transform_24(%arg0: i32) -> (i32, i32) {
    %c0_i32 = arith.constant 0 : i32
    %c0_i32_0 = arith.constant 0 : i32
    %c0_i32_1 = arith.constant 0 : i32
    return %c0_i32, %c0_i32_0 : i32, i32
  }
  func.func @transform_25(%arg0: i32) -> (i32, i32) {
    %c0_i32 = arith.constant 0 : i32
    %c0_i32_0 = arith.constant 0 : i32
    %c0_i32_1 = arith.constant 0 : i32
    return %c0_i32, %c0_i32_0 : i32, i32
  }
  func.func @transform_26(%arg0: i32) -> (i32, i32) {
    %c0_i32 = arith.constant 0 : i32
    %c0_i32_0 = arith.constant 0 : i32
    %c0_i32_1 = arith.constant 0 : i32
    return %c0_i32, %c0_i32_0 : i32, i32
  }
  func.func @transform_27(%arg0: i32) -> (i32, i32) {
    %c0_i32 = arith.constant 0 : i32
    %c0_i32_0 = arith.constant 0 : i32
    %c0_i32_1 = arith.constant 0 : i32
    return %c0_i32, %c0_i32_0 : i32, i32
  }
  func.func @transform_28(%arg0: i32) -> (i32, i32) {
    %c0_i32 = arith.constant 0 : i32
    %c0_i32_0 = arith.constant 0 : i32
    %c0_i32_1 = arith.constant 0 : i32
    return %c0_i32, %c0_i32_0 : i32, i32
  }
  func.func @transform_29(%arg0: i32) -> (i32, i32, i32) {
    %c0_i32 = arith.constant 0 : i32
    %c0_i32_0 = arith.constant 0 : i32
    %c0_i32_1 = arith.constant 0 : i32
    return %arg0, %c0_i32, %c0_i32_0 : i32, i32, i32
  }
}

</mosaic_0001>

<bundles_post_ra>
// kernel: tpu_custom_call.1
= control target key start
LH: loop header
LB: loop body
LE: loop exit
PB: predicated region body
PF: predicated region fallthrough
CT: control target
= control target key end

     0   :  { %s6645_s6 = smov 1   ;;  %s6646_s10 = smov 2   ;;  %s7604_s0 = inlined_call_operand.smem [shape: u32[30], index: -1, kind: input, shape index: {}] }
   0x1   :  { %s6715_s5 = sld [smem:[%s7604_s0]]   ;;  %s6647_s14 = smov 3  }
   0x2   :  { %s6720_s9 = sld [smem:[%s7604_s0 + %s6645_s6]]   ;;  %s6648_s18 = smov 4  }
   0x3   :  { %s6725_s13 = sld [smem:[%s7604_s0 + %s6646_s10]]   ;;  %s6649_s22 = smov 5  }
   0x4   :  { %s6730_s17 = sld [smem:[%s7604_s0 + %s6647_s14]]   ;;  %s6650_s26 = smov 6  }
   0x5   :  { %s6735_s21 = sld [smem:[%s7604_s0 + %s6648_s18]]   ;;  %s6651_s30 = smov 7  }
   0x6   :  { %s6740_s25 = sld [smem:[%s7604_s0 + %s6649_s22]]   ;;  %s6652_s4 = smov 8  }
   0x7   :  { %7638 = sst [smem:[#allocation39_spill]] %s6715_s5  ;;  %s6653_s10 = smov 9  }
   0x8   :  { %7639 = sst [smem:[#allocation40_spill]] %s6720_s9  ;;  %s6654_s15 = smov 10  }
   0x9   :  { %7640 = sst [smem:[#allocation41_spill]] %s6725_s13  ;;  %s6655_s20 = smov 11  }
   0xa   :  { %s6745_s29 = sld [smem:[%s7604_s0 + %s6650_s26]]   ;;  %s6656_s26 = smov 12  }
   0xb   :  { %7641 = sst [smem:[#allocation42_spill]] %s6735_s21  ;;  %s6657_s1 = smov 13  }
   0xc   :  { %s6750_s3 = sld [smem:[%s7604_s0 + %s6651_s30]]   ;;  %s6658_s7 = smov 14  }
   0xd   :  { %s6755_s8 = sld [smem:[%s7604_s0 + %s6652_s4]]   ;;  %s6660_s22 = smov 16  }
   0xe   :  { %s6760_s14 = sld [smem:[%s7604_s0 + %s6653_s10]]   ;;  %s6661_s28 = smov 17  }
   0xf   :  { %s6765_s19 = sld [smem:[%s7604_s0 + %s6654_s15]]   ;;  %s6659_s15 = smov 15  }
  0x10   :  { %s6770_s24 = sld [smem:[%s7604_s0 + %s6655_s20]]  }
  0x11   :  { %s6775_s30 = sld [smem:[%s7604_s0 + %s6656_s26]]  }
  0x12   :  { %7642 = sst [smem:[#allocation43_spill]] %s6750_s3 }
  0x13   :  { %s6780_s6 = sld [smem:[%s7604_s0 + %s6657_s1]]  }
  0x14   :  { %s6785_s12 = sld [smem:[%s7604_s0 + %s6658_s7]]   ;;  %s6662_s7 = smov 18  }
  0x15   :  { %s6790_s20 = sld [smem:[%s7604_s0 + %s6659_s15]]   ;;  %s6663_s15 = smov 19  }
  0x16   :  { %s6795_s27 = sld [smem:[%s7604_s0 + %s6660_s22]]   ;;  %s6664_s22 = smov 20  }
  0x17   :  { %s6800_s4 = sld [smem:[%s7604_s0 + %s6661_s28]]   ;;  %s6665_s28 = smov 21  }
  0x18   :  { %s6810_s3 = sld [smem:[%s7604_s0 + %s6663_s15]]   ;;  %s6667_s15 = smov 23  }
  0x19   :  { %7643 = sst [smem:[#allocation44_spill]] %s6780_s6 }
  0x1a   :  { %7644 = sst [smem:[#allocation45_spill]] %s6785_s12 }
  0x1b   :  { %s6805_s6 = sld [smem:[%s7604_s0 + %s6662_s7]]   ;;  %s6666_s7 = smov 22  }
  0x1c   :  { %7645 = sst [smem:[#allocation46_spill]] %s6795_s27 }
  0x1d   :  { %7646 = sst [smem:[#allocation47_spill]] %s6800_s4 }
  0x1e   :  { %7648 = sst [smem:[#allocation49_spill]] %s6810_s3 }
  0x1f   :  { %s6815_s27 = sld [smem:[%s7604_s0 + %s6664_s22]]   ;;  %s6668_s22 = smov 24  }
  0x20   :  { %s6820_s13 = sld [smem:[%s7604_s0 + %s6665_s28]]   ;;  %s6669_s28 = smov 25  }
  0x21   :  { %7647 = sst [smem:[#allocation48_spill]] %s6805_s6 }
  0x22   :  { %s6825_s9 = sld [smem:[%s7604_s0 + %s6666_s7]]   ;;  %s6670_s7 = smov 26  }
  0x23   :  { %s6830_s5 = sld [smem:[%s7604_s0 + %s6667_s15]]   ;;  %s6671_s15 = smov 27  }
  0x25   :  { %7649 = sst [smem:[#allocation50_spill]] %s6815_s27 }
  0x26   :  { %7650 = sst [smem:[#allocation51_spill]] %s6820_s13 }
  0x27   :  { %s6835_s27 = sld [smem:[%s7604_s0 + %s6668_s22]]   ;;  %s6672_s22 = smov 28  }
  0x28   :  { %7651 = sst [smem:[#allocation52_spill]] %s6825_s9 }
  0x29   :  { %7652 = sst [smem:[#allocation53_spill]] %s6830_s5 }
  0x2a   :  { %s6840_s13 = sld [smem:[%s7604_s0 + %s6669_s28]]   ;;  %s6673_s28 = smov 29  }
  0x2b   :  { %s6845_s9 = sld [smem:[%s7604_s0 + %s6670_s7]]  }
  0x2c   :  { %s6850_s5 = sld [smem:[%s7604_s0 + %s6671_s15]]  }
  0x2d   :  { %7653 = sst [smem:[#allocation54_spill]] %s6835_s27 }
  0x2e   :  { %s6855_s27 = sld [smem:[%s7604_s0 + %s6672_s22]]  }
  0x30   :  { %7654 = sst [smem:[#allocation55_spill]] %s6840_s13 }
  0x31   :  { %s6860_s13 = sld [smem:[%s7604_s0 + %s6673_s28]]  }
  0x32   :  { %7655 = sst [smem:[#allocation56_spill]] %s6850_s5 }
  0x33   :  { %64 = vsyncpa [#allocation3], 0 }
  0x34   :  { %65 = vsyncpa [#allocation6], 0 }
  0x35   :  { %66 = vsyncpa [#allocation9], 0 }
  0x36   :  { %67 = vsyncpa [#allocation12], 0 }
  0x37   :  { %68 = vsyncpa [#allocation15], 0 }
  0x38   :  { %69 = vsyncpa [#allocation18], 0 }
  0x39   :  { %70 = vsyncpa [#allocation21], 0 }
  0x3a   :  { %71 = vsyncpa [#allocation24], 0 }
  0x3b   :  { %72 = vsyncpa [#allocation27], 0 }
  0x3c   :  { %73 = vsyncpa [#allocation4], 0 }
  0x3d   :  { %75 = vsyncpa [#allocation4 + $0x1], 0  ;;  %s6862_s7 = smov 0   ;;  %s6864_s10 = smov 0  }
  0x3e   :  { %s6866_s11 = smov 0   ;;  %s6868_s15 = smov 0  }
  0x3f LB: > { %s7656_s6 = sld [smem:[#allocation48_spill]]  ;;  %s7657_s4 = sld [smem:[#allocation47_spill]]  ;;  %s6631_s7 = sphi %s6862_s7, %s7721_s7   ;;  %s6643_s15 = sphi %s6868_s15, %s7718_s15   ;;  %s6639_s11 = sphi %s6866_s11, %s7720_s11   ;;  %s6635_s10 = sphi %s6864_s10, %s7722_s10  }
  0x40   : > { %s7658_s3 = sld [smem:[#allocation49_spill]]  ;;  %s7659_s12 = sld [smem:[#allocation45_spill]] }
  0x41   : > { %s7660_s21 = sld [smem:[#allocation42_spill]]  ;;  %7661 = sst [smem:[#allocation57_spill]] %s6631_s7 }
  0x42   : > { %7662 = sst [smem:[#allocation58_spill]] %s6639_s11  ;;  %s6883_s0 = sadd.s32 4294967295, %s6643_s15  }
  0x43   : > { %7663 = sst [smem:[#allocation59_spill]] %s6643_s15  ;;  %s4737_s16 = sadd.s32 4294967294, %s6643_s15  }
  0x44   : > { %s6887_s18 = sadd.s32 1, %s6643_s15   ;;  %s702_s22 = sadd.s32 1, %s6639_s11 }
  0x45   : > { %7664 = sst [smem:[#allocation60_spill]] %s6887_s18  ;;  %s699_s23 = ssub.s32 %s6643_s15, %s6887_s18 }
  0x46   : > { %p712_p0 = scmp.ne.s32.totalorder %s6639_s11, %s6635_s10  ;;  %p700_p1 = scmp.eq.s32.totalorder %s699_s23, 0 }
  0x47   : > { %p713_p2 = scmp.eq.s32.totalorder %s6883_s0, 1  ;;  %p718_p3 = scmp.ne.s32.totalorder %s6635_s10, %s6631_s7 }
  0x48   : > { %p719_p4 = scmp.eq.s32.totalorder %s4737_s16, 1  ;;  %p4738_p7 = scmp.ge.s32.totalorder %s6643_s15, 1 }
  0x49   : > { %s6898_s26 = scalar_select %p700_p1, %s6639_s11, %s702_s22  }
  0x4a   : > { %p6900_p5 = por %p713_p2, %p712_p0  ;;  %p6904_p6 = por %p719_p4, %p718_p3 }
  0x4b   : > { %7665 = sst [smem:[#allocation61_spill]] %s6898_s26  ;;  %p726_p8 = scmp.lt.s32.totalorder %s6643_s15, 3 }
  0x4c   : > { %s7666_s28 = scalar_select %p6900_p5, 1, 0 }
  0x4d   : > { %s7667_s1 = scalar_select %p6904_p6, 1, 0 }
  0x4e   : > { %p7618_p9 = scmp.eq.s32.totalorder %s6883_s0, 0  ;;  %p6911_p10 = pnand %p4738_p7, %p726_p8 }
  0x4f   : > { %7668 = sst [smem:[#allocation62_spill]] %s7667_s1  ;;  %s6674_s16 = smov [#allocation5]  }
  0x50   : > { %s7669_s2 = scalar_select %p6911_p10, 1, 0 }
  0x51   : > { %p5804_p11 = pneg %p6911_p10  ;;  %s757_s22 = sshll.u32 %s6674_s16, 4  ;;  %s6917_s22 = int_to_ptr.vmem [resolvable:$true] %s757_s22 }
  0x52   : > { %s6675_s26 = smov [#allocation8]   ;;  %s6676_s18 = smov [#allocation11]  }
  0x53   : > { %p6921_p12 = pnand %p7618_p9, %p5804_p11  ;;  %s783_s11 = sshll.u32 %s6675_s26, 4  ;;  %s6925_s11 = int_to_ptr.vmem [resolvable:$true] %s783_s11 }
  0x54   : > { %s6927_s1 = sshll.u32 %s6676_s18, 4  ;;  %s6097_s7 = scalar_lea.hbm %s7660_s21, 512  ;;  %s812_s1 = int_to_ptr.vmem [resolvable:$true] %s6927_s1 }
  0x55   : > { %p6098_p13 = scmp.ne.s32.totalorder %s7660_s21, %s6097_s7  ;;  %p6933_p0 = pneg %p6921_p12 }
  0x56   : > { %p6104_p3 = scmp.lt.u32.totalorder %s6097_s7, %s7660_s21 }
  0x57   : > { %p6100_p1 = pnand %p6933_p0, %p6098_p13 }
  0x59   : > { %p6101_p2 = pneg %p6100_p1 }
  0x5b   : > { %p6106_p4 = pnand %p6104_p3, %p6101_p2 }
  0x5d   : > { %6109 = shalt.err (!%p6106_p4)
}
  0x5e   : > { %s6110_s18 = scalar_lea.vmem %s6917_s22, 512  ;;  %p6118_p9 = scmp.lt.s32.totalorder %s6917_s22, %s6917_s22 }
  0x5f   : > { %p6111_p7 = scmp.ne.s32.totalorder %s6917_s22, %s6110_s18  ;;  %p6119_p6 = scmp.lt.s32.totalorder %s6110_s18, %s6110_s18 }
  0x61   : > { %p6113_p8 = pnand %p6111_p7, %p6933_p0  ;;  %p6120_p5 = por %p6119_p6, %p6118_p9 }
  0x63   : > { %p6114_p11 = pneg %p6113_p8 }
  0x65   : > { %p6121_p10 = pnand %p6120_p5, %p6114_p11 }
  0x67   : > { %6124 = shalt.err (!%p6121_p10)
}
  0x68   : > { %s7622_s26 = smov 128   ;;  %s7624_s7 = smov 8  }
  0x69   : > { %5810 = dma.hbm_to_vmem [thread:$0]  (!%p6921_p12), %s7660_s21, 512, %s6917_s22, [#allocation6], %s7622_s26, %s7622_s26, %s7624_s7  }
  0x6a   : > { %s6125_s15 = scalar_lea.hbm %s6745_s29, 512 }
  0x6b   : > { %p6126_p13 = scmp.ne.s32.totalorder %s6745_s29, %s6125_s15  ;;  %p6132_p9 = scmp.lt.u32.totalorder %s6125_s15, %s6745_s29 }
  0x6d   : > { %p6128_p6 = pnand %p6126_p13, %p6933_p0 }
  0x6f   : > { %p6129_p5 = pneg %p6128_p6 }
  0x71   : > { %p6134_p10 = pnand %p6132_p9, %p6129_p5 }
  0x73   : > { %6137 = shalt.err (!%p6134_p10)
}
  0x74   : > { %s6138_s18 = scalar_lea.vmem %s6925_s11, 512  ;;  %p6146_p4 = scmp.lt.s32.totalorder %s6925_s11, %s6925_s11 }
  0x75   : > { %p6139_p1 = scmp.ne.s32.totalorder %s6925_s11, %s6138_s18  ;;  %p6147_p7 = scmp.lt.s32.totalorder %s6138_s18, %s6138_s18 }
  0x77   : > { %p6141_p2 = pnand %p6139_p1, %p6933_p0  ;;  %p6148_p8 = por %p6147_p7, %p6146_p4 }
  0x79   : > { %p6142_p3 = pneg %p6141_p2 }
  0x7b   : > { %p6149_p11 = pnand %p6148_p8, %p6142_p3 }
  0x7d   : > { %6152 = shalt.err (!%p6149_p11)
}
  0x7e   : > { %5816 = dma.hbm_to_vmem [thread:$0]  (!%p6921_p12), %s6745_s29, 512, %s6925_s11, [#allocation9], %s7622_s26, %s7622_s26, %s7624_s7  }
  0x7f   : > { %s6153_s15 = scalar_lea.hbm %s6760_s14, 16 }
  0x80   : > { %p6154_p13 = scmp.ne.s32.totalorder %s6760_s14, %s6153_s15  ;;  %p6160_p9 = scmp.lt.u32.totalorder %s6153_s15, %s6760_s14 }
  0x82   : > { %p6156_p6 = pnand %p6154_p13, %p6933_p0 }
  0x84   : > { %p6157_p5 = pneg %p6156_p6 }
  0x86   : > { %p6162_p10 = pnand %p6160_p9, %p6157_p5 }
  0x88   : > { %6165 = shalt.err (!%p6162_p10)
}
  0x89   : > { %s6166_s22 = scalar_lea.vmem %s812_s1, 16  ;;  %s6173_s18 = scalar_lea.vmem %s812_s1, 32 }
  0x8a   : > { %p6167_p1 = scmp.ne.s32.totalorder %s812_s1, %s6166_s22  ;;  %p6174_p4 = scmp.lt.s32.totalorder %s812_s1, %s812_s1 }
  0x8b   : > { %p6175_p7 = scmp.lt.s32.totalorder %s6173_s18, %s6166_s22 }
  0x8c   : > { %p6169_p2 = pnand %p6167_p1, %p6933_p0 }
  0x8d   : > { %p6176_p8 = por %p6175_p7, %p6174_p4 }
  0x8e   : > { %p6170_p3 = pneg %p6169_p2 }
  0x90   : > { %p6177_p11 = pnand %p6176_p8, %p6170_p3 }
  0x92   : > { %6180 = shalt.err (!%p6177_p11)
}
  0x93   : > { %5822 = dma.hbm_to_vmem [thread:$0]  (!%p6921_p12), %s6760_s14, 16, %s812_s1, [#allocation12]  }
  0x94   : > { %s6679_s11 = smov [#allocation14]   ;;  %s6680_s26 = smov [#allocation17]  }
  0x95   : > { %s835_s15 = sshll.u32 %s6679_s11, 4  ;;  %s860_s7 = sshll.u32 %s6680_s26, 4  ;;  %s836_s15 = int_to_ptr.vmem [resolvable:$true] %s835_s15  ;;  %s861_s7 = int_to_ptr.vmem [resolvable:$true] %s860_s7 }
  0x96   : > { %s6181_s21 = scalar_lea.hbm %s6770_s24, 16 }
  0x97   : > { %p6182_p13 = scmp.ne.s32.totalorder %s6770_s24, %s6181_s21  ;;  %p6188_p9 = scmp.lt.u32.totalorder %s6181_s21, %s6770_s24 }
  0x99   : > { %p6184_p6 = pnand %p6182_p13, %p6933_p0 }
  0x9b   : > { %p6185_p5 = pneg %p6184_p6 }
  0x9d   : > { %p6190_p10 = pnand %p6188_p9, %p6185_p5 }
  0x9f   : > { %6193 = shalt.err (!%p6190_p10)
}
  0xa0   : > { %s6194_s22 = scalar_lea.vmem %s836_s15, 16  ;;  %s6201_s1 = scalar_lea.vmem %s836_s15, 32 }
  0xa1   : > { %p6195_p1 = scmp.ne.s32.totalorder %s836_s15, %s6194_s22  ;;  %p6202_p4 = scmp.lt.s32.totalorder %s836_s15, %s836_s15 }
  0xa2   : > { %p6203_p7 = scmp.lt.s32.totalorder %s6201_s1, %s6194_s22 }
  0xa3   : > { %p6197_p2 = pnand %p6195_p1, %p6933_p0 }
  0xa4   : > { %p6204_p8 = por %p6203_p7, %p6202_p4 }
  0xa5   : > { %p6198_p3 = pneg %p6197_p2 }
  0xa7   : > { %p6205_p11 = pnand %p6204_p8, %p6198_p3 }
  0xa9   : > { %6208 = shalt.err (!%p6205_p11)
}
  0xaa   : > { %5828 = dma.hbm_to_vmem [thread:$0]  (!%p6921_p12), %s6770_s24, 16, %s836_s15, [#allocation15]  }
  0xab   : > { %s6209_s21 = scalar_lea.hbm %s7659_s12, 32 }
  0xac   : > { %p6210_p13 = scmp.ne.s32.totalorder %s7659_s12, %s6209_s21  ;;  %p6216_p9 = scmp.lt.u32.totalorder %s6209_s21, %s7659_s12 }
  0xae   : > { %p6212_p6 = pnand %p6210_p13, %p6933_p0 }
  0xb0   : > { %p6213_p5 = pneg %p6212_p6 }
  0xb2   : > { %p6218_p10 = pnand %p6216_p9, %p6213_p5 }
  0xb4   : > { %6221 = shalt.err (!%p6218_p10)
}
  0xb5   : > { %s6222_s26 = scalar_lea.vmem %s861_s7, 32  ;;  %p6230_p4 = scmp.lt.s32.totalorder %s861_s7, %s861_s7 }
  0xb6   : > { %p6223_p1 = scmp.ne.s32.totalorder %s861_s7, %s6222_s26  ;;  %p6231_p7 = scmp.lt.s32.totalorder %s6222_s26, %s6222_s26 }
  0xb8   : > { %p6225_p2 = pnand %p6223_p1, %p6933_p0  ;;  %p6232_p8 = por %p6231_p7, %p6230_p4 }
  0xba   : > { %p6226_p3 = pneg %p6225_p2 }
  0xbc   : > { %p6233_p11 = pnand %p6232_p8, %p6226_p3 }
  0xbe   : > { %6236 = shalt.err (!%p6233_p11)
}
  0xbf   : > { %5834 = dma.hbm_to_vmem [thread:$0]  (!%p6921_p12), %s7659_s12, 32, %s861_s7, [#allocation18]  }
  0xc0   : > { %s6681_s18 = smov [#allocation20]   ;;  %s6237_s15 = scalar_lea.hbm %s7657_s4, 6144 }
  0xc1   : > { %s886_s11 = sshll.u32 %s6681_s18, 4  ;;  %p6238_p13 = scmp.ne.s32.totalorder %s7657_s4, %s6237_s15  ;;  %s887_s11 = int_to_ptr.vmem [resolvable:$true] %s886_s11 }
  0xc2   : > { %p6244_p9 = scmp.lt.u32.totalorder %s6237_s15, %s7657_s4 }
  0xc3   : > { %p6240_p6 = pnand %p6238_p13, %p6933_p0 }
  0xc5   : > { %p6241_p5 = pneg %p6240_p6 }
  0xc7   : > { %p6246_p10 = pnand %p6244_p9, %p6241_p5 }
  0xc9   : > { %6249 = shalt.err (!%p6246_p10)
}
  0xca   : > { %s6250_s22 = scalar_lea.vmem %s887_s11, 6144  ;;  %p6258_p4 = scmp.lt.s32.totalorder %s887_s11, %s887_s11 }
  0xcb   : > { %p6251_p1 = scmp.ne.s32.totalorder %s887_s11, %s6250_s22  ;;  %p6259_p7 = scmp.lt.s32.totalorder %s6250_s22, %s6250_s22 }
  0xcd   : > { %p6253_p2 = pnand %p6251_p1, %p6933_p0  ;;  %p6260_p8 = por %p6259_p7, %p6258_p4 }
  0xcf   : > { %p6254_p3 = pneg %p6253_p2 }
  0xd1   : > { %p6261_p11 = pnand %p6260_p8, %p6254_p3 }
  0xd3   : > { %6264 = shalt.err (!%p6261_p11)
}
  0xd4   : > { %s7672_s7 = smov 8   ;;  %s7673_s1 = smov 128  }
  0xd5   : > { %5840 = dma.hbm_to_vmem [thread:$0]  (!%p6921_p12), %s7657_s4, 6144, %s887_s11, [#allocation21], %s7673_s1, %s7673_s1, %s7672_s7  }
  0xd6   : > { %s6682_s21 = smov [#allocation23]   ;;  %s6683_s18 = smov [#allocation2]  }
  0xd7   : > { %s912_s26 = sshll.u32 %s6682_s21, 4  ;;  %s744_s15 = sshll.u32 %s6683_s18, 4  ;;  %s913_s26 = int_to_ptr.vmem [resolvable:$true] %s912_s26  ;;  %s7015_s15 = int_to_ptr.vmem [resolvable:$true] %s744_s15 }
  0xd8   : > { %s6265_s22 = scalar_lea.hbm %s7658_s3, 64 }
  0xd9   : > { %p6266_p13 = scmp.ne.s32.totalorder %s7658_s3, %s6265_s22  ;;  %p6272_p9 = scmp.lt.u32.totalorder %s6265_s22, %s7658_s3 }
  0xdb   : > { %p6268_p6 = pnand %p6266_p13, %p6933_p0 }
  0xdd   : > { %p6269_p5 = pneg %p6268_p6 }
  0xdf   : > { %p6274_p10 = pnand %p6272_p9, %p6269_p5 }
  0xe1   : > { %6277 = shalt.err (!%p6274_p10)
}
  0xe2   : > { %s6278_s12 = scalar_lea.vmem %s913_s26, 64  ;;  %p6286_p4 = scmp.lt.s32.totalorder %s913_s26, %s913_s26 }
  0xe3   : > { %p6279_p1 = scmp.ne.s32.totalorder %s913_s26, %s6278_s12  ;;  %p6287_p7 = scmp.lt.s32.totalorder %s6278_s12, %s6278_s12 }
  0xe5   : > { %p6281_p2 = pnand %p6279_p1, %p6933_p0  ;;  %p6288_p8 = por %p6287_p7, %p6286_p4 }
  0xe7   : > { %p6282_p3 = pneg %p6281_p2 }
  0xe9   : > { %p6289_p11 = pnand %p6288_p8, %p6282_p3 }
  0xeb   : > { %6292 = shalt.err (!%p6289_p11)
}
  0xec   : > { %s7628_s11 = smov 16   ;;  %s7630_s21 = smov 1  }
  0xed   : > { %5846 = dma.hbm_to_vmem [thread:$0]  (!%p6921_p12), %s7658_s3, 64, %s913_s26, [#allocation24], %s7628_s11, %s7628_s11, %s7630_s21  }
  0xee   : > { %s6293_s18 = scalar_lea.hbm %s6730_s17, 256 }
  0xef   : > { %p6294_p13 = scmp.ne.s32.totalorder %s6730_s17, %s6293_s18  ;;  %p6300_p9 = scmp.lt.u32.totalorder %s6293_s18, %s6730_s17 }
  0xf1   : > { %p6296_p6 = pnand %p6294_p13, %p6933_p0 }
  0xf3   : > { %p6297_p5 = pneg %p6296_p6 }
  0xf5   : > { %p6302_p10 = pnand %p6300_p9, %p6297_p5 }
  0xf7   : > { %6305 = shalt.err (!%p6302_p10)
}
  0xf8   : > { %s6306_s12 = scalar_lea.vmem %s7015_s15, 256  ;;  %p6314_p4 = scmp.lt.s32.totalorder %s7015_s15, %s7015_s15 }
  0xf9   : > { %p6307_p1 = scmp.ne.s32.totalorder %s7015_s15, %s6306_s12  ;;  %p6315_p7 = scmp.lt.s32.totalorder %s6306_s12, %s6306_s12 }
  0xfb   : > { %p6309_p2 = pnand %p6307_p1, %p6933_p0  ;;  %p6316_p8 = por %p6315_p7, %p6314_p4 }
  0xfd   : > { %p6310_p3 = pneg %p6309_p2 }
  0xff   : > { %p6317_p11 = pnand %p6316_p8, %p6310_p3 }
 0x101   : > { %6320 = shalt.err (!%p6317_p11)
}
 0x102   : > { %5807 = dma.hbm_to_vmem [thread:$0]  (!%p6921_p12), %s6730_s17, 256, %s7015_s15, [#allocation3], %s7673_s1, %s7673_s1, %s7672_s7  }
 0x103   : > { %s6686_s26 = smov [#allocation7]   ;;  %s6687_s18 = smov [#allocation10]  }
 0x104   : > { %s770_s22 = sshll.u32 %s6686_s26, 4  ;;  %s800_s11 = sshll.u32 %s6687_s18, 4  ;;  %s771_s22 = int_to_ptr.vmem [resolvable:$true] %s770_s22  ;;  %s7048_s11 = int_to_ptr.vmem [resolvable:$true] %s800_s11 }
 0x105   : > { %s6321_s12 = scalar_lea.hbm %s6740_s25, 512 }
 0x106   : > { %p6322_p13 = scmp.ne.s32.totalorder %s6740_s25, %s6321_s12  ;;  %p6328_p9 = scmp.lt.u32.totalorder %s6321_s12, %s6740_s25 }
 0x108   : > { %p6324_p6 = pnand %p6322_p13, %p6933_p0 }
 0x10a   : > { %p6325_p5 = pneg %p6324_p6 }
 0x10c   : > { %p6330_p10 = pnand %p6328_p9, %p6325_p5 }
 0x10e   : > { %6333 = shalt.err (!%p6330_p10)
}
 0x10f   : > { %s6334_s21 = scalar_lea.vmem %s771_s22, 512  ;;  %p6342_p4 = scmp.lt.s32.totalorder %s771_s22, %s771_s22 }
 0x110   : > { %p6335_p1 = scmp.ne.s32.totalorder %s771_s22, %s6334_s21  ;;  %p6343_p7 = scmp.lt.s32.totalorder %s6334_s21, %s6334_s21 }
 0x112   : > { %p6337_p2 = pnand %p6335_p1, %p6933_p0  ;;  %p6344_p8 = por %p6343_p7, %p6342_p4 }
 0x114   : > { %p6338_p3 = pneg %p6337_p2 }
 0x116   : > { %p6345_p11 = pnand %p6344_p8, %p6338_p3 }
 0x118   : > { %6348 = shalt.err (!%p6345_p11)
}
 0x119   : > { %5813 = dma.hbm_to_vmem [thread:$0]  (!%p6921_p12), %s6740_s25, 512, %s771_s22, [#allocation6], %s7673_s1, %s7673_s1, %s7672_s7  }
 0x11a   : > { %s6349_s15 = scalar_lea.hbm %s6755_s8, 16 }
 0x11b   : > { %p6350_p13 = scmp.ne.s32.totalorder %s6755_s8, %s6349_s15  ;;  %p6356_p9 = scmp.lt.u32.totalorder %s6349_s15, %s6755_s8 }
 0x11d   : > { %p6352_p6 = pnand %p6350_p13, %p6933_p0 }
 0x11f   : > { %p6353_p5 = pneg %p6352_p6 }
 0x121   : > { %p6358_p10 = pnand %p6356_p9, %p6353_p5 }
 0x123   : > { %6361 = shalt.err (!%p6358_p10)
}
 0x124   : > { %s6362_s21 = scalar_lea.vmem %s7048_s11, 16  ;;  %s6369_s26 = scalar_lea.vmem %s7048_s11, 32 }
 0x125   : > { %p6363_p1 = scmp.ne.s32.totalorder %s7048_s11, %s6362_s21  ;;  %p6370_p4 = scmp.lt.s32.totalorder %s7048_s11, %s7048_s11 }
 0x126   : > { %p6371_p7 = scmp.lt.s32.totalorder %s6369_s26, %s6362_s21 }
 0x127   : > { %p6365_p2 = pnand %p6363_p1, %p6933_p0 }
 0x128   : > { %p6372_p8 = por %p6371_p7, %p6370_p4 }
 0x129   : > { %p6366_p3 = pneg %p6365_p2 }
 0x12b   : > { %p6373_p11 = pnand %p6372_p8, %p6366_p3 }
 0x12d   : > { %6376 = shalt.err (!%p6373_p11)
}
 0x12e   : > { %5819 = dma.hbm_to_vmem [thread:$0]  (!%p6921_p12), %s6755_s8, 16, %s7048_s11, [#allocation9]  }
 0x12f   : > { %s6688_s22 = smov [#allocation13]   ;;  %s6689_s12 = smov [#allocation16]  }
 0x130   : > { %s821_s18 = sshll.u32 %s6688_s22, 4  ;;  %s846_s15 = sshll.u32 %s6689_s12, 4  ;;  %s822_s18 = int_to_ptr.vmem [resolvable:$true] %s821_s18  ;;  %s7079_s15 = int_to_ptr.vmem [resolvable:$true] %s846_s15 }
 0x131   : > { %s6377_s21 = scalar_lea.hbm %s6765_s19, 512 }
 0x132   : > { %p6378_p13 = scmp.ne.s32.totalorder %s6765_s19, %s6377_s21  ;;  %p6384_p9 = scmp.lt.u32.totalorder %s6377_s21, %s6765_s19 }
 0x134   : > { %p6380_p6 = pnand %p6378_p13, %p6933_p0 }
 0x136   : > { %p6381_p5 = pneg %p6380_p6 }
 0x138   : > { %p6386_p10 = pnand %p6384_p9, %p6381_p5 }
 0x13a   : > { %6389 = shalt.err (!%p6386_p10)
}
 0x13b   : > { %s6390_s26 = scalar_lea.vmem %s822_s18, 512  ;;  %p6398_p4 = scmp.lt.s32.totalorder %s822_s18, %s822_s18 }
 0x13c   : > { %p6391_p1 = scmp.ne.s32.totalorder %s822_s18, %s6390_s26  ;;  %p6399_p7 = scmp.lt.s32.totalorder %s6390_s26, %s6390_s26 }
 0x13e   : > { %p6393_p2 = pnand %p6391_p1, %p6933_p0  ;;  %p6400_p8 = por %p6399_p7, %p6398_p4 }
 0x140   : > { %p6394_p3 = pneg %p6393_p2 }
 0x142   : > { %p6401_p11 = pnand %p6400_p8, %p6394_p3 }
 0x144   : > { %6404 = shalt.err (!%p6401_p11)
}
 0x145   : > { %5825 = dma.hbm_to_vmem [thread:$0]  (!%p6921_p12), %s6765_s19, 512, %s822_s18, [#allocation12], %s7673_s1, %s7673_s1, %s7672_s7  }
 0x146   : > { %s6405_s11 = scalar_lea.hbm %s6775_s30, 16 }
 0x147   : > { %p6406_p13 = scmp.ne.s32.totalorder %s6775_s30, %s6405_s11  ;;  %p6412_p9 = scmp.lt.u32.totalorder %s6405_s11, %s6775_s30 }
 0x149   : > { %p6408_p6 = pnand %p6406_p13, %p6933_p0 }
 0x14b   : > { %p6409_p5 = pneg %p6408_p6 }
 0x14d   : > { %p6414_p10 = pnand %p6412_p9, %p6409_p5 }
 0x14f   : > { %6417 = shalt.err (!%p6414_p10)
}
 0x150   : > { %s6418_s22 = scalar_lea.vmem %s7079_s15, 16  ;;  %s6425_s12 = scalar_lea.vmem %s7079_s15, 32 }
 0x151   : > { %p6419_p1 = scmp.ne.s32.totalorder %s7079_s15, %s6418_s22  ;;  %p6426_p4 = scmp.lt.s32.totalorder %s7079_s15, %s7079_s15 }
 0x152   : > { %p6427_p7 = scmp.lt.s32.totalorder %s6425_s12, %s6418_s22 }
 0x153   : > { %p6421_p2 = pnand %p6419_p1, %p6933_p0 }
 0x154   : > { %p6428_p8 = por %p6427_p7, %p6426_p4 }
 0x155   : > { %p6422_p3 = pneg %p6421_p2 }
 0x157   : > { %p6429_p11 = pnand %p6428_p8, %p6422_p3 }
 0x159   : > { %6432 = shalt.err (!%p6429_p11)
}
 0x15a   : > { %5831 = dma.hbm_to_vmem [thread:$0]  (!%p6921_p12), %s6775_s30, 16, %s7079_s15, [#allocation15]  }
 0x15b   : > { %s6690_s18 = smov [#allocation19]   ;;  %s6691_s26 = smov [#allocation22]  }
 0x15c   : > { %s870_s21 = sshll.u32 %s6690_s18, 4  ;;  %s899_s11 = sshll.u32 %s6691_s26, 4  ;;  %s871_s21 = int_to_ptr.vmem [resolvable:$true] %s870_s21  ;;  %s7110_s11 = int_to_ptr.vmem [resolvable:$true] %s899_s11 }
 0x15d   : > { %s6433_s22 = scalar_lea.hbm %s6790_s20, 256 }
 0x15e   : > { %p6434_p13 = scmp.ne.s32.totalorder %s6790_s20, %s6433_s22  ;;  %p6440_p9 = scmp.lt.u32.totalorder %s6433_s22, %s6790_s20 }
 0x160   : > { %p6436_p6 = pnand %p6434_p13, %p6933_p0 }
 0x162   : > { %p6437_p5 = pneg %p6436_p6 }
 0x164   : > { %p6442_p10 = pnand %p6440_p9, %p6437_p5 }
 0x166   : > { %6445 = shalt.err (!%p6442_p10)
}
 0x167   : > { %s6446_s12 = scalar_lea.vmem %s871_s21, 256  ;;  %p6454_p4 = scmp.lt.s32.totalorder %s871_s21, %s871_s21 }
 0x168   : > { %p6447_p1 = scmp.ne.s32.totalorder %s871_s21, %s6446_s12  ;;  %p6455_p7 = scmp.lt.s32.totalorder %s6446_s12, %s6446_s12 }
 0x16a   : > { %p6449_p2 = pnand %p6447_p1, %p6933_p0  ;;  %p6456_p8 = por %p6455_p7, %p6454_p4 }
 0x16c   : > { %p6450_p3 = pneg %p6449_p2 }
 0x16e   : > { %p6457_p11 = pnand %p6456_p8, %p6450_p3 }
 0x170   : > { %6460 = shalt.err (!%p6457_p11)
}
 0x171   : > { %5837 = dma.hbm_to_vmem [thread:$0]  (!%p6921_p12), %s6790_s20, 256, %s871_s21, [#allocation18], %s7673_s1, %s7673_s1, %s7672_s7  }
 0x172   : > { %s6461_s15 = scalar_lea.hbm %s7656_s6, 64 }
 0x173   : > { %p6462_p13 = scmp.ne.s32.totalorder %s7656_s6, %s6461_s15  ;;  %p6468_p9 = scmp.lt.u32.totalorder %s6461_s15, %s7656_s6 }
 0x175   : > { %p6464_p6 = pnand %p6462_p13, %p6933_p0 }
 0x177   : > { %p6465_p5 = pneg %p6464_p6 }
 0x179   : > { %p6470_p10 = pnand %p6468_p9, %p6465_p5 }
 0x17b   : > { %6473 = shalt.err (!%p6470_p10)
}
 0x17c   : > { %s6474_s18 = scalar_lea.vmem %s7110_s11, 64  ;;  %p6482_p4 = scmp.lt.s32.totalorder %s7110_s11, %s7110_s11 }
 0x17d   : > { %p6475_p1 = scmp.ne.s32.totalorder %s7110_s11, %s6474_s18  ;;  %p6483_p7 = scmp.lt.s32.totalorder %s6474_s18, %s6474_s18 }
 0x17f   : > { %p6477_p2 = pnand %p6475_p1, %p6933_p0  ;;  %p6484_p8 = por %p6483_p7, %p6482_p4 }
 0x181   : > { %p6478_p3 = pneg %p6477_p2 }
 0x183   : > { %p6485_p11 = pnand %p6484_p8, %p6478_p3 }
 0x185   : > { %6488 = shalt.err (!%p6485_p11)
}
 0x186   : > { %s7674_s7 = smov 1   ;;  %s7675_s1 = smov 16  }
 0x187   : > { %s7676_s21 = sld [smem:[#allocation50_spill]]  ;;  %s6692_s26 = smov [#allocation25]  }
 0x188   : > { %5843 = dma.hbm_to_vmem [thread:$0]  (!%p6921_p12), %s7656_s6, 64, %s7110_s11, [#allocation21], %s7675_s1, %s7675_s1, %s7674_s7  }
 0x189   : > { %s925_s22 = sshll.u32 %s6692_s26, 4  ;;  %s6693_s12 = smov [#allocation26]   ;;  %s926_s22 = int_to_ptr.vmem [resolvable:$true] %s925_s22 }
 0x18a   : > { %s942_s15 = sshll.u32 %s6693_s12, 4  ;;  %s7143_s15 = int_to_ptr.vmem [resolvable:$true] %s942_s15 }
 0x18d   : > { %s6489_s18 = scalar_lea.hbm %s7676_s21, 64 }
 0x18e   : > { %p6490_p13 = scmp.ne.s32.totalorder %s7676_s21, %s6489_s18  ;;  %p6496_p9 = scmp.lt.u32.totalorder %s6489_s18, %s7676_s21 }
 0x190   : > { %p6492_p6 = pnand %p6490_p13, %p6933_p0 }
 0x192   : > { %p6493_p5 = pneg %p6492_p6 }
 0x194   : > { %p6498_p10 = pnand %p6496_p9, %p6493_p5 }
 0x196   : > { %6501 = shalt.err (!%p6498_p10)
}
 0x197   : > { %s6502_s3 = scalar_lea.vmem %s926_s22, 64  ;;  %p6510_p4 = scmp.lt.s32.totalorder %s926_s22, %s926_s22 }
 0x198   : > { %p6503_p1 = scmp.ne.s32.totalorder %s926_s22, %s6502_s3  ;;  %p6511_p7 = scmp.lt.s32.totalorder %s6502_s3, %s6502_s3 }
 0x19a   : > { %p6505_p2 = pnand %p6503_p1, %p6933_p0  ;;  %p6512_p8 = por %p6511_p7, %p6510_p4 }
 0x19c   : > { %p6506_p3 = pneg %p6505_p2 }
 0x19e   : > { %p6513_p11 = pnand %p6512_p8, %p6506_p3 }
 0x1a0   : > { %6516 = shalt.err (!%p6513_p11)
}
 0x1a1   : > { %s7677_s11 = sld [smem:[#allocation52_spill]] }
 0x1a2   : > { %5849 = dma.hbm_to_vmem [thread:$0]  (!%p6921_p12), %s7676_s21, 64, %s926_s22, [#allocation24], %s7675_s1, %s7675_s1, %s7674_s7  }
 0x1a7   : > { %s7678_s26 = smov %s7677_s11  ;;  %s6517_s12 = scalar_lea.hbm %s7677_s11, 16 }
 0x1a8   : > { %p6518_p13 = scmp.ne.s32.totalorder %s7678_s26, %s6517_s12  ;;  %p6524_p9 = scmp.lt.u32.totalorder %s6517_s12, %s7678_s26 }
 0x1aa   : > { %p6520_p6 = pnand %p6518_p13, %p6933_p0 }
 0x1ac   : > { %p6521_p5 = pneg %p6520_p6 }
 0x1ae   : > { %p6526_p10 = pnand %p6524_p9, %p6521_p5 }
 0x1b0   : > { %6529 = shalt.err (!%p6526_p10)
}
 0x1b1   : > { %s6530_s3 = scalar_lea.vmem %s7143_s15, 16  ;;  %s6537_s18 = scalar_lea.vmem %s7143_s15, 32 }
 0x1b2   : > { %p6531_p1 = scmp.ne.s32.totalorder %s7143_s15, %s6530_s3  ;;  %p6538_p4 = scmp.lt.s32.totalorder %s7143_s15, %s7143_s15 }
 0x1b3   : > { %p6539_p7 = scmp.lt.s32.totalorder %s6537_s18, %s6530_s3 }
 0x1b4   : > { %p6533_p2 = pnand %p6531_p1, %p6933_p0 }
 0x1b5   : > { %p6540_p8 = por %p6539_p7, %p6538_p4 }
 0x1b6   : > { %p6534_p3 = pneg %p6533_p2 }
 0x1b8   : > { %p6541_p11 = pnand %p6540_p8, %p6534_p3 }
 0x1ba   : > { %6544 = shalt.err (!%p6541_p11)
}
 0x1bb   : > { %5852 = dma.hbm_to_vmem [thread:$0]  (!%p6921_p12), %s7678_s26, 16, %s7143_s15, [#allocation27]  }
 0x1bc   : > { %p7679_p13 = scmp.ne.s32.totalorder %s7669_s2, 0 }
 0x1bd   : > { %p7680_p6 = scmp.eq.s32.totalorder (!%p7679_p13), %s6883_s0, 0 }
 0x1be   : > { %981 = sbr.rel (%p7679_p13) target bundleno = 3329 (0xd01), region = 136 }
 0x1c5   : > { %6590 = dma.done.wait (%p7680_p6), [#allocation3], 256   ;;  %p7681_p0 = pmov %p7680_p6 }
 0x1c7   : > { %6592 = vsyncadd (%p7681_p0), [#allocation3], 4294967040  ;;  %p7682_p5 = pmov %p7681_p0 }
 0x1c8   : > { %p7683_p9 = pmov %p7681_p0 }
 0x1c9   : > { %6594 = dma.done.wait (%p7682_p5), [#allocation6], 1024  }
 0x1ca   : > { %6596 = vsyncadd (%p7683_p9), [#allocation6], 4294966272  ;;  %p7684_p10 = pmov %p7681_p0 }
 0x1cb   : > { %p7685_p12 = pmov %p7681_p0 }
 0x1cc   : > { %6598 = dma.done.wait (%p7684_p10), [#allocation9], 528  }
 0x1cd   : > { %6600 = vsyncadd (%p7685_p12), [#allocation9], 4294966768  ;;  %p7686_p1 = pmov %p7681_p0 }
 0x1ce   : > { %p7687_p2 = pmov %p7681_p0 }
 0x1cf   : > { %6602 = dma.done.wait (%p7686_p1), [#allocation12], 528  }
 0x1d0   : > { %6604 = vsyncadd (%p7687_p2), [#allocation12], 4294966768  ;;  %p7688_p3 = pmov %p7681_p0 }
 0x1d1   : > { %p7689_p4 = pmov %p7681_p0 }
 0x1d2   : > { %6606 = dma.done.wait (%p7688_p3), [#allocation15], 32  }
 0x1d3   : > { %6608 = vsyncadd (%p7689_p4), [#allocation15], 4294967264  ;;  %p7690_p7 = pmov %p7681_p0 }
 0x1d4   : > { %p7691_p8 = pmov %p7681_p0 }
 0x1d5   : > { %6610 = dma.done.wait (%p7690_p7), [#allocation18], 288  }
 0x1d6   : > { %6612 = vsyncadd (%p7691_p8), [#allocation18], 4294967008  ;;  %p7692_p11 = pmov %p7681_p0 }
 0x1d7   : > { %p7693_p13 = pmov %p7681_p0 }
 0x1d8   : > { %6614 = dma.done.wait (%p7692_p11), [#allocation21], 6208  }
 0x1d9   : > { %6616 = vsyncadd (%p7693_p13), [#allocation21], 4294961088  ;;  %p7694_p6 = pmov %p7681_p0 }
 0x1db   : > { %6618 = dma.done.wait (%p7694_p6), [#allocation24], 128  }
 0x1dc   : > { %6620 = vsyncadd (%p7681_p0), [#allocation24], 4294967168  ;;  %p7695_p5 = pmov %p7681_p0 }
 0x1dd   : > { %p7696_p9 = pmov %p7681_p0 }
 0x1de   : > { %6622 = dma.done.wait (%p7695_p5), [#allocation27], 16  }
 0x1df   : > { %6624 = vsyncadd (%p7696_p9), [#allocation27], 4294967280  ;;  %s7697_s2 = sld [smem:[#allocation39_spill]]  ;;  %s7698_s23 = sld [smem:[#allocation40_spill]]  ;;  %v1225_v0 = vld [vmem:[#allocation7] sm:$0xff]  ;;  %v1226_v1 = vld [vmem:[#allocation7 + $0x8] sm:$0xff] }
 0x1e0   : > { %p1117_p10 = scmp.lt.s32.totalorder %s6883_s0, 1  ;;  %v1227_v2 = vld [vmem:[#allocation7 + $0x10] sm:$0xff]  ;;  %vm1143_vm0 = vcmask 261120   ;;  %v5460_v3 = vpack.c.bf16 %v1226_v1, %v1225_v0  ;;  %v1228_v4 = vld [vmem:[#allocation7 + $0x18] sm:$0xff]  ;;  %v1132_v5 = vld [vmem:[#allocation5] sm:$0xff]  ;;  %s7699_s22 = sld [smem:[#allocation41_spill]] }
 0x1e1   : > { %v1133_v6 = vld [vmem:[#allocation5 + $0x8] sm:$0xff]  ;;  %v5464_v7 = vpack.c.bf16 %v1228_v4, %v1227_v2  ;;  %v1134_v10 = vld [vmem:[#allocation5 + $0x10] sm:$0xff]  ;;  %v1135_v11 = vld [vmem:[#allocation5 + $0x18] sm:$0xff]  ;;  %s7700_s15 = sld [smem:[#allocation43_spill]]  ;;  %vm1436_vm1 = vcmask 64512   ;;  %s6694_s11 = smov 112  }
 0x1e2   : > { %s1118_s16 = scalar_select %p1117_p10, %s6883_s0, 1  ;;  %v5452_v8 = vpack.c.bf16 %v1133_v6, %v1132_v5  ;;  %5461 = vmatprep.subr.bf16.mxu1 %v5460_v3  ;;  %v5456_v12 = vpack.c.bf16 %v1135_v11, %v1134_v10  ;;  %v1333_v18 = vld [vmem:[#allocation8] sm:$0xff]  ;;  %v1334_v19 = vld [vmem:[#allocation8 + $0x8] sm:$0xff]  ;;  %v1335_v20 = vld [vmem:[#allocation8 + $0x10] sm:$0xff]  ;;  %vm6702_vm3 = vmmov 0   ;;  %vm2501_vm9 = vcmask 1041408  }
 0x1e3   : > { %5463 = vmatpush3.bf16.msra.mxu1 %v5460_v3  ;;  %v5468_v21 = vpack.c.bf16 %v1334_v19, %v1333_v18  ;;  %v1336_v22 = vld [vmem:[#allocation8 + $0x18] sm:$0xff]  ;;  %v4779_v26 = vld [vmem:[#allocation10] ss:$0 sm:$0xff]  ;;  %vm7232_vm2 = vmpackc.low %vm1436_vm1, %vm1436_vm1  ;;  %s6695_s12 = smov 120   ;;  %s6696_s3 = smov 104   ;;  %vm2497_vm10 = vcmask 15360  }
 0x1e4   : > { %s4913_s7 = sshll.u32 %s1118_s16, 4  ;;  %5453 = vmatprep.subr.bf16.mxu0 %v5452_v8  ;;  %5465 = vmatprep.subr.bf16.mxu1 %v5464_v7  ;;  %v5472_v23 = vpack.c.bf16 %v1336_v22, %v1335_v20  ;;  %s6697_s18 = smov 96   ;;  %vm2609_vm11 = vcmask 130048  }
 0x1e5   : > { %s1121_s1 = scalar_lea.vmem %s7697_s2, %s4913_s7  ;;  %v1124_v9 = vld [vmem:[%s7698_s23] sm:$0xff]  ;;  %5455 = vmatpush3.bf16.msra.mxu0 %v5452_v8  ;;  %v1125_v14 = vld [vmem:[%s7698_s23 + $0x8] sm:$0xff]  ;;  %v1126_v15 = vld [vmem:[%s7698_s23 + $0x10] sm:$0xff]  ;;  %s6698_s2 = smov 64  }
 0x1e6   : > { %5123 = vmatprep.mubr.msk.f32.mxu1 %vm1143_vm0, %v1124_v9  ;;  %v1122_v13 = vld [vmem:[%s1121_s1] sm:$0xff]  ;;  %5457 = vmatprep.subr.bf16.mxu0 %v5456_v12  ;;  %v1123_v16 = vld [vmem:[%s1121_s1 + $0x8] sm:$0xff]  ;;  %v1127_v17 = vld [vmem:[%s7698_s23 + $0x18] sm:$0xff]  ;;  %s7703_s16 = sld [smem:[#allocation46_spill]]  ;;  %s6699_s7 = smov 32  }
 0x1e7   : > { %5112 = vmatprep.mubr.msk.f32.mxu0 %vm1143_vm0, %v1122_v13  ;;  %5467 = vmatpush3.bf16.msra.mxu1 %v5464_v7  ;;  %v1128_v24 = vld [vmem:[%s7699_s22] sm:$0xff]  ;;  %v1129_v25 = vld [vmem:[%s7699_s22 + $0x8] sm:$0xff]  ;;  %v1130_v42 = vld [vmem:[%s7699_s22 + $0x10] sm:$0xff]  ;;  %s7704_s1 = sld [smem:[#allocation44_spill]]  ;;  %s7711_s5 = sld [smem:[#allocation56_spill]] }
 0x1e8   : > { %v4776_v28 = vld [vmem:[%s7700_s15] ss:$0 sm:$0xff]  ;;  %v1131_v45 = vld [vmem:[%s7699_s22 + $0x18] sm:$0xff]  ;;  %s7705_s15 = sld [smem:[#allocation51_spill]]  ;;  %p7713_p1 = scmp.ne.s32.totalorder %s7666_s28, 0 }
 0x1e9   : > { %5459 = vmatpush3.bf16.msra.mxu0 %v5456_v12 }
 0x1ea   : > { %5124 = vmatmul.mubr.msk.f32.vlgmr.msra.gmra.mrb[0].mxu1 %vm1143_vm0, %v1125_v14  ;;  %5469 = vmatprep.subr.bf16.mxu0 %v5468_v21 }
 0x1eb   : > { %5126 = vmatprep.mubr.msk.f32.mxu1 %vm1143_vm0, %v1126_v15 }
 0x1ec   : > { %5113 = vmatmul.mubr.msk.f32.vlgmr.msra.gmra.mrb[0].mxu0 %vm1143_vm0, %v1123_v16 }
 0x1ed   : > { %5471 = vmatpush3.bf16.msra.mxu0 %v5468_v21  ;;  %5137 = vmatprep.mubr.msk.f32.mxu0 %vm1143_vm0, %v1128_v24 }
 0x1ee   : > { %5127 = vmatmul.mubr.msk.f32.gmra.mrb[2].mxu1 %vm1143_vm0, %v1127_v17  ;;  %5473 = vmatprep.subr.bf16.mxu0 %v5472_v23 }
 0x1f1   : > { %5475 = vmatpush3.bf16.msra.mxu0 %v5472_v23  ;;  %v1435_v23 = vld [vmem:[#allocation2 + $0x8] sm:$0xff] }
 0x1f4   : > { %5138 = vmatmul.mubr.msk.f32.vlgmr.msra.gmra.mrb[2].mxu0 %vm1143_vm0, %v1129_v25  ;;  %v1434_v25 = vld [vmem:[#allocation2] sm:$0xff] }
 0x1f5   : > { %5140 = vmatprep.mubr.msk.f32.mxu0 %vm1143_vm0, %v1130_v42 }
 0x1f8   : > { %5141 = vmatmul.mubr.msk.f32.gmra.mrb[4].mxu0 %vm1143_vm0, %v1131_v45 }
 0x2bd   : > { %v5125_v27 = vpop.f32.mrb[0].mxu1 }
 0x2be   : > { %v1320_v29 = vadd.f32 %v5125_v27, %v4779_v26  ;;  %v1314_v30 = vpop.f32.mrb[1].mxu1 }
 0x2bf   : > { %v5114_v31 = vpop.f32.mrb[0].mxu0  ;;  %v1315_v32 = vadd.f32 %v4779_v26, %v1314_v30 }
 0x2c0   : > { %v1216_v33 = vpop.f32.mrb[1].mxu0  ;;  %v1222_v46 = vadd.f32 %v5114_v31, %v4776_v28 }
 0x2c1   : > { %v1217_v34 = vadd.f32 %v4776_v28, %v1216_v33  ;;  %v5128_v35 = vpop.f32.mrb[2].mxu1  ;;  %v5993_v36 = vpack.i.bf16 %v1320_v29, %v1315_v32  ;;  %v5476_v37 = vpack.c.bf16 %v1320_v29, %v1315_v32 }
 0x2c2   : > { %v1330_v39 = vadd.f32 %v5128_v35, %v4779_v26  ;;  %v1324_v40 = vpop.f32.mrb[3].mxu1 }
 0x2c3   : > { %5151 = vmatprep.mubr.msk.f32.mxu1 %vm1436_vm1, %v1217_v34  ;;  %v1325_v41 = vadd.f32 %v4779_v26, %v1324_v40  ;;  %5994 = vrot.lane.b32.xlu1 %v5993_v36, %s6694_s11 }
 0x2c4   : > { %5984 = vrot.lane.b32.xlu0 %v5993_v36, %s6695_s12  ;;  %5478 = vmatprep.subr.msk.bf16.mxu1 %vm7232_vm2, %v5476_v37 }
 0x2c5   : > { %5481 = vmatpush3.bf16.xpose.msk.msra.mxu1 %vm7232_vm2, %v5476_v37  ;;  %v5988_v43 = vpack.i.bf16 %v1330_v39, %v1325_v41  ;;  %v5482_v44 = vpack.c.bf16 %v1330_v39, %v1325_v41 }
 0x2c7   : > { %1552 = vrot.lane.b32.xlu1 %v1217_v34, %s6695_s12  ;;  %5484 = vmatprep.subr.msk.bf16.mxu1 %vm7232_vm2, %v5482_v44  ;;  %v5139_v13 = vpop.f32.mrb[2].mxu0 }
 0x2c8   : > { %5989 = vrot.lane.b32.xlu0 %v5988_v43, %s6695_s12  ;;  %v1415_v14 = vpop.f32.mrb[3].mxu0 }
 0x2c9   : > { %v7280_v15 = vpack.i.bf16 %v5139_v13, %v1415_v14  ;;  %v7282_v16 = vpack.c.bf16 %v5139_v13, %v1415_v14 }
 0x2cb   : > { %5999 = vrot.lane.b32.xlu1 %v5988_v43, %s6694_s11  ;;  %v5142_v17 = vpop.f32.mrb[4].mxu0 }
 0x2cc   : > { %1554 = vrot.lane.b32.xlu0 %v1222_v46, %s6695_s12  ;;  %v1425_v18 = vpop.f32.mrb[5].mxu0  ;;  %s7706_s12 = smov %s7705_s15 }
 0x2cd   : > { %5487 = vmatpush3.bf16.xpose.msk.msra.mxu1 %vm7232_vm2, %v5482_v44  ;;  %v7284_v19 = vpack.i.bf16 %v5142_v17, %v1425_v18  ;;  %v7286_v20 = vpack.c.bf16 %v5142_v17, %v1425_v18 }
 0x2cf   : > { %1851 = vrot.lane.b32.xlu1 %v1217_v34, %s6694_s11 }
 0x2d0   : > { %6004 = vrot.lane.b32.xlu0 %v5993_v36, %s6696_s3 }
 0x2d3   : > { %6009 = vrot.lane.b32.xlu1 %v5988_v43, %s6696_s3 }
 0x2d4   : > { %1853 = vrot.lane.b32.xlu0 %v1222_v46, %s6694_s11  ;;  %5152 = vmatmul.mubr.msk.f32.vlgmr.msra.gmra.mrb[4].mxu1 %vm1436_vm1, %v1222_v46  ;;  %s7707_s11 = sld [smem:[#allocation53_spill]] }
 0x2d7   : > { %2069 = vrot.lane.b32.xlu1 %v1222_v46, %s6696_s3 }
 0x2d8   : > { %2067 = vrot.lane.b32.xlu0 %v1217_v34, %s6696_s3 }
 0x2da   : > { %s7708_s3 = smov %s7707_s11 }
 0x335   : > { %v5995_v47 = vpop.permute.xlu1 %5994 }
 0x336   : > { %v5985_v48 = vpop.permute.xlu0 %5984  ;;  %v5997_v57 = vunpack.i.h.bf16 %v5995_v47  ;;  %v5996_v58 = vunpack.i.l.bf16 %v5995_v47 }
 0x337   : > { %v5987_v49 = vunpack.i.h.bf16 %v5985_v48  ;;  %v5986_v50 = vunpack.i.l.bf16 %v5985_v48 }
 0x338   : > { %v5516_v59 = vpack.c.bf16 %v5997_v57, %v5996_v58 }
 0x339   : > { %v5488_v51 = vpack.c.bf16 %v5987_v49, %v5986_v50  ;;  %v1553_v53 = vpop.permute.xlu1 %1552 }
 0x33a   : > { %v5990_v52 = vpop.permute.xlu0 %5989  ;;  %5162 = vmatprep.mubr.msk.f32.mxu0 %vm1436_vm1, %v1553_v53 }
 0x33b   : > { %v5992_v54 = vunpack.i.h.bf16 %v5990_v52  ;;  %v5991_v55 = vunpack.i.l.bf16 %v5990_v52  ;;  %5490 = vmatprep.subr.msk.bf16.mxu0 %vm7232_vm2, %v5488_v51 }
 0x33c   : > { %5493 = vmatpush3.bf16.xpose.msk.msra.mxu0 %vm7232_vm2, %v5488_v51 }
 0x33d   : > { %v5494_v56 = vpack.c.bf16 %v5992_v54, %v5991_v55  ;;  %v6000_v60 = vpop.permute.xlu1 %5999 }
 0x33e   : > { %v1555_v61 = vpop.permute.xlu0 %1554  ;;  %v6002_v62 = vunpack.i.h.bf16 %v6000_v60  ;;  %v6001_v63 = vunpack.i.l.bf16 %v6000_v60 }
 0x33f   : > { %5496 = vmatprep.subr.msk.bf16.mxu0 %vm7232_vm2, %v5494_v56 }
 0x340   : > { %v5522_v0 = vpack.c.bf16 %v6002_v62, %v6001_v63 }
 0x341   : > { %v1852_v1 = vpop.permute.xlu1 %1851 }
 0x342   : > { %v6005_v2 = vpop.permute.xlu0 %6004 }
 0x343   : > { %v6007_v3 = vunpack.i.h.bf16 %v6005_v2  ;;  %v6006_v4 = vunpack.i.l.bf16 %v6005_v2 }
 0x344   : > { %5499 = vmatpush3.bf16.xpose.msk.msra.mxu0 %vm7232_vm2, %v5494_v56 }
 0x345   : > { %5518 = vmatprep.subr.msk.bf16.mxu0 %vm7232_vm2, %v5516_v59  ;;  %v5536_v5 = vpack.c.bf16 %v6007_v3, %v6006_v4  ;;  %v6010_v6 = vpop.permute.xlu1 %6009 }
 0x346   : > { %v1854_v7 = vpop.permute.xlu0 %1853  ;;  %v6012_v8 = vunpack.i.h.bf16 %v6010_v6  ;;  %v6011_v9 = vunpack.i.l.bf16 %v6010_v6 }
 0x348   : > { %v5542_v10 = vpack.c.bf16 %v6012_v8, %v6011_v9 }
 0x349   : > { %v2070_v12 = vpop.permute.xlu1 %2069 }
 0x34a   : > { %v2068_v11 = vpop.permute.xlu0 %2067 }
 0x34b   : > { %5163 = vmatmul.mubr.msk.f32.vlgmr.msra.gmra.mrb[6].mxu0 %vm1436_vm1, %v1555_v61 }
 0x34c   : > { %5521 = vmatpush3.bf16.xpose.msk.msra.mxu0 %vm7232_vm2, %v5516_v59  ;;  %5195 = vmatprep.mubr.msk.f32.mxu0 %vm1436_vm1, %v1852_v1 }
 0x34d   : > { %5524 = vmatprep.subr.msk.bf16.mxu0 %vm7232_vm2, %v5522_v0 }
 0x354   : > { %5527 = vmatpush3.bf16.xpose.msk.msra.mxu0 %vm7232_vm2, %v5522_v0 }
 0x355   : > { %5538 = vmatprep.subr.msk.bf16.mxu0 %vm7232_vm2, %v5536_v5 }
 0x35b   : > { %5196 = vmatmul.mubr.msk.f32.vlgmr.msra.gmra.mrb[8].mxu0 %vm1436_vm1, %v1854_v7 }
 0x35c   : > { %5541 = vmatpush3.bf16.xpose.msk.msra.mxu0 %vm7232_vm2, %v5536_v5  ;;  %5217 = vmatprep.mubr.msk.f32.mxu0 %vm1436_vm1, %v2068_v11 }
 0x35d   : > { %5544 = vmatprep.subr.msk.bf16.mxu0 %vm7232_vm2, %v5542_v10 }
 0x364   : > { %5547 = vmatpush3.bf16.xpose.msk.msra.mxu0 %vm7232_vm2, %v5542_v10 }
 0x36b   : > { %5218 = vmatmul.mubr.msk.f32.vlgmr.msra.gmra.mrb[10].mxu0 %vm1436_vm1, %v2070_v12 }
 0x3a7   : > { %v5153_v21 = vpop.f32.mrb[4].mxu1 }
 0x3a8   : > { %v1521_v22 = vpop.f32.mrb[5].mxu1  ;;  %v1527_v32 = vadd.f32 %v5153_v21, %v1435_v23 }
 0x3a9   : > { %v1522_v30 = vadd.f32 %v1521_v22, %v1434_v25 }
 0x3aa   : > { %v1533_v34 = vsel %vm1143_vm0, %v1527_v32, -inf }
 0x3ab   : > { %v1530_v33 = vsel %vm1143_vm0, %v1522_v30, -inf }
 0x41e   : > { %v5164_v24 = vpop.f32.mrb[6].mxu0 }
 0x41f   : > { %v1648_v26 = vadd.f32 %v5164_v24, %v1435_v23  ;;  %v1642_v27 = vpop.f32.mrb[7].mxu0 }
 0x420   : > { %v1643_v28 = vadd.f32 %v1642_v27, %v1434_v25 }
 0x421   : > { %v1654_v29 = vsel %vm1143_vm0, %v1648_v26, -inf }
 0x422   : > { %1655 = vmax.xlane.f32.xlu1 %v1654_v29  ;;  %v1651_v31 = vsel %vm1143_vm0, %v1643_v28, -inf }
 0x423   : > { %1652 = vmax.xlane.f32.xlu0 %v1651_v31 }
 0x427   : > { %1531 = vmax.xlane.f32.xlu0 %v1530_v33 }
 0x42b   : > { %1534 = vmax.xlane.f32.xlu0 %v1533_v34 }
 0x42e   : > { %v5197_v35 = vpop.f32.mrb[8].mxu0 }
 0x42f   : > { %v1947_v36 = vadd.f32 %v5197_v35, %v1435_v23  ;;  %v1941_v37 = vpop.f32.mrb[9].mxu0  ;;  %v4830_v35 = vld [vmem:[%s7703_s16 + $0x10] sm:$0xff] }
 0x430   : > { %v1942_v38 = vadd.f32 %v1941_v37, %v1434_v25  ;;  %v2702_v37 = vld [vmem:[%s7703_s16] sm:$0xff] }
 0x431   : > { %v1953_v39 = vsel %vm1143_vm0, %v1947_v36, -inf }
 0x432   : > { %1954 = vmax.xlane.f32.xlu0 %v1953_v39  ;;  %v1950_v40 = vsel %vm1143_vm0, %v1942_v38, -inf  ;;  %v4836_v39 = vld [vmem:[%s7703_s16 + $0x20] sm:$0xff] }
 0x433   : > { %1951 = vmax.xlane.f32.xlu1 %v1950_v40  ;;  %v4840_v40 = vld [vmem:[%s7703_s16 + $0x30] sm:$0xff] }
 0x43e   : > { %v5219_v41 = vpop.f32.mrb[10].mxu0 }
 0x43f   : > { %v2163_v42 = vadd.f32 %v5219_v41, %v1435_v23  ;;  %v2157_v43 = vpop.f32.mrb[11].mxu0  ;;  %v4841_v41 = vld [vmem:[%s7703_s16 + $0x38] sm:$0xff] }
 0x440   : > { %v7297_v45 = vadd.f32 %v2157_v43, %v1434_v25  ;;  %v4847_v43 = vld [vmem:[%s7703_s16 + $0x48] sm:$0xff] }
 0x441   : > { %v2169_v44 = vsel %vm1143_vm0, %v2163_v42, -inf }
 0x442   : > { %2170 = vmax.xlane.f32.xlu0 %v2169_v44  ;;  %v2166_v46 = vsel %vm1143_vm0, %v7297_v45, -inf  ;;  %v4850_v44 = vld [vmem:[%s7703_s16 + $0x50] sm:$0xff] }
 0x444   : > { %6014 = vrot.lane.b32.xlu1 %v7280_v15, %s6697_s18 }
 0x458   : > { %6019 = vrot.lane.b32.xlu0 %v7284_v19, %s6697_s18  ;;  %s7709_s18 = sld [smem:[#allocation55_spill]] }
 0x468   : > { %2167 = vmax.xlane.f32.xlu1 %v2166_v46  ;;  %v4854_v46 = vld [vmem:[%s7703_s16 + $0x60] sm:$0xff] }
 0x479   : > { %6024 = vrot.lane.b32.xlu1 %v7280_v15, %s6698_s2 }
 0x4af   : > { %v1656_v50 = vpop.xlane.xlu1 %1655 }
 0x4b0   : > { %v1653_v47 = vpop.xlane.xlu0 %1652  ;;  %v1658_v54 = vsub.f32 %v1648_v26, %v1656_v50 }
 0x4b1   : > { %v1657_v48 = vsub.f32 %v1643_v28, %v1653_v47  ;;  %v4855_v47 = vld [vmem:[%s7703_s16 + $0x68] sm:$0xff] }
 0x4b2   : > { %v1661_v58 = vmul.f32 1.442695, %v1658_v54 }
 0x4b3   : > { %v1659_v52 = vmul.f32 1.442695, %v1657_v48  ;;  %v4858_v48 = vld [vmem:[%s7703_s16 + $0x70] sm:$0xff] }
 0x4b4   : > { %v1532_v49 = vpop.xlane.xlu0 %1531 }
 0x4b5   : > { %v1536_v51 = vsub.f32 %v1522_v30, %v1532_v49  ;;  %v4859_v49 = vld [vmem:[%s7703_s16 + $0x78] sm:$0xff] }
 0x4b7   : > { %v1538_v53 = vmul.f32 1.442695, %v1536_v51 }
 0x4b8   : > { %v1535_v55 = vpop.xlane.xlu0 %1534 }
 0x4b9   : > { %6045 = vpow2.f32 %v1538_v53  ;;  %v1537_v56 = vsub.f32 %v1527_v32, %v1535_v55 }
 0x4ba   : > { %6047 = vpow2.f32 %v1659_v52 }
 0x4bb   : > { %v1540_v57 = vmul.f32 1.442695, %v1537_v56 }
 0x4bd   : > { %6049 = vpow2.f32 %v1540_v57 }
 0x4be   : > { %6051 = vpow2.f32 %v1661_v58 }
 0x4bf   : > { %v1955_v59 = vpop.xlane.xlu0 %1954 }
 0x4c0   : > { %v1957_v60 = vsub.f32 %v1947_v36, %v1955_v59  ;;  %v1952_v61 = vpop.xlane.xlu1 %1951  ;;  %v6700_v36 = vmov 0  }
 0x4c1   : > { %v1956_v62 = vsub.f32 %v1942_v38, %v1952_v61  ;;  %6044 = vset.pattern.permute.xlu1 %v6700_v36  ;;  %6043 = vset.pattern.permute.xlu0 %v6700_v36  ;;  %v2703_v38 = vld [vmem:[%s7703_s16 + $0x8] sm:$0xff] }
 0x4c2   : > { %v1960_v63 = vmul.f32 1.442695, %v1957_v60  ;;  %v2419_v36 = vld [vmem:[%s7704_s1 + $0x8] sm:$0xff] }
 0x4c3   : > { %v7303_v0 = vpop.eup %6045  ;;  %v1958_v1 = vmul.f32 1.442695, %v1956_v62 }
 0x4c4   : > { %6053 = vpow2.f32 %v1960_v63  ;;  %v6015_v2 = vpop.permute.xlu1 %6014  ;;  %v1542_v3 = vsel %vm1143_vm0, %v7303_v0, 0.0  ;;  %v7307_v4 = vpop.eup %6047 }
 0x4c5   : > { %6055 = vpow2.f32 %v1958_v1  ;;  %v6017_v5 = vunpack.i.h.bf16 %v6015_v2  ;;  %v6016_v6 = vunpack.i.l.bf16 %v6015_v2  ;;  %1543 = vadd.xlane.f32.xlu1 %v1542_v3  ;;  %v1663_v9 = vsel %vm1143_vm0, %v7307_v4, 0.0 }
 0x4c7   : > { %v7309_v7 = vpop.eup %6049  ;;  %v5500_v8 = vpack.c.bf16 %v6017_v5, %v6016_v6 }
 0x4c8   : > { %v1545_v10 = vsel %vm1143_vm0, %v7309_v7, 0.0  ;;  %v7315_v11 = vpop.eup %6051 }
 0x4c9   : > { %5501 = vmatprep.subr.bf16.mxu1 %v5500_v8  ;;  %1664 = vadd.xlane.f32.xlu1 %v1663_v9  ;;  %v1666_v12 = vsel %vm1143_vm0, %v7315_v11, 0.0 }
 0x4ca   : > { %1546 = vadd.xlane.f32.xlu0 %v1545_v10  ;;  %5503 = vmatpush3.bf16.msra.mxu1 %v5500_v8 }
 0x4ce   : > { %v7319_v13 = vpop.eup %6053  ;;  %1667 = vadd.xlane.f32.xlu0 %v1666_v12 }
 0x4cf   : > { %v7321_v14 = vpop.eup %6055  ;;  %v2171_v17 = vpop.xlane.xlu0 %2170  ;;  %v1965_v18 = vsel %vm1143_vm0, %v7319_v13, 0.0 }
 0x4d0   : > { %v2173_v21 = vsub.f32 %v2163_v42, %v2171_v17  ;;  %v1962_v22 = vsel %vm1143_vm0, %v7321_v14, 0.0  ;;  %v4846_v42 = vld [vmem:[%s7703_s16 + $0x40] sm:$0xff] }
 0x4d1   : > { %1963 = vadd.xlane.f32.xlu1 %v1962_v22  ;;  %v2292_v22 = vld [vmem:[#allocation13] sm:$0xff] }
 0x4d2   : > { %v2176_v23 = vmul.f32 1.442695, %v2173_v21  ;;  %1966 = vadd.xlane.f32.xlu0 %v1965_v18 }
 0x4d3   : > { %v6020_v24 = vpop.permute.xlu0 %6019 }
 0x4d4   : > { %6057 = vpow2.f32 %v2176_v23  ;;  %v6022_v25 = vunpack.i.h.bf16 %v6020_v24  ;;  %v6021_v26 = vunpack.i.l.bf16 %v6020_v24  ;;  %v2293_v23 = vld [vmem:[#allocation13 + $0x8] sm:$0xff] }
 0x4d6   : > { %v5504_v27 = vpack.c.bf16 %v6022_v25, %v6021_v26 }
 0x4d8   : > { %5505 = vmatprep.subr.bf16.mxu1 %v5504_v27 }
 0x4d9   : > { %5507 = vmatpush3.bf16.msra.mxu1 %v5504_v27  ;;  %v5556_v27 = vpack.c.bf16 %v2293_v23, %v2292_v22  ;;  %v2929_v22 = vld [vmem:[#allocation20 + $0x48] sm:$0xff] }
 0x4da   : > { %5509 = vmatprep.subr.bf16.mxu1 %v7282_v16 }
 0x4de   : > { %v7328_v28 = vpop.eup %6057 }
 0x4df   : > { %v2181_v29 = vsel %vm1143_vm0, %v7328_v28, 0.0 }
 0x4e0   : > { %2182 = vadd.xlane.f32.xlu0 %v2181_v29 }
 0x4e2   : > { %6034 = vrot.lane.b32.xlu1 %v7280_v15, %s6699_s7  ;;  %v4831_v15 = vld [vmem:[%s7703_s16 + $0x18] sm:$0xff] }
 0x4f5   : > { %v2168_v30 = vpop.xlane.xlu1 %2167 }
 0x4f6   : > { %v2172_v31 = vsub.f32 %v7297_v45, %v2168_v30  ;;  %6029 = vrot.lane.b32.xlu0 %v7284_v19, %s6698_s2  ;;  %v4851_v45 = vld [vmem:[%s7703_s16 + $0x58] sm:$0xff]  ;;  %s7710_s2 = sld [smem:[#allocation54_spill]] }
 0x4f8   : > { %v2174_v32 = vmul.f32 1.442695, %v2172_v31 }
 0x4f9   : > { %v6025_v50 = vpop.permute.xlu1 %6024 }
 0x4fa   : > { %6059 = vpow2.f32 %v2174_v32  ;;  %2730 = vperm.xlu0 %6043, %v4830_v35   ;;  %v6027_v63 = vunpack.i.h.bf16 %v6025_v50  ;;  %v6026_v1 = vunpack.i.l.bf16 %v6025_v50  ;;  %v2294_v32 = vld [vmem:[#allocation13 + $0x10] sm:$0xff] }
 0x4fb   : > { %v2418_v35 = vld [vmem:[%s7704_s1] sm:$0xff] }
 0x4fe   : > { %2711 = vperm.xlu0 %6043, %v2703_v38   ;;  %v6701_v38 = vmov 0.0|0.0  }
 0x4ff   : > { %5564 = vmatprep.subr.bf16.mxu0 %v6701_v38 }
 0x504   : > { %v7336_v33 = vpop.eup %6059 }
 0x505   : > { %v2178_v34 = vsel %vm1143_vm0, %v7336_v33, 0.0 }
 0x506   : > { %2179 = vadd.xlane.f32.xlu1 %v2178_v34  ;;  %v2295_v34 = vld [vmem:[#allocation13 + $0x18] sm:$0xff] }
 0x517   : > { %6039 = vrot.lane.b32.xlu1 %v7284_v19, %s6699_s7  ;;  %v4837_v19 = vld [vmem:[%s7703_s16 + $0x28] sm:$0xff]  ;;  %s7633_s7 = sand.u32 1, %s6635_s10  }
 0x518   : > { %2922 = vperm.xlu0 %6043, %v4837_v19   ;;  %v6703_v19 = vmov 0.0  }
 0x519   : > { %5250 = vmatprep.mubr.msk.f32.mxu0 %vm6702_vm3, %v6703_v19 }
 0x51b   : > { %2735 = vperm.xlu1 %6044, %v4831_v15   ;;  %v5560_v15 = vpack.c.bf16 %v2295_v34, %v2294_v32 }
 0x51c   : > { %3030 = vperm.xlu0 %6043, %v4841_v41  }
 0x51f   : > { %2706 = vperm.xlu1 %6044, %v2702_v37   ;;  %v2420_v37 = vld [vmem:[%s7704_s1 + $0x10] sm:$0xff] }
 0x520   : > { %3220 = vperm.xlu0 %6043, %v4847_v43   ;;  %v4820_v43 = vld [vmem:[#allocation11] ss:$0 sm:$0xff] }
 0x523   : > { %2917 = vperm.xlu1 %6044, %v4836_v39   ;;  %v5565_v39 = vpack.c.bf16 %v2419_v36, %v2418_v35  ;;  %v3036_v35 = vld [vmem:[#allocation20 + $0x60] sm:$0xff]  ;;  %v3037_v36 = vld [vmem:[#allocation20 + $0x68] sm:$0xff] }
 0x524   : > { %3323 = vperm.xlu0 %6043, %v4851_v45  }
 0x525   : > { %5566 = vmatpush3.bf16.msra.mxu0 %v5565_v39  ;;  %v5598_v39 = vpack.c.bf16 %v3037_v36, %v3036_v35  ;;  %v3537_v36 = vld [vmem:[#allocation20 + $0x110] sm:$0xff] }
 0x526   : > { %5567 = vmatprep.subr.bf16.mxu0 %v6701_v38 }
 0x527   : > { %3025 = vperm.xlu1 %6044, %v4840_v40   ;;  %v2742_v40 = vld [vmem:[#allocation20 + $0x28] sm:$0xff] }
 0x528   : > { %3426 = vperm.xlu0 %6043, %v4855_v47  }
 0x52b   : > { %3215 = vperm.xlu1 %6044, %v4846_v42  }
 0x52c   : > { %3529 = vperm.xlu0 %6043, %v4859_v49  }
 0x52f   : > { %3318 = vperm.xlu1 %6044, %v4850_v44  }
 0x533   : > { %3421 = vperm.xlu1 %6044, %v4854_v46  }
 0x537   : > { %3524 = vperm.xlu1 %6044, %v4858_v48  }
 0x552   : > { %v1544_v51 = vpop.xlane.xlu1 %1543 }
 0x556   : > { %v1665_v52 = vpop.xlane.xlu1 %1664 }
 0x557   : > { %6061 = vrcp.f32 %v1665_v52  ;;  %v1547_v53 = vpop.xlane.xlu0 %1546 }
 0x558   : > { %6063 = vrcp.f32 %v1544_v51  ;;  %v2580_v51 = vlaneseq }
 0x55b   : > { %v1668_v54 = vpop.xlane.xlu0 %1667 }
 0x55c   : > { %6065 = vrcp.f32 %v1668_v54  ;;  %v7394_v54 = vshrl.u32 %v2580_v51, 7 }
 0x55d   : > { %6067 = vrcp.f32 %v1547_v53 }
 0x55e   : > { %v1964_v55 = vpop.xlane.xlu1 %1963  ;;  %vm2722_vm4 = vcmp.lt.s32.totalorder %v7394_v54, 4  ;;  %vm2699_vm5 = vcmp.lt.s32.totalorder %v7394_v54, 5  ;;  %vm2909_vm6 = vcmp.lt.s32.totalorder %v7394_v54, 3  ;;  %vm3017_vm7 = vcmp.lt.s32.totalorder %v7394_v54, 1 }
 0x55f   : > { %6069 = vrcp.f32 %v1964_v55  ;;  %v1967_v61 = vpop.xlane.xlu0 %1966  ;;  %vm3207_vm8 = vcmp.lt.s32.totalorder %v7394_v54, 7 }
 0x560   : > { %6071 = vrcp.f32 %v1967_v61  ;;  %v2744_v61 = vld [vmem:[#allocation20 + $0x38] sm:$0xff] }
 0x561   : > { %v6062_v56 = vpop.eup %6061 }
 0x562   : > { %v1671_v57 = vmul.f32 %v6062_v56, %v7307_v4  ;;  %v6064_v58 = vpop.eup %6063  ;;  %v5528_v4 = vpack.c.bf16 %v6027_v63, %v6026_v1 }
 0x563   : > { %v1550_v62 = vmul.f32 %v6064_v58, %v7303_v0  ;;  %v6035_v0 = vpop.permute.xlu1 %6034 }
 0x564   : > { %5173 = vmatprep.mubr.msk.f32.mxu1 %vm1143_vm0, %v1671_v57  ;;  %v6037_v9 = vunpack.i.h.bf16 %v6035_v0  ;;  %v6036_v10 = vunpack.i.l.bf16 %v6035_v0 }
 0x566   : > { %v6066_v59 = vpop.eup %6065  ;;  %v5548_v21 = vpack.c.bf16 %v6037_v9, %v6036_v10 }
 0x567   : > { %v1672_v60 = vmul.f32 %v6066_v59, %v7315_v11  ;;  %v6068_v2 = vpop.eup %6067 }
 0x568   : > { %v1551_v6 = vmul.f32 %v6068_v2, %v7309_v7 }
 0x569   : > { %5174 = vmatmul.mubr.msk.f32.vlgmr.msra.gmra.mrb[6].mxu1 %vm1143_vm0, %v1672_v60  ;;  %v6070_v3 = vpop.eup %6069  ;;  %v2743_v60 = vld [vmem:[#allocation20 + $0x30] sm:$0xff] }
 0x56a   : > { %5511 = vmatpush3.bf16.msra.mxu1 %v7282_v16  ;;  %5184 = vmatprep.mubr.msk.f32.mxu1 %vm1143_vm0, %v1550_v62  ;;  %v1970_v8 = vmul.f32 %v6070_v3, %v7321_v14  ;;  %v6072_v18 = vpop.eup %6071  ;;  %v5578_v3 = vpack.c.bf16 %v2744_v61, %v2743_v60 }
 0x56b   : > { %5513 = vmatprep.subr.bf16.mxu1 %v7286_v20 }
 0x56d   : > { %v2183_v5 = vpop.xlane.xlu0 %2182 }
 0x56e   : > { %5515 = vmatpush3.bf16.msra.mxu1 %v7286_v20  ;;  %v1971_v20 = vmul.f32 %v6072_v18, %v7319_v13  ;;  %6073 = vrcp.f32 %v2183_v5  ;;  %v2716_v5 = vld [vmem:[#allocation20] sm:$0xff] }
 0x56f   : > { %5529 = vmatprep.subr.bf16.mxu1 %v5528_v4 }
 0x571   : > { %5185 = vmatmul.mubr.msk.f32.vlgmr.msra.gmra.mrb[6].mxu1 %vm1143_vm0, %v1551_v6  ;;  %v6030_v16 = vpop.permute.xlu0 %6029  ;;  %v2717_v6 = vld [vmem:[#allocation20 + $0x8] sm:$0xff] }
 0x572   : > { %5531 = vmatpush3.bf16.msra.mxu1 %v5528_v4  ;;  %v6032_v11 = vunpack.i.h.bf16 %v6030_v16  ;;  %v6031_v12 = vunpack.i.l.bf16 %v6030_v16  ;;  %5206 = vmatprep.mubr.msk.f32.mxu1 %vm1143_vm0, %v1970_v8  ;;  %v5582_v9 = vpack.c.bf16 %v2717_v6, %v2716_v5 }
 0x574   : > { %v5532_v17 = vpack.c.bf16 %v6032_v11, %v6031_v12  ;;  %v2718_v11 = vld [vmem:[#allocation20 + $0x10] sm:$0xff]  ;;  %v2719_v12 = vld [vmem:[#allocation20 + $0x18] sm:$0xff] }
 0x576   : > { %5533 = vmatprep.subr.bf16.mxu1 %v5532_v17 }
 0x577   : > { %5535 = vmatpush3.bf16.msra.mxu1 %v5532_v17 }
 0x578   : > { %5549 = vmatprep.subr.bf16.mxu1 %v5548_v21  ;;  %v6074_v29 = vpop.eup %6073 }
 0x579   : > { %v2187_v31 = vmul.f32 %v6074_v29, %v7328_v28  ;;  %v2741_v28 = vld [vmem:[#allocation20 + $0x20] sm:$0xff]  ;;  %v2731_v1 = vpop.permute.xlu0 %2730  ;;  %v2931_v29 = vld [vmem:[#allocation20 + $0x58] sm:$0xff] }
 0x57a   : > { %5207 = vmatmul.mubr.msk.f32.vlgmr.msra.gmra.mrb[6].mxu1 %vm1143_vm0, %v1971_v20  ;;  %v5574_v42 = vpack.c.bf16 %v2742_v40, %v2741_v28  ;;  %v5586_v20 = vpack.c.bf16 %v2719_v12, %v2718_v11  ;;  %v3039_v28 = vld [vmem:[#allocation20 + $0x78] sm:$0xff]  ;;  %v3331_v11 = vld [vmem:[#allocation20 + $0xd0] sm:$0xff] }
 0x57b   : > { %5551 = vmatpush3.bf16.msra.mxu1 %v5548_v21  ;;  %v3332_v12 = vld [vmem:[#allocation20 + $0xd8] sm:$0xff] }
 0x593   : > { %v2180_v7 = vpop.xlane.xlu1 %2179 }
 0x594   : > { %6075 = vrcp.f32 %v2180_v7 }
 0x597   : > { %v6040_v14 = vpop.permute.xlu1 %6039 }
 0x598   : > { %v6042_v24 = vunpack.i.h.bf16 %v6040_v14  ;;  %v6041_v25 = vunpack.i.l.bf16 %v6040_v14  ;;  %v2928_v14 = vld [vmem:[#allocation20 + $0x40] sm:$0xff] }
 0x59a   : > { %v5552_v26 = vpack.c.bf16 %v6042_v24, %v6041_v25  ;;  %v5590_v25 = vpack.c.bf16 %v2929_v22, %v2928_v14  ;;  %v3432_v22 = vld [vmem:[#allocation20 + $0xe0] sm:$0xff] }
 0x59b   : > { %v2736_v0 = vpop.permute.xlu1 %2735 }
 0x59c   : > { %5553 = vmatprep.subr.bf16.mxu1 %v5552_v26 }
 0x59d   : > { %5555 = vmatpush3.bf16.msra.mxu1 %v5552_v26 }
 0x59e   : > { %v6076_v13 = vpop.eup %6075  ;;  %5557 = vmatprep.subr.bf16.mxu1 %v5556_v27 }
 0x59f   : > { %v2186_v30 = vmul.f32 %v6076_v13, %v7336_v33  ;;  %v2421_v33 = vld [vmem:[%s7704_s1 + $0x18] sm:$0xff]  ;;  %v2707_v18 = vpop.permute.xlu1 %2706 }
 0x5a0   : > { %v5568_v41 = vpack.c.bf16 %v2421_v33, %v2420_v37 }
 0x5a1   : > { %5228 = vmatprep.mubr.msk.f32.mxu1 %vm1143_vm0, %v2186_v30  ;;  %v2712_v30 = vpop.permute.xlu0 %2711 }
 0x5a2   : > { %5229 = vmatmul.mubr.msk.f32.vlgmr.msra.gmra.mrb[6].mxu1 %vm1143_vm0, %v2187_v31  ;;  %5569 = vmatpush3.bf16.msra.mxu0 %v5568_v41 }
 0x5a3   : > { %5559 = vmatpush3.bf16.msra.mxu1 %v5556_v27  ;;  %5575 = vmatprep.subr.bf16.mxu0 %v5574_v42  ;;  %v2930_v27 = vld [vmem:[#allocation20 + $0x50] sm:$0xff]  ;;  %v2918_v31 = vpop.permute.xlu1 %2917 }
 0x5a4   : > { %5561 = vmatprep.subr.bf16.mxu1 %v5560_v15  ;;  %v5594_v34 = vpack.c.bf16 %v2931_v29, %v2930_v27  ;;  %v3435_v27 = vld [vmem:[#allocation20 + $0xf8] sm:$0xff] }
 0x5a5   : > { %v2923_v41 = vpop.permute.xlu0 %2922 }
 0x5a7   : > { %5563 = vmatpush3.bf16.msra.mxu1 %v5560_v15 }
 0x5a8   : > { %5253 = vmatprep.subr.mxu1 %v6703_v19 }
 0x675   : > { %v5230_v44 = vpop.f32.mrb[6].mxu1 }
 0x676   : > { %v7381_v45 = vadd.f32 %v5230_v44, %v4820_v43  ;;  %v2272_v46 = vpop.f32.mrb[7].mxu1 }
 0x677   : > { %v7383_v47 = vadd.f32 %v4820_v43, %v2272_v46 }
 0x678   : > { %v2408_v48 = vsel %vm1143_vm0, %v7381_v45, 0.0  ;;  %v2721_v57 = vrot.slane %v7381_v45, 4  ;;  %v2696_v16 = vrot.slane %v7381_v45, 3  ;;  %v2908_v24 = vrot.slane %v7381_v45, 5 }
 0x679   : > { %5239 = vmatprep.mubr.msk.f32.mxu1 %vm1143_vm0, %v7383_v47  ;;  %v2407_v49 = vsel %vm1143_vm0, %v7383_v47, 0.0  ;;  %v2720_v56 = vrot.slane %v7383_v47, 4  ;;  %v2695_v8 = vrot.slane %v7383_v47, 3  ;;  %v2907_v23 = vrot.slane %v7383_v47, 5 }
 0x67a   : > { %5240 = vmatmul.mubr.msk.f32.vlgmr.msra.gmra.mrb[8].mxu1 %vm1143_vm0, %v7381_v45  ;;  %v2409_v50 = vadd.f32 %v2408_v48, %v2407_v49  ;;  %v3015_v37 = vrot.slane %v7383_v47, 7  ;;  %v3016_v38 = vrot.slane %v7381_v45, 7  ;;  %v3124_v48 = vld [vmem:[#allocation20 + $0x80] sm:$0xff]  ;;  %v3125_v49 = vld [vmem:[#allocation20 + $0x88] sm:$0xff]  ;;  %v3205_v60 = vrot.slane %v7383_v47, 1 }
 0x67b   : > { %5255 = vmatprep.mubr.msk.f32.mxu1 %vm6702_vm3, %v6703_v19  ;;  %v7401_v62 = vsel %vm2722_vm4, %v2721_v57, %v2720_v56  ;;  %v7411_v10 = vsel %vm2722_vm4, %v2720_v56, %v2721_v57  ;;  %v7415_v17 = vsel %vm2699_vm5, %v2696_v16, %v2695_v8  ;;  %v7426_v26 = vsel %vm2699_vm5, %v2695_v8, %v2696_v16  ;;  %v3038_v19 = vld [vmem:[#allocation20 + $0x70] sm:$0xff]  ;;  %v3330_v8 = vld [vmem:[#allocation20 + $0xc8] sm:$0xff] }
 0x67c   : > { %v2410_v52 = vrot.slane %v2409_v50, 4  ;;  %v2738_v4 = vmul.f32 %v2731_v1, %v7401_v62  ;;  %v2739_v21 = vmul.f32 %v2736_v0, %v7411_v10  ;;  %v2714_v7 = vmul.f32 %v2707_v18, %v7415_v17  ;;  %v3228_v1 = vld [vmem:[#allocation20 + $0xb0] sm:$0xff]  ;;  %v3329_v0 = vld [vmem:[#allocation20 + $0xc0] sm:$0xff] }
 0x67d   : > { %v7430_v13 = vsel %vm2909_vm6, %v2908_v24, %v2907_v23  ;;  %v2715_v32 = vmul.f32 %v2712_v30, %v7426_v26  ;;  %v7441_v33 = vsel %vm2909_vm6, %v2907_v23, %v2908_v24  ;;  %v3019_v40 = vsel %vm3017_vm7, %v3016_v38, %v3015_v37  ;;  %v3433_v23 = vld [vmem:[#allocation20 + $0xe8] sm:$0xff] }
 0x67e   : > { %v2411_v53 = vadd.f32 %v2410_v52, %v2409_v50  ;;  %v2925_v15 = vmul.f32 %v2918_v31, %v7430_v13  ;;  %v2926_v43 = vmul.f32 %v2923_v41, %v7441_v33  ;;  %v5602_v44 = vpack.c.bf16 %v3039_v28, %v3038_v19  ;;  %v3126_v52 = vld [vmem:[#allocation20 + $0x90] sm:$0xff]  ;;  %v2496_v41 = vld [vmem:[#allocation17] sm:$0x3] }
 0x67f   : > { %v5606_v50 = vpack.c.bf16 %v3125_v49, %v3124_v48  ;;  %v3018_v51 = vsel %vm3017_vm7, %v3015_v37, %v3016_v38  ;;  %v3206_v61 = vrot.slane %v7381_v45, 1  ;;  %v5622_v16 = vpack.c.bf16 %v3330_v8, %v3329_v0  ;;  %v3538_v37 = vld [vmem:[#allocation20 + $0x118] sm:$0xff]  ;;  %5254 = vmatpush3.msk.msra.mxu1 %vm2501_vm9, %v2496_v41  ;;  %v2607_v49 = vld [vmem:[#allocation19] sm:$0xff] }
 0x680   : > { %v2412_v55 = vrot.slane %v2411_v53, 2  ;;  %v5630_v24 = vpack.c.bf16 %v3433_v23, %v3432_v22  ;;  %v5642_v19 = vpack.c.bf16 %v3538_v37, %v3537_v36 }
 0x682   : > { %v2413_v58 = vadd.f32 %v2412_v55, %v2411_v53  ;;  %v3127_v53 = vld [vmem:[#allocation20 + $0x98] sm:$0xff]  ;;  %v3031_v55 = vpop.permute.xlu0 %3030 }
 0x683   : > { %v3034_v56 = vmul.f32 %v3031_v55, %v3018_v51  ;;  %v5610_v57 = vpack.c.bf16 %v3127_v53, %v3126_v52  ;;  %v4824_v51 = vld [vmem:[#allocation16] ss:$0 sm:$0xff] }
 0x684   : > { %v2414_v59 = vrot.slane %v2413_v58, 1 }
 0x686   : > { %v2415_v63 = vadd.f32 %v2414_v59, %v2413_v58  ;;  %v3226_v58 = vld [vmem:[#allocation20 + $0xa0] sm:$0xff]  ;;  %v3227_v59 = vld [vmem:[#allocation20 + $0xa8] sm:$0xff]  ;;  %v3221_v18 = vpop.permute.xlu0 %3220 }
 0x688   : > { %v2417_v2 = vmul.f32 0.0625, %v2415_v63  ;;  %v5614_v63 = vpack.c.bf16 %v3227_v59, %v3226_v58 }
 0x68a   : > { %5251 = vmatmul.mubr.msk.f32.vlgmr.msra.gmra.mrb[12].mxu0 %vm1143_vm0, %v2417_v2  ;;  %v3229_v2 = vld [vmem:[#allocation20 + $0xb8] sm:$0xff]  ;;  %v3324_v29 = vpop.permute.xlu0 %3323 }
 0x68b   : > { %5577 = vmatpush3.bf16.msra.mxu0 %v5574_v42  ;;  %5273 = vmatprep.mubr.msk.f32.mxu0 %vm1143_vm0, %v2738_v4  ;;  %v3026_v42 = vpop.permute.xlu1 %3025  ;;  %v5618_v5 = vpack.c.bf16 %v3229_v2, %v3228_v1  ;;  %v3327_v31 = vmul.f32 %v3324_v29, %v7415_v17 }
 0x68c   : > { %5579 = vmatprep.subr.bf16.mxu0 %v5578_v3  ;;  %v3033_v46 = vmul.f32 %v3026_v42, %v3019_v40 }
 0x68f   : > { %5581 = vmatpush3.bf16.msra.mxu0 %v5578_v3  ;;  %v3208_v3 = vsel %vm3207_vm8, %v3205_v60, %v3206_v61  ;;  %v3216_v4 = vpop.permute.xlu1 %3215 }
 0x690   : > { %5583 = vmatprep.subr.bf16.mxu0 %v5582_v9  ;;  %v3223_v6 = vmul.f32 %v3216_v4, %v3208_v3 }
 0x692   : > { %5274 = vmatmul.mubr.msk.f32.vlgmr.msra.gmra.mrb[14].mxu0 %vm1143_vm0, %v2739_v21 }
 0x693   : > { %5585 = vmatpush3.bf16.msra.mxu0 %v5582_v9  ;;  %5284 = vmatprep.mubr.msk.f32.mxu0 %vm1143_vm0, %v2714_v7  ;;  %v3209_v9 = vsel %vm3207_vm8, %v3206_v61, %v3205_v60  ;;  %v3319_v21 = vpop.permute.xlu1 %3318  ;;  %v5626_v7 = vpack.c.bf16 %v3332_v12, %v3331_v11 }
 0x694   : > { %5587 = vmatprep.subr.bf16.mxu0 %v5586_v20  ;;  %v3326_v14 = vmul.f32 %v3319_v21, %v7426_v26 }
 0x697   : > { %5589 = vmatpush3.bf16.msra.mxu0 %v5586_v20  ;;  %v3224_v20 = vmul.f32 %v3221_v18, %v3209_v9  ;;  %v3422_v30 = vpop.permute.xlu1 %3421 }
 0x698   : > { %5591 = vmatprep.subr.bf16.mxu0 %v5590_v25  ;;  %v3429_v26 = vmul.f32 %v3422_v30, %v7411_v10 }
 0x69a   : > { %5285 = vmatmul.mubr.msk.f32.vlgmr.msra.gmra.mrb[14].mxu0 %vm1143_vm0, %v2715_v32 }
 0x69b   : > { %5593 = vmatpush3.bf16.msra.mxu0 %v5590_v25  ;;  %5295 = vmatprep.mubr.msk.f32.mxu0 %vm1143_vm0, %v2925_v15  ;;  %v3434_v25 = vld [vmem:[#allocation20 + $0xf0] sm:$0xff]  ;;  %v3536_v15 = vld [vmem:[#allocation20 + $0x108] sm:$0xff]  ;;  %v3525_v38 = vpop.permute.xlu1 %3524 }
 0x69c   : > { %5595 = vmatprep.subr.bf16.mxu0 %v5594_v34  ;;  %v5634_v32 = vpack.c.bf16 %v3435_v27, %v3434_v25  ;;  %v3532_v10 = vmul.f32 %v3525_v38, %v7441_v33 }
 0x69f   : > { %5597 = vmatpush3.bf16.msra.mxu0 %v5594_v34  ;;  %v3535_v34 = vld [vmem:[#allocation20 + $0x100] sm:$0xff] }
 0x6a0   : > { %5599 = vmatprep.subr.bf16.mxu0 %v5598_v39  ;;  %v5638_v35 = vpack.c.bf16 %v3536_v15, %v3535_v34 }
 0x6a2   : > { %5296 = vmatmul.mubr.msk.f32.vlgmr.msra.gmra.mrb[14].mxu0 %vm1143_vm0, %v2926_v43 }
 0x6a3   : > { %5601 = vmatpush3.bf16.msra.mxu0 %v5598_v39  ;;  %5306 = vmatprep.mubr.msk.f32.mxu0 %vm1143_vm0, %v3033_v46  ;;  %v3427_v39 = vpop.permute.xlu0 %3426 }
 0x6a4   : > { %5603 = vmatprep.subr.bf16.mxu0 %v5602_v44  ;;  %v3430_v17 = vmul.f32 %v3427_v39, %v7401_v62 }
 0x6a7   : > { %5605 = vmatpush3.bf16.msra.mxu0 %v5602_v44  ;;  %v3530_v28 = vpop.permute.xlu0 %3529 }
 0x6a8   : > { %5607 = vmatprep.subr.bf16.mxu0 %v5606_v50  ;;  %v3533_v40 = vmul.f32 %v3530_v28, %v7430_v13  ;;  %v4823_v13 = vld [vmem:[#allocation14] ss:$0 sm:$0xff] }
 0x6aa   : > { %5307 = vmatmul.mubr.msk.f32.vlgmr.msra.gmra.mrb[14].mxu0 %vm1143_vm0, %v3034_v56 }
 0x6ab   : > { %5609 = vmatpush3.bf16.msra.mxu0 %v5606_v50  ;;  %5317 = vmatprep.mubr.msk.f32.mxu0 %vm1143_vm0, %v7383_v47 }
 0x6ac   : > { %5611 = vmatprep.subr.bf16.mxu0 %v5610_v57 }
 0x6af   : > { %5613 = vmatpush3.bf16.msra.mxu0 %v5610_v57 }
 0x6b0   : > { %5615 = vmatprep.subr.bf16.mxu0 %v5614_v63 }
 0x6b2   : > { %5318 = vmatmul.mubr.msk.f32.vlgmr.msra.gmra.mrb[14].mxu0 %vm1143_vm0, %v7381_v45 }
 0x6b3   : > { %5617 = vmatpush3.bf16.msra.mxu0 %v5614_v63  ;;  %5328 = vmatprep.mubr.msk.f32.mxu0 %vm1143_vm0, %v3223_v6 }
 0x6b4   : > { %5619 = vmatprep.subr.bf16.mxu0 %v5618_v5 }
 0x6b7   : > { %5621 = vmatpush3.bf16.msra.mxu0 %v5618_v5 }
 0x6b8   : > { %5623 = vmatprep.subr.bf16.mxu0 %v5622_v16 }
 0x6ba   : > { %5329 = vmatmul.mubr.msk.f32.vlgmr.msra.gmra.mrb[14].mxu0 %vm1143_vm0, %v3224_v20 }
 0x6bb   : > { %5625 = vmatpush3.bf16.msra.mxu0 %v5622_v16  ;;  %5339 = vmatprep.mubr.msk.f32.mxu0 %vm1143_vm0, %v3326_v14  ;;  %v2582_v16 = vsub.s32 0, %v7394_v54 }
 0x6bc   : > { %5627 = vmatprep.subr.bf16.mxu0 %v5626_v7 }
 0x6bf   : > { %5629 = vmatpush3.bf16.msra.mxu0 %v5626_v7 }
 0x6c0   : > { %5631 = vmatprep.subr.bf16.mxu0 %v5630_v24 }
 0x6c2   : > { %5340 = vmatmul.mubr.msk.f32.vlgmr.msra.gmra.mrb[14].mxu0 %vm1143_vm0, %v3327_v31 }
 0x6c3   : > { %5633 = vmatpush3.bf16.msra.mxu0 %v5630_v24  ;;  %5350 = vmatprep.mubr.msk.f32.mxu0 %vm1143_vm0, %v3429_v26 }
 0x6c4   : > { %5635 = vmatprep.subr.bf16.mxu0 %v5634_v32 }
 0x6c7   : > { %5637 = vmatpush3.bf16.msra.mxu0 %v5634_v32 }
 0x6c8   : > { %5639 = vmatprep.subr.bf16.mxu0 %v5638_v35 }
 0x6ca   : > { %5351 = vmatmul.mubr.msk.f32.vlgmr.msra.gmra.mrb[14].mxu0 %vm1143_vm0, %v3430_v17  ;;  %v3656_v17 = vld [vmem:[#allocation20 + $0x120] sm:$0xff] }
 0x6cb   : > { %5641 = vmatpush3.bf16.msra.mxu0 %v5638_v35  ;;  %5361 = vmatprep.mubr.msk.f32.mxu0 %vm1143_vm0, %v3532_v10 }
 0x6cc   : > { %5643 = vmatprep.subr.bf16.mxu0 %v5642_v19 }
 0x6cf   : > { %5645 = vmatpush3.bf16.msra.mxu0 %v5642_v19  ;;  %v3657_v19 = vld [vmem:[#allocation20 + $0x128] sm:$0xff] }
 0x6d0   : > { %v5646_v41 = vpack.c.bf16 %v3657_v19, %v3656_v17  ;;  %v4878_v19 = vld [vmem:[#allocation22 + $0x2] ss:$0 sm:$0xff] }
 0x6d2   : > { %5362 = vmatmul.mubr.msk.f32.vlgmr.msra.gmra.mrb[14].mxu0 %vm1143_vm0, %v3533_v40 }
 0x74d   : > { %v5241_v62 = vpop.f32.mrb[8].mxu1 }
 0x74e   : > { %v2368_v42 = vpop.f32.mrb[9].mxu1  ;;  %v2385_v50 = vmul.f32 %v5241_v62, %v4823_v13  ;;  %v3658_v62 = vld [vmem:[#allocation20 + $0x130] sm:$0xff] }
 0x74f   : > { %v2384_v52 = vmul.f32 %v4823_v13, %v2368_v42  ;;  %v3659_v42 = vld [vmem:[#allocation20 + $0x138] sm:$0xff] }
 0x750   : > { %v2394_v53 = vadd.f32 %v4824_v51, %v2385_v50  ;;  %v4872_v50 = vld [vmem:[%s7706_s12 + $0x30] sm:$0xff] }
 0x751   : > { %v2393_v55 = vadd.f32 %v4824_v51, %v2384_v52  ;;  %v4873_v51 = vld [vmem:[%s7706_s12 + $0x38] sm:$0xff] }
 0x752   : > { %v2396_v56 = vsub.f32 0.0, %v2394_v53  ;;  %v5658_v52 = vpack.c.bf16 %v4873_v51, %v4872_v50  ;;  %v3651_v53 = vld [vmem:[%s7706_s12] sm:$0xff] }
 0x753   : > { %v2395_v57 = vsub.f32 0.0, %v2393_v55  ;;  %v3652_v55 = vld [vmem:[%s7706_s12 + $0x8] sm:$0xff]  ;;  %v4133_v51 = vld [vmem:[#allocation20 + $0x170] sm:$0xff] }
 0x754   : > { %v2399_v58 = vmul.f32 1.442695, %v2396_v56  ;;  %v5662_v56 = vpack.c.bf16 %v3652_v55, %v3651_v53 }
 0x755   : > { %v2397_v59 = vmul.f32 1.442695, %v2395_v57 }
 0x756   : > { %6077 = vpow2.f32 %v2399_v58 }
 0x757   : > { %6079 = vpow2.f32 %v2397_v59  ;;  %v4862_v59 = vld [vmem:[#allocation22] ss:$0 sm:$0xff] }
 0x75d   : > { %v2491_v43 = vpop.f32.mrb[12].mxu0 }
 0x75e   : > { %v2495_v33 = vmax.f32 %v2491_v43, 0.0  ;;  %v5252_v44 = vpop.f32.mrb[13].mxu0  ;;  %v2608_v43 = vld [vmem:[#allocation19 + $0x8] sm:$0xff] }
 0x75f   : > { %v4870_v44 = vld [vmem:[%s7705_s15 + $0x20] sm:$0xff]  ;;  %s4773_s15 = sshll.u32 %s7633_s7, 4 }
 0x760   : > { %5256 = vmatmul.mubr.msk.f32.vlgmr.msra.gmra.mrb[10].mxu1 %vm2497_vm10, %v2495_v33  ;;  %v6078_v2 = vpop.eup %6077  ;;  %v5650_v33 = vpack.c.bf16 %v3659_v42, %v3658_v62  ;;  %v4881_v42 = vld [vmem:[#allocation23 + $0x2] ss:$0 sm:$0xff] }
 0x761   : > { %5262 = vmatprep.mubr.msk.f32.mxu1 %vm2609_vm11, %v2607_v49  ;;  %v6080_v3 = vpop.eup %6079  ;;  %v2402_v4 = vadd.f32 1.0, %v6078_v2  ;;  %v4871_v49 = vld [vmem:[%s7706_s12 + $0x28] sm:$0xff] }
 0x762   : > { %v2401_v5 = vadd.f32 1.0, %v6080_v3  ;;  %v5654_v13 = vpack.c.bf16 %v4871_v49, %v4870_v44 }
 0x7a5   : > { %v7476_v46 = vpop.f32.mrb[14].mxu0 }
 0x7a6   : > { %v7478_v48 = vpop.f32.mrb[15].mxu0 }
 0x833   : > { %v2571_v60 = vpop.f32.mrb[10].mxu1 }
 0x834   : > { %v2575_v61 = vsub.f32 0.0, %v2571_v60  ;;  %v5257_v63 = vpop.f32.mrb[11].mxu1  ;;  %v3629_v60 = vadd.f32 %v4862_v59, %v7478_v48  ;;  %v3654_v48 = vld [vmem:[%s7706_s12 + $0x18] sm:$0xff] }
 0x836   : > { %v2576_v1 = vmul.f32 1.442695, %v2575_v61  ;;  %v4865_v61 = vld [vmem:[#allocation22 + $0x1] ss:$0 sm:$0xff]  ;;  %v3631_v3 = vmax.f32 %v3629_v60, 0.0 }
 0x837   : > { %v4895_v60 = vld [vmem:[%s7706_s12 + $0x68] sm:$0xff] }
 0x838   : > { %6081 = vpow2.f32 %v2576_v1 }
 0x839   : > { %6083 = vrcp.f32 %v2402_v4  ;;  %v4868_v4 = vld [vmem:[#allocation23 + $0x1] ss:$0 sm:$0xff] }
 0x83a   : > { %6085 = vrcp.f32 %v2401_v5 }
 0x842   : > { %v6082_v6 = vpop.eup %6081 }
 0x843   : > { %v2578_v0 = vadd.f32 1.0, %v6082_v6  ;;  %v6084_v8 = vpop.eup %6083  ;;  %v4863_v6 = vld [vmem:[#allocation23] ss:$0 sm:$0xff] }
 0x844   : > { %v6086_v9 = vpop.eup %6085  ;;  %v2406_v12 = vmul.f32 %v6084_v8, %v7381_v45 }
 0x845   : > { %6087 = vrcp.f32 %v2578_v0  ;;  %v2405_v18 = vmul.f32 %v6086_v9, %v7383_v47 }
 0x846   : > { %v2587_v14 = vmul.f32 0.1, %v2406_v12  ;;  %v3640_v12 = vmul.f32 %v4863_v6, %v3631_v3  ;;  %v4889_v3 = vld [vmem:[#allocation22 + $0x3] ss:$0 sm:$0xff] }
 0x847   : > { %v2586_v22 = vmul.f32 0.1, %v2405_v18 }
 0x84f   : > { %v6088_v11 = vpop.eup %6087 }
 0x850   : > { %v2583_v21 = vrot.slane %v6088_v11, %v2582_v16  ;;  %v3630_v16 = vadd.f32 %v7476_v46, %v4862_v59  ;;  %v4869_v11 = vld [vmem:[#allocation25 + $0x1] ss:$0 sm:$0xff]  ;;  %v4894_v59 = vld [vmem:[%s7706_s12 + $0x60] sm:$0xff] }
 0x852   : > { %v2584_v20 = vmul.f32 %v2583_v21, %v7383_v47  ;;  %v2585_v7 = vmul.f32 %v2583_v21, %v7381_v45  ;;  %v3653_v21 = vld [vmem:[%s7706_s12 + $0x10] sm:$0xff] }
 0x854   : > { %v2588_v23 = vmul.f32 0.1, %v2584_v20  ;;  %v2589_v24 = vmul.f32 0.1, %v2585_v7  ;;  %v4864_v20 = vld [vmem:[#allocation25] ss:$0 sm:$0xff] }
 0x856   : > { %v2590_v25 = vadd.f32 %v2588_v23, %v2586_v22  ;;  %v2591_v27 = vadd.f32 %v2589_v24, %v2587_v14  ;;  %v3632_v14 = vmax.f32 %v3630_v16, 0.0  ;;  %v5666_v23 = vpack.c.bf16 %v3654_v48, %v3653_v21 }
 0x857   : > { %v3649_v24 = vadd.f32 %v4864_v20, %v3640_v12  ;;  %v4893_v12 = vld [vmem:[#allocation25 + $0x3] ss:$0 sm:$0xff] }
 0x858   : > { %v2592_v29 = vsel %vm1143_vm0, %v2590_v25, -inf  ;;  %v2593_v54 = vsel %vm1143_vm0, %v2591_v27, -inf  ;;  %v3641_v46 = vmul.f32 %v4863_v6, %v3632_v14 }
 0x859   : > { %v2594_v30 = vmax.f32 %v2592_v29, %v2593_v54  ;;  %v3935_v54 = vld [vmem:[#allocation20 + $0x150] sm:$0xff] }
 0x85b   : > { %v2595_v31 = vrot.slane %v2594_v30, 4 }
 0x85d   : > { %v2596_v32 = vmax.f32 %v2594_v30, %v2595_v31  ;;  %v3936_v30 = vld [vmem:[#allocation20 + $0x158] sm:$0xff]  ;;  %v3650_v31 = vadd.f32 %v4864_v20, %v3641_v46 }
 0x85e   : > { %v4341_v20 = vld [vmem:[%s7707_s11] sm:$0xff]  ;;  %s4914_s11 = sshll.u32 %s6883_s0, 8  ;;  %s7712_s0 = sand.u32 1, %s6635_s10  }
 0x85f   : > { %v2597_v26 = vrot.slane %v2596_v32, 2  ;;  %s7559_s7 = scalar_lea.hbm %s6860_s13, %s4914_s11  ;;  %s6704_s11 = smov [#allocation28]  }
 0x861   : > { %v2598_v34 = vmax.f32 %v2596_v32, %v2597_v26  ;;  %v5674_v32 = vpack.c.bf16 %v3936_v30, %v3935_v54  ;;  %v4883_v26 = vld [vmem:[%s7706_s12 + $0x40] sm:$0xff] }
 0x863   : > { %v2599_v15 = vrot.slane %v2598_v34, 1 }
 0x865   : > { %v2600_v35 = vmax.f32 %v2598_v34, %v2599_v15  ;;  %v4884_v34 = vld [vmem:[%s7706_s12 + $0x48] sm:$0xff] }
 0x866   : > { %v5678_v15 = vpack.c.bf16 %v4884_v34, %v4883_v26 }
 0x867   : > { %v2601_v36 = vsub.f32 %v2590_v25, %v2600_v35  ;;  %v2602_v37 = vsub.f32 %v2591_v27, %v2600_v35  ;;  %v3933_v25 = vld [vmem:[#allocation20 + $0x140] sm:$0xff]  ;;  %v3934_v27 = vld [vmem:[#allocation20 + $0x148] sm:$0xff] }
 0x868   : > { %v5670_v29 = vpack.c.bf16 %v3934_v27, %v3933_v25  ;;  %v4885_v35 = vld [vmem:[%s7706_s12 + $0x50] sm:$0xff] }
 0x869   : > { %v2603_v38 = vmul.f32 1.442695, %v2601_v36  ;;  %v2605_v39 = vmul.f32 1.442695, %v2602_v37  ;;  %v4886_v36 = vld [vmem:[%s7706_s12 + $0x58] sm:$0xff] }
 0x86a   : > { %v5682_v37 = vpack.c.bf16 %v4886_v36, %v4885_v35  ;;  %v4900_v25 = vld [vmem:[#allocation26] ss:$0 sm:$0xff]  ;;  %v4904_v35 = vld [vmem:[%s7709_s18] ss:$0 sm:$0xff]  ;;  %s1116_s18 = scalar_lea.vmem [#allocation28], %s4773_s15  ;;  %s7567_s15 = scalar_lea.sflag [#allocation4], %s7712_s0 }
 0x86b   : > { %6089 = vpow2.f32 %v2603_v38  ;;  %v4131_v38 = vld [vmem:[#allocation20 + $0x160] sm:$0xff]  ;;  %v4901_v36 = vld [vmem:[%s7710_s2] ss:$0 sm:$0xff]  ;;  %s4491_s2 = sshll.u32 %s1116_s18, 4  ;;  %s7561_s2 = int_to_ptr.vmem [resolvable:$true] %s4491_s2 }
 0x86c   : > { %6091 = vpow2.f32 %v2605_v39  ;;  %v4132_v39 = vld [vmem:[#allocation20 + $0x168] sm:$0xff]  ;;  %s6545_s1 = scalar_lea.vmem %s7561_s2, 256 }
 0x86d   : > { %v5686_v17 = vpack.c.bf16 %v4132_v39, %v4131_v38  ;;  %v4461_v39 = vmul.f32 %v4904_v35, %v7383_v47  ;;  %p6546_p12 = scmp.ne.s32.totalorder %s7561_s2, %s6545_s1 }
 0x86f   : > { %p6547_p2 = pnand %p6546_p12, %p7713_p1 }
 0x871   : > { %p6548_p3 = pneg %p6547_p2 }
 0x875   : > { %v7488_v10 = vpop.eup %6089 }
 0x876   : > { %v7490_v28 = vpop.eup %6091 }
 0x877   : > { %v5570_v40 = vpack.c.bf16 %v7490_v28, %v7488_v10 }
 0x879   : > { %5571 = vmatprep.subr.bf16.mxu1 %v5570_v40 }
 0x87a   : > { %5573 = vmatpush3.bf16.msra.mxu1 %v5570_v40 }
 0x87b   : > { %5647 = vmatprep.subr.bf16.mxu1 %v5646_v41 }
 0x87d   : > { %5263 = vmatmul.mubr.msk.f32.vlgmr.msra.gmra.mrb[12].mxu1 %vm2609_vm11, %v2608_v43 }
 0x87e   : > { %5649 = vmatpush3.bf16.msra.mxu1 %v5646_v41  ;;  %5372 = vmatprep.mubr.msk.f32.mxu1 %vm1143_vm0, %v7383_v47 }
 0x87f   : > { %5651 = vmatprep.subr.bf16.mxu1 %v5650_v33 }
 0x882   : > { %5653 = vmatpush3.bf16.msra.mxu1 %v5650_v33 }
 0x883   : > { %5655 = vmatprep.subr.bf16.mxu1 %v5654_v13 }
 0x885   : > { %5373 = vmatmul.mubr.msk.f32.vlgmr.msra.gmra.mrb[14].mxu1 %vm1143_vm0, %v7381_v45 }
 0x886   : > { %5657 = vmatpush3.bf16.msra.mxu1 %v5654_v13  ;;  %v4882_v13 = vld [vmem:[#allocation25 + $0x2] ss:$0 sm:$0xff] }
 0x887   : > { %5659 = vmatprep.subr.bf16.mxu1 %v5658_v52 }
 0x88a   : > { %5661 = vmatpush3.bf16.msra.mxu1 %v5658_v52  ;;  %v4134_v52 = vld [vmem:[#allocation20 + $0x178] sm:$0xff] }
 0x88b   : > { %5663 = vmatprep.subr.bf16.mxu1 %v5662_v56 }
 0x950   : > { %v7505_v57 = vpop.f32.mrb[12].mxu1 }
 0x951   : > { %v7507_v58 = vpop.f32.mrb[13].mxu1  ;;  %6093 = vrcp.f32 %v7505_v57 }
 0x952   : > { %6095 = vrcp.f32 %v7507_v58 }
 0x958   : > { %v5374_v63 = vpop.f32.mrb[14].mxu1 }
 0x959   : > { %v3740_v1 = vadd.f32 %v5374_v63, %v4865_v61  ;;  %v3734_v2 = vpop.f32.mrb[15].mxu1  ;;  %v4896_v63 = vld [vmem:[%s7706_s12 + $0x70] sm:$0xff] }
 0x95a   : > { %v3735_v5 = vadd.f32 %v4865_v61, %v3734_v2  ;;  %v5694_v61 = vpack.c.bf16 %v4895_v60, %v4894_v59 }
 0x95b   : > { %v3744_v0 = vmax.f32 %v3740_v1, 0.0  ;;  %v4897_v1 = vld [vmem:[%s7706_s12 + $0x78] sm:$0xff]  ;;  %v6094_v27 = vpop.eup %6093 }
 0x95c   : > { %v3743_v8 = vmax.f32 %v3735_v5, 0.0  ;;  %v5698_v2 = vpack.c.bf16 %v4897_v1, %v4896_v63 }
 0x95d   : > { %v3754_v9 = vmul.f32 %v4868_v4, %v3744_v0  ;;  %v4892_v0 = vld [vmem:[#allocation23 + $0x3] ss:$0 sm:$0xff] }
 0x95e   : > { %v3753_v18 = vmul.f32 %v4868_v4, %v3743_v8 }
 0x95f   : > { %v3764_v22 = vadd.f32 %v4869_v11, %v3754_v9 }
 0x960   : > { %v3763_v7 = vadd.f32 %v4869_v11, %v3753_v18 }
 0x962   : > { %5383 = vmatprep.mubr.msk.f32.mxu1 %vm1143_vm0, %v3763_v7  ;;  %v4342_v7 = vld [vmem:[%s7708_s3 + $0x8] sm:$0xff] }
 0x963   : > { %5384 = vmatmul.mubr.msk.f32.vlgmr.msra.gmra.mrb[16].mxu1 %vm1143_vm0, %v3764_v22  ;;  %v5702_v14 = vpack.c.bf16 %v4342_v7, %v4341_v20  ;;  %v4343_v22 = vld [vmem:[%s7708_s3 + $0x10] sm:$0xff] }
 0x964   : > { %5665 = vmatpush3.bf16.msra.mxu1 %v5662_v56  ;;  %5394 = vmatprep.mubr.msk.f32.mxu1 %vm1143_vm0, %v3649_v24  ;;  %v5690_v56 = vpack.c.bf16 %v4134_v52, %v4133_v51 }
 0x965   : > { %5667 = vmatprep.subr.bf16.mxu1 %v5666_v23 }
 0x968   : > { %5669 = vmatpush3.bf16.msra.mxu1 %v5666_v23  ;;  %v4344_v23 = vld [vmem:[%s7708_s3 + $0x18] sm:$0xff]  ;;  %s6549_s3 = sshll.u32 %s6704_s11, 4  ;;  %s6550_s3 = int_to_ptr.vmem [resolvable:$false] %s6549_s3 }
 0x969   : > { %5671 = vmatprep.subr.bf16.mxu1 %v5670_v29  ;;  %v5706_v24 = vpack.c.bf16 %v4344_v23, %v4343_v22  ;;  %s6551_s4 = scalar_lea.vmem %s6550_s3, 512  ;;  %p6552_p4 = scmp.lt.s32.totalorder %s7561_s2, %s6550_s3 }
 0x96a   : > { %p6553_p7 = scmp.lt.s32.totalorder %s6551_s4, %s6545_s1 }
 0x96b   : > { %5395 = vmatmul.mubr.msk.f32.vlgmr.msra.gmra.mrb[16].mxu1 %vm1143_vm0, %v3650_v31 }
 0x96c   : > { %5673 = vmatpush3.bf16.msra.mxu1 %v5670_v29  ;;  %5405 = vmatprep.mubr.msk.f32.mxu1 %vm1143_vm0, %v7383_v47  ;;  %v6096_v29 = vpop.eup %6095  ;;  %p6554_p8 = por %p6553_p7, %p6552_p4 }
 0x96d   : > { %5675 = vmatprep.subr.bf16.mxu1 %v5674_v32  ;;  %v2693_v34 = vmul.f32 %v6096_v29, %v7488_v10 }
 0x96e   : > { %p6555_p11 = pnand %p6554_p8, %p6548_p3 }
 0x970   : > { %5677 = vmatpush3.bf16.msra.mxu1 %v5674_v32  ;;  %v2694_v32 = vmul.f32 %v6094_v27, %v7490_v28  ;;  %v4905_v28 = vld [vmem:[%s6845_s9] ss:$0 sm:$0xff] }
 0x971   : > { %5679 = vmatprep.subr.bf16.mxu1 %v5678_v15 }
 0x973   : > { %5406 = vmatmul.mubr.msk.f32.vlgmr.msra.gmra.mrb[18].mxu1 %vm1143_vm0, %v7381_v45 }
 0x974   : > { %5681 = vmatpush3.bf16.msra.mxu1 %v5678_v15 }
 0x975   : > { %5683 = vmatprep.subr.bf16.mxu1 %v5682_v37 }
 0x978   : > { %5685 = vmatpush3.bf16.msra.mxu1 %v5682_v37  ;;  %v4462_v37 = vmul.f32 %v4904_v35, %v7381_v45 }
 0x979   : > { %5687 = vmatprep.subr.bf16.mxu1 %v5686_v17 }
 0xa46   : > { %v5407_v40 = vpop.f32.mrb[18].mxu1 }
 0xa47   : > { %v4017_v41 = vadd.f32 %v5407_v40, %v4878_v19  ;;  %v4011_v62 = vpop.f32.mrb[19].mxu1 }
 0xa48   : > { %v4012_v43 = vadd.f32 %v4878_v19, %v4011_v62  ;;  %v4906_v62 = vld [vmem:[%s7711_s5] ss:$0 sm:$0xff] }
 0xa49   : > { %v4021_v33 = vmax.f32 %v4017_v41, 0.0  ;;  %v4464_v41 = vadd.f32 %v4905_v28, %v4462_v37 }
 0xa4a   : > { %v4020_v44 = vmax.f32 %v4012_v43, 0.0 }
 0xa4b   : > { %v4031_v49 = vmul.f32 %v4881_v42, %v4021_v33  ;;  %v4463_v33 = vadd.f32 %v4905_v28, %v4461_v39 }
 0xa4c   : > { %v4030_v50 = vmul.f32 %v4881_v42, %v4020_v44  ;;  %v4907_v42 = vld [vmem:[%s6855_s27] ss:$0 sm:$0xff] }
 0xa4d   : > { %v4041_v55 = vadd.f32 %v4882_v13, %v4031_v49  ;;  %v4472_v49 = vmul.f32 %v4907_v42, %v4464_v41 }
 0xa4e   : > { %v4040_v53 = vadd.f32 %v4882_v13, %v4030_v50  ;;  %v4471_v50 = vmul.f32 %v4907_v42, %v4463_v33 }
 0xa50   : > { %5416 = vmatprep.mubr.msk.f32.mxu1 %vm1143_vm0, %v4040_v53 }
 0xa51   : > { %5417 = vmatmul.mubr.msk.f32.vlgmr.msra.gmra.mrb[16].mxu1 %vm1143_vm0, %v4041_v55 }
 0xa52   : > { %5689 = vmatpush3.bf16.msra.mxu1 %v5686_v17  ;;  %5427 = vmatprep.mubr.msk.f32.mxu1 %vm1143_vm0, %v7383_v47 }
 0xa53   : > { %5691 = vmatprep.subr.bf16.mxu1 %v5690_v56 }
 0xa56   : > { %5693 = vmatpush3.bf16.msra.mxu1 %v5690_v56 }
 0xa57   : > { %5695 = vmatprep.subr.bf16.mxu1 %v5694_v61 }
 0xa59   : > { %5428 = vmatmul.mubr.msk.f32.vlgmr.msra.gmra.mrb[20].mxu1 %vm1143_vm0, %v7381_v45 }
 0xa5a   : > { %5697 = vmatpush3.bf16.msra.mxu1 %v5694_v61 }
 0xa5b   : > { %5699 = vmatprep.subr.bf16.mxu1 %v5698_v2 }
 0xa5e   : > { %5701 = vmatpush3.bf16.msra.mxu1 %v5698_v2 }
 0xa5f   : > { %5703 = vmatprep.subr.bf16.mxu1 %v5702_v14 }
 0xb2c   : > { %v5429_v4 = vpop.f32.mrb[20].mxu1 }
 0xb2d   : > { %v4215_v5 = vadd.f32 %v5429_v4, %v4889_v3  ;;  %v4209_v6 = vpop.f32.mrb[21].mxu1 }
 0xb2e   : > { %v4210_v8 = vadd.f32 %v4889_v3, %v4209_v6 }
 0xb2f   : > { %v4219_v16 = vmax.f32 %v4215_v5, 0.0 }
 0xb30   : > { %v4218_v9 = vmax.f32 %v4210_v8, 0.0 }
 0xb31   : > { %v4229_v11 = vmul.f32 %v4892_v0, %v4219_v16 }
 0xb32   : > { %v4228_v18 = vmul.f32 %v4892_v0, %v4218_v9 }
 0xb33   : > { %v4239_v48 = vadd.f32 %v4893_v12, %v4229_v11 }
 0xb34   : > { %v4238_v21 = vadd.f32 %v4893_v12, %v4228_v18 }
 0xb36   : > { %5438 = vmatprep.mubr.msk.f32.mxu1 %vm1143_vm0, %v4238_v21 }
 0xb37   : > { %5439 = vmatmul.mubr.msk.f32.vlgmr.msra.gmra.mrb[16].mxu1 %vm1143_vm0, %v4239_v48 }
 0xb38   : > { %5705 = vmatpush3.bf16.msra.mxu1 %v5702_v14 }
 0xb39   : > { %5707 = vmatprep.subr.bf16.mxu1 %v5706_v24 }
 0xb3c   : > { %5709 = vmatpush3.bf16.msra.mxu1 %v5706_v24 }
 0xc0a   : > { %v5440_v46 = vpop.f32.mrb[16].mxu1 }
 0xc0b   : > { %v4336_v54 = vadd.f32 %v5440_v46, %v4900_v25  ;;  %v4317_v30 = vpop.f32.mrb[17].mxu1 }
 0xc0c   : > { %v4335_v31 = vadd.f32 %v4900_v25, %v4317_v30 }
 0xc0d   : > { %v4338_v26 = vmul.f32 0.1, %v4336_v54 }
 0xc0e   : > { %v4337_v57 = vmul.f32 0.1, %v4335_v31 }
 0xc0f   : > { %v4340_v15 = vadd.f32 %v4338_v26, %v2694_v32 }
 0xc10   : > { %v4339_v58 = vadd.f32 %v4337_v57, %v2693_v34 }
 0xc12   : > { %5449 = vmatprep.mubr.msk.f32.mxu1 %vm1143_vm0, %v4339_v58 }
 0xc13   : > { %5450 = vmatmul.mubr.msk.f32.vlgmr.msra.gmra.mrb[22].mxu1 %vm1143_vm0, %v4340_v15 }
 0xce6   : > { %v5451_v38 = vpop.f32.mrb[22].mxu1 }
 0xce7   : > { %v4430_v10 = vadd.f32 %v5451_v38, %v4901_v36  ;;  %v4424_v17 = vpop.f32.mrb[23].mxu1 }
 0xce8   : > { %v4425_v19 = vadd.f32 %v4901_v36, %v4424_v17 }
 0xce9   : > { %v4441_v40 = vmul.f32 %v4904_v35, %v4430_v10 }
 0xcea   : > { %v4440_v43 = vmul.f32 %v4904_v35, %v4425_v19 }
 0xceb   : > { %v4450_v44 = vadd.f32 %v4905_v28, %v4441_v40 }
 0xcec   : > { %v4449_v45 = vadd.f32 %v4905_v28, %v4440_v43 }
 0xced   : > { %v4459_v47 = vadd.f32 %v4906_v62, %v4450_v44 }
 0xcee   : > { %v4458_v13 = vadd.f32 %v4906_v62, %v4449_v45 }
 0xcef   : > { %v4474_v51 = vadd.f32 %v4472_v49, %v4459_v47 }
 0xcf0   : > { %v4473_v52 = vadd.f32 %v4471_v50, %v4458_v13 }
 0xcf1   : > { %4476 = vst.msk [vmem:[%s1116_s18 + $0x8] sm:$0xff] %vm1143_vm0, %v4474_v51 }
 0xcf2   : > { %4475 = vst.msk [vmem:[%s1116_s18] sm:$0xff] %vm1143_vm0, %v4473_v52 }
 0xcf3   : > { %6558 = shalt.err (!%p6555_p11)
}
 0xcf4   : > { %s6559_s18 = scalar_lea.hbm %s7559_s7, 256  ;;  %s6563_s0 = scalar_lea.hbm %s6860_s13, 512 }
 0xcf5   : > { %p6560_p13 = scmp.ne.s32.totalorder %s7559_s7, %s6559_s18  ;;  %p6564_p5 = scmp.lt.u32.totalorder %s7559_s7, %s6860_s13 }
 0xcf6   : > { %p6565_p9 = scmp.lt.u32.totalorder %s6563_s0, %s6559_s18  ;;  %p6567_p12 = scmp.lt.u32.totalorder %s6559_s18, %s7559_s7 }
 0xcf7   : > { %p6561_p6 = pnand %p6560_p13, %p7713_p1 }
 0xcf8   : > { %p6566_p10 = por %p6565_p9, %p6564_p5 }
 0xcf9   : > { %p6562_p0 = pneg %p6561_p6 }
 0xcfa   : > { %p6568_p2 = por %p6567_p12, %p6566_p10 }
 0xcfc   : > { %p6569_p3 = pnand %p6568_p2, %p6562_p0 }
 0xcfe   : > { %6572 = shalt.err (!%p6569_p3)
}
 0xcff   : > { %s6705_s4 = smov 128   ;;  %s6706_s1 = smov 8  }
 0xd00   : > { %5802 = dma.vmem_to_hbm [thread:$0]  (%p7713_p1), %s7561_s2, 256, %s7559_s7, %s7567_s15, %s6705_s4, %s6705_s4, %s6706_s1  }
 0xd01 PF: > { %s7714_s3 = sld [smem:[#allocation59_spill]]  ;;  %s7715_s11 = sld [smem:[#allocation57_spill]] }
 0xd02   : > { %s7716_s5 = sld [smem:[#allocation62_spill]] }
 0xd07   : > { %p5889_p4 = scmp.ge.s32.totalorder %s7714_s3, 2  ;;  %s4506_s6 = sand.u32 1, %s7715_s11  }
 0xd08   : > { %p7717_p7 = scmp.ne.s32.totalorder %s7716_s5, 0  ;;  %s4507_s18 = scalar_lea.sflag [#allocation4], %s4506_s6 }
 0xd0a   : > { %p5854_p8 = pnand %p5889_p4, %p7717_p7 }
 0xd0c   : > { %6626 = dma.done.wait (!%p5854_p8), %s4507_s18, 256  }
 0xd0d   : > { %6628 = vsyncadd (!%p5854_p8), %s4507_s18, 4294967040  ;;  %s7718_s15 = sld [smem:[#allocation60_spill]]  ;;  %s7719_s0 = sld [smem:[#allocation58_spill]] }
 0xd0e   : > { %s7720_s11 = sld [smem:[#allocation61_spill]]  ;;  %s7721_s7 = smov %s6635_s10 }
 0xd13   : > { %p78_p11 = scmp.ge.s32.totalorder %s7718_s15, 4   ;;  %s7722_s10 = smov %s7719_s0 }
 0xd15   :  { %80 = sbr.rel (!%p78_p11) target bundleno = 63 (0x3f), region = 295 }
 0xd1c   :  { %4512 = vsyncpa [#allocation3], 1 }
 0xd1d   :  { %4514 = vsyncpa [#allocation3 + $0x1], 1 }
 0xd1e   :  { %4515 = vsyncpa [#allocation6], 1 }
 0xd1f   :  { %4516 = vsyncpa [#allocation9], 1 }
 0xd20   :  { %4517 = vsyncpa [#allocation12], 1 }
 0xd21   :  { %4518 = vsyncpa [#allocation15], 1 }
 0xd22   :  { %4519 = vsyncpa [#allocation18], 1 }
 0xd23   :  { %4520 = vsyncpa [#allocation21], 1 }
 0xd24   :  { %4521 = vsyncpa [#allocation24], 1 }
 0xd25   :  { %4522 = vsyncpa [#allocation27], 1 }
 0xd26   :  { %4523 = vsyncpa [#allocation4], 1 }
 0xd27   :  { %4525 = vsyncpa [#allocation4 + $0x1], 1 }

</bundles_post_ra>
